<compile_context>
chip_gen: v6e
topology: v6e:2x2x1
jax: 0.10.0
libtpu: 0.0.40
codegen_flags: <defaults>
</compile_context>

<pallas_src>
import functools
import math

import numpy as np
import jax
import jax.numpy as jnp
from jax import lax
from jax.experimental import pallas as pl
from jax.experimental.pallas import tpu as pltpu


# ----------------------------- hyper-parameters ------------------------------
MODEL_DIM = 32          # model_dimension
INNER_DIM = 64          # inner_layer_dimension
NUM_LAYERS = 2          # number_of_layers
NUM_HEADS = 4           # number_of_heads
VOCAB_IN = 50           # input_vocabulary_size
VOCAB_OUT = 48          # output_vocabulary_size
VOCAB_PAD = 128         # lane-dense padded projection width
BATCH = 2
SEQ = 8                 # same source / target length in the demo
NEG_INF = jnp.float32(-1e30)


# ------------------------------ fused Pallas kernel ---------------------------
def _transformer_kernel(x_ref, y_ref, dec_bias_ref,
                        wqkv_a_ref, bqkv_a_ref, wo_a_ref, bo_a_ref,
                        wqkv_m_ref, bqkv_m_ref, wo_m_ref, bo_m_ref,
                        w1_ref, b1_ref, w2_ref, b2_ref,
                        ln_g_ref, ln_b_ref,
                        wp_ref, bp_ref,
                        out_ref,
                        *, num_layers, num_heads, key_dim, model_dim):
    """Whole encoder/decoder transformer forward in a single kernel invocation."""
    f32 = jnp.float32
    D = model_dim
    H = num_heads
    kd = key_dim
    scale = 1.0 / math.sqrt(kd)

    # Load all (shared) weights once -- they stay in vregs/VMEM for all layers.
    ln_g = ln_g_ref[...]
    ln_b = ln_b_ref[...]
    w1 = w1_ref[...]
    b1 = b1_ref[...]
    w2 = w2_ref[...]
    b2 = b2_ref[...]
    wqkv_a = wqkv_a_ref[...]
    bqkv_a = bqkv_a_ref[...]
    wo_a = wo_a_ref[...]
    bo_a = bo_a_ref[...]
    wqkv_m = wqkv_m_ref[...]
    bqkv_m = bqkv_m_ref[...]
    wo_m = wo_m_ref[...]
    bo_m = bo_m_ref[...]

    def layernorm(z):                       # z: (T, D); PyTorch eps=1e-5, biased var
        mean = jnp.mean(z, axis=-1, keepdims=True)
        var = jnp.mean(jnp.square(z - mean), axis=-1, keepdims=True)
        return (z - mean) * lax.rsqrt(var + 1e-5) * ln_g + ln_b

    def ffn(z):                             # z: (T, D) -> (T, D)
        h = jnp.dot(z, w1, preferred_element_type=f32) + b1
        h = jnp.maximum(h, 0.0)
        return jnp.dot(h, w2, preferred_element_type=f32) + b2

    def attention(q3, kv3, wqkv, bqkv, wo, bo, bias, self_attn):
        """Multi-head attention.  q3: (B, Sq, D), kv3: (B, Skv, D)."""
        B, Sq, _ = q3.shape
        Skv = kv3.shape[1]
        qf = q3.reshape(B * Sq, D)
        if self_attn:
            # one fused (D, 3D) projection
            qkv = jnp.dot(qf, wqkv, preferred_element_type=f32) + bqkv
            Qf = qkv[:, :D]
            Kf = qkv[:, D:2 * D]
            Vf = qkv[:, 2 * D:]
        else:
            kvf = kv3.reshape(B * Skv, D)
            Qf = jnp.dot(qf, wqkv[:, :D], preferred_element_type=f32) + bqkv[:, :D]
            kvp = jnp.dot(kvf, wqkv[:, D:], preferred_element_type=f32) + bqkv[:, D:]
            Kf = kvp[:, :D]
            Vf = kvp[:, D:]

        acc = None
        for h in range(H):                  # static unrolled head loop (H=4)
            lo = h * kd
            qh = Qf[:, lo:lo + kd].reshape(B, Sq, kd)
            kh = Kf[:, lo:lo + kd].reshape(B, Skv, kd)
            vh = Vf[:, lo:lo + kd].reshape(B, Skv, kd)
            s = jnp.einsum('bqd,bkd->bqk', qh, kh,
                           preferred_element_type=f32) * scale
            if bias is not None:            # additive mask bias (hoisted)
                s = s + bias
            m = jnp.max(s, axis=-1, keepdims=True)
            p = jnp.exp(s - m)
            inv = pl.reciprocal(jnp.sum(p, axis=-1, keepdims=True), approx=True)
            w = p * inv
            ho = jnp.einsum('bqk,bkd->bqd', w, vh,
                            preferred_element_type=f32)      # (B, Sq, kd)
            # concat(head_h) @ Wo  ==  sum_h head_h @ Wo[h*kd:(h+1)*kd, :]
            contrib = jnp.dot(ho.reshape(B * Sq, kd), wo[lo:lo + kd, :],
                              preferred_element_type=f32)
            acc = contrib if acc is None else acc + contrib
        return (acc + bo).reshape(B, Sq, D)

    # ------------------------------- encoder ----------------------------------
    x = x_ref[...].astype(f32)              # (B, Sin, D) = embedded + pos-encoded
    B, Sin, _ = x.shape
    Tin = B * Sin

    for _ in range(num_layers):
        a = attention(x, x, wqkv_a, bqkv_a, wo_a, bo_a, bias=None, self_attn=True)
        s1 = layernorm((x + a).reshape(Tin, D))
        s2 = layernorm(s1 + ffn(s1))
        x = s2.reshape(B, Sin, D)

    # ------------------------------- decoder ----------------------------------
    y = y_ref[...].astype(f32)              # (B, Sout, D)
    Sout = y.shape[1]
    Tout = B * Sout
    dec_bias = dec_bias_ref[...]            # (Sout, Sout) additive causal bias

    for _ in range(num_layers):
        ma = attention(y, y, wqkv_m, bqkv_m, wo_m, bo_m,
                       bias=dec_bias, self_attn=True)
        s1 = layernorm((y + ma).reshape(Tout, D))
        ca = attention(s1.reshape(B, Sout, D), x, wqkv_a, bqkv_a, wo_a, bo_a,
                       bias=None, self_attn=False)
        s2 = layernorm(s1 + ca.reshape(Tout, D))
        s3 = layernorm(s2 + ffn(s2))
        y = s3.reshape(B, Sout, D)

    # ------------------- projection + softmax (lane-dense 128) ----------------
    logits = jnp.dot(y.reshape(Tout, D), wp_ref[...],
                     preferred_element_type=f32) + bp_ref[...]     # (Tout, 128)
    m = jnp.max(logits, axis=-1, keepdims=True)
    e = jnp.exp(logits - m)                 # padded columns -> exp(-1e30) == 0
    probs = e / jnp.sum(e, axis=-1, keepdims=True)
    out_ref[...] = probs.reshape(B, Sout, probs.shape[-1]).astype(out_ref.dtype)


# ------------------------------- model (glue) ---------------------------------
def positional_encoding_table(max_len, d_model):
    pe = np.zeros((max_len, d_model), dtype=np.float32)
    pos = np.arange(max_len, dtype=np.float64)[:, None]
    den = np.exp(np.arange(0, d_model, 2, dtype=np.float64)
                 * (-math.log(10000.0) / d_model))
    pe[:, 0::2] = np.sin(pos * den)
    pe[:, 1::2] = np.cos(pos * den)
    return jnp.asarray(pe)


def init_params(key):
    def normal(k, shape, scale=0.05):
        return scale * jax.random.normal(k, shape, dtype=jnp.float32)

    keys = iter(jax.random.split(key, 24))
    D = MODEL_DIM

    def mha_params():
        return {
            "wqkv": normal(next(keys), (D, 3 * D)),   # fused [Wq | Wk | Wv]
            "bqkv": normal(next(keys), (1, 3 * D)),
            "wo": normal(next(keys), (D, D)),
            "bo": normal(next(keys), (1, D)),
        }

    # final projection, padded to a lane-dense 128-wide slab:
    #  - padded weight columns are 0
    #  - padded bias columns are -1e30 so their softmax weight is exactly 0
    wp = normal(next(keys), (D, VOCAB_OUT))
    bp = normal(next(keys), (1, VOCAB_OUT))
    wp_pad = jnp.zeros((D, VOCAB_PAD), jnp.float32).at[:, :VOCAB_OUT].set(wp)
    bp_pad = jnp.full((1, VOCAB_PAD), NEG_INF, jnp.float32).at[:, :VOCAB_OUT].set(bp)

    params = {
        "in_emb": normal(next(keys), (VOCAB_IN, D), 1.0),
        "out_emb": normal(next(keys), (VOCAB_OUT, D), 1.0),
        "pe": positional_encoding_table(64, D),
        "mha": mha_params(),    # encoder self-attn == decoder cross-attn (shared)
        "mmha": mha_params(),   # decoder masked self-attn
        "ffn": {
            "w1": normal(next(keys), (D, INNER_DIM)),
            "b1": normal(next(keys), (1, INNER_DIM)),
            "w2": normal(next(keys), (INNER_DIM, D)),
            "b2": normal(next(keys), (1, D)),
        },
        # all nn.LayerNorm instances start at weight=1, bias=0 (shared here)
        "ln_g": jnp.ones((1, D), jnp.float32),
        "ln_b": jnp.zeros((1, D), jnp.float32),
        "wp_pad": wp_pad,
        "bp_pad": bp_pad,
    }
    return params


def transformer_forward(params, input_ids, output_ids, causal_mask):
    d = MODEL_DIM
    B, s_in = input_ids.shape
    s_out = output_ids.shape[1]

    # embedding lookup + sqrt(d) scale + positional encoding (plain-JAX glue)
    x = params["in_emb"][input_ids] * math.sqrt(d) + params["pe"][:s_in]
    y = params["out_emb"][output_ids] * math.sqrt(d) + params["pe"][:s_out]
    # masked_fill(mask == 0, -inf) as an additive bias, hoisted out of the kernel loop
    dec_bias = jnp.where(causal_mask == 0, NEG_INF, jnp.float32(0.0))

    kern = functools.partial(_transformer_kernel,
                             num_layers=NUM_LAYERS,
                             num_heads=NUM_HEADS,
                             key_dim=d // NUM_HEADS,
                             model_dim=d)
    p = params
    args = (x, y, dec_bias,
            p["mha"]["wqkv"], p["mha"]["bqkv"], p["mha"]["wo"], p["mha"]["bo"],
            p["mmha"]["wqkv"], p["mmha"]["bqkv"], p["mmha"]["wo"], p["mmha"]["bo"],
            p["ffn"]["w1"], p["ffn"]["b1"], p["ffn"]["w2"], p["ffn"]["b2"],
            p["ln_g"], p["ln_b"],
            p["wp_pad"], p["bp_pad"])

    vmem_spec = pl.BlockSpec(memory_space=pltpu.MemorySpace.VMEM)
    out_pad = pl.pallas_call(
        kern,
        out_shape=jax.ShapeDtypeStruct((B, s_out, VOCAB_PAD), jnp.float32),
        in_specs=[vmem_spec] * len(args),
        out_specs=vmem_spec,
    )(*args)

    # slice the lane-dense padded vocab back to the real vocabulary size
    return out_pad[:, :, :VOCAB_OUT]


def generate_causal_mask(seq_len):
    # matches torch.tril(torch.ones(S, S)); broadcast over batch/heads in-kernel
    return jnp.tril(jnp.ones((seq_len, seq_len), jnp.float32))


# ----------------------------------- main -------------------------------------
if __name__ == "__main__":
    key = jax.random.PRNGKey(0)
    pkey, ikey, okey = jax.random.split(key, 3)

    params = init_params(pkey)
    input_ids = jax.random.randint(ikey, (BATCH, SEQ), 0, VOCAB_IN, dtype=jnp.int32)
    output_ids = jax.random.randint(okey, (BATCH, SEQ), 0, VOCAB_OUT, dtype=jnp.int32)
    causal_mask = generate_causal_mask(SEQ)

    fwd = jax.jit(transformer_forward)
    out = fwd(params, input_ids, output_ids, causal_mask)
    out = jax.block_until_ready(out)

    assert out.shape == (BATCH, SEQ, VOCAB_OUT)
    # softmax rows must sum to 1 (padded vocab columns contribute exactly 0)
    assert np.allclose(np.asarray(jnp.sum(out, axis=-1)), 1.0, atol=1e-4)
    print("KERNEL_OK")
</pallas_src>

<mosaic_0001>
module attributes {stable_mosaic.version = 11 : i64} {
  func.func @_transformer_kernel(%arg0: memref<2x8x32xf32, #tpu.memory_space<vmem>>, %arg1: memref<2x8x32xf32, #tpu.memory_space<vmem>>, %arg2: memref<8x8xf32, #tpu.memory_space<vmem>>, %arg3: memref<32x96xf32, #tpu.memory_space<vmem>>, %arg4: memref<1x96xf32, #tpu.memory_space<vmem>>, %arg5: memref<32x32xf32, #tpu.memory_space<vmem>>, %arg6: memref<1x32xf32, #tpu.memory_space<vmem>>, %arg7: memref<32x96xf32, #tpu.memory_space<vmem>>, %arg8: memref<1x96xf32, #tpu.memory_space<vmem>>, %arg9: memref<32x32xf32, #tpu.memory_space<vmem>>, %arg10: memref<1x32xf32, #tpu.memory_space<vmem>>, %arg11: memref<32x64xf32, #tpu.memory_space<vmem>>, %arg12: memref<1x64xf32, #tpu.memory_space<vmem>>, %arg13: memref<64x32xf32, #tpu.memory_space<vmem>>, %arg14: memref<1x32xf32, #tpu.memory_space<vmem>>, %arg15: memref<1x32xf32, #tpu.memory_space<vmem>>, %arg16: memref<1x32xf32, #tpu.memory_space<vmem>>, %arg17: memref<32x128xf32, #tpu.memory_space<vmem>>, %arg18: memref<1x128xf32, #tpu.memory_space<vmem>>, %arg19: memref<2x8x128xf32, #tpu.memory_space<vmem>>) attributes {dimension_semantics = [], scalar_prefetch = 0 : i64, scratch_operands = 0 : i64, tpu.core_type = #tpu.core_type<tc>} {
    %c0 = arith.constant 0 : index
    %c0_0 = arith.constant 0 : index
    %0 = vector.load %arg15[%c0, %c0_0] : memref<1x32xf32, #tpu.memory_space<vmem>>, vector<1x32xf32>
    %c0_1 = arith.constant 0 : index
    %c0_2 = arith.constant 0 : index
    %1 = vector.load %arg16[%c0_1, %c0_2] : memref<1x32xf32, #tpu.memory_space<vmem>>, vector<1x32xf32>
    %c0_3 = arith.constant 0 : index
    %c0_4 = arith.constant 0 : index
    %2 = vector.load %arg11[%c0_3, %c0_4] : memref<32x64xf32, #tpu.memory_space<vmem>>, vector<32x64xf32>
    %c0_5 = arith.constant 0 : index
    %c0_6 = arith.constant 0 : index
    %3 = vector.load %arg12[%c0_5, %c0_6] : memref<1x64xf32, #tpu.memory_space<vmem>>, vector<1x64xf32>
    %c0_7 = arith.constant 0 : index
    %c0_8 = arith.constant 0 : index
    %4 = vector.load %arg13[%c0_7, %c0_8] : memref<64x32xf32, #tpu.memory_space<vmem>>, vector<64x32xf32>
    %c0_9 = arith.constant 0 : index
    %c0_10 = arith.constant 0 : index
    %5 = vector.load %arg14[%c0_9, %c0_10] : memref<1x32xf32, #tpu.memory_space<vmem>>, vector<1x32xf32>
    %c0_11 = arith.constant 0 : index
    %c0_12 = arith.constant 0 : index
    %6 = vector.load %arg3[%c0_11, %c0_12] : memref<32x96xf32, #tpu.memory_space<vmem>>, vector<32x96xf32>
    %c0_13 = arith.constant 0 : index
    %c0_14 = arith.constant 0 : index
    %7 = vector.load %arg4[%c0_13, %c0_14] : memref<1x96xf32, #tpu.memory_space<vmem>>, vector<1x96xf32>
    %c0_15 = arith.constant 0 : index
    %c0_16 = arith.constant 0 : index
    %8 = vector.load %arg5[%c0_15, %c0_16] : memref<32x32xf32, #tpu.memory_space<vmem>>, vector<32x32xf32>
    %c0_17 = arith.constant 0 : index
    %c0_18 = arith.constant 0 : index
    %9 = vector.load %arg6[%c0_17, %c0_18] : memref<1x32xf32, #tpu.memory_space<vmem>>, vector<1x32xf32>
    %c0_19 = arith.constant 0 : index
    %c0_20 = arith.constant 0 : index
    %10 = vector.load %arg7[%c0_19, %c0_20] : memref<32x96xf32, #tpu.memory_space<vmem>>, vector<32x96xf32>
    %c0_21 = arith.constant 0 : index
    %c0_22 = arith.constant 0 : index
    %11 = vector.load %arg8[%c0_21, %c0_22] : memref<1x96xf32, #tpu.memory_space<vmem>>, vector<1x96xf32>
    %c0_23 = arith.constant 0 : index
    %c0_24 = arith.constant 0 : index
    %12 = vector.load %arg9[%c0_23, %c0_24] : memref<32x32xf32, #tpu.memory_space<vmem>>, vector<32x32xf32>
    %c0_25 = arith.constant 0 : index
    %c0_26 = arith.constant 0 : index
    %13 = vector.load %arg10[%c0_25, %c0_26] : memref<1x32xf32, #tpu.memory_space<vmem>>, vector<1x32xf32>
    %c0_27 = arith.constant 0 : index
    %c0_28 = arith.constant 0 : index
    %c0_29 = arith.constant 0 : index
    %14 = vector.load %arg0[%c0_27, %c0_28, %c0_29] : memref<2x8x32xf32, #tpu.memory_space<vmem>>, vector<2x8x32xf32>
    %15 = vector.shape_cast %14 : vector<2x8x32xf32> to vector<16x32xf32>
    %cst = arith.constant dense<0.000000e+00> : vector<16x96xf32>
    %16 = tpu.matmul %15, %6, %cst {dimension_numbers = #tpu.dot_dimension_numbers<[1], [0], [0], [1], [0, 0, 1, 1], [], []>} : vector<16x32xf32>, vector<32x96xf32>, vector<16x96xf32> -> vector<16x96xf32>
    %17 = vector.broadcast %7 : vector<1x96xf32> to vector<16x96xf32>
    %18 = arith.addf %16, %17 : vector<16x96xf32>
    %19 = vector.extract_strided_slice %18 {offsets = [0, 0], sizes = [16, 32], strides = [1, 1]} : vector<16x96xf32> to vector<16x32xf32>
    %20 = vector.extract_strided_slice %18 {offsets = [0, 32], sizes = [16, 32], strides = [1, 1]} : vector<16x96xf32> to vector<16x32xf32>
    %21 = vector.extract_strided_slice %18 {offsets = [0, 64], sizes = [16, 32], strides = [1, 1]} : vector<16x96xf32> to vector<16x32xf32>
    %22 = vector.extract_strided_slice %19 {offsets = [0, 0], sizes = [16, 8], strides = [1, 1]} : vector<16x32xf32> to vector<16x8xf32>
    %23 = vector.shape_cast %22 : vector<16x8xf32> to vector<2x8x8xf32>
    %24 = vector.extract_strided_slice %20 {offsets = [0, 0], sizes = [16, 8], strides = [1, 1]} : vector<16x32xf32> to vector<16x8xf32>
    %25 = vector.shape_cast %24 : vector<16x8xf32> to vector<2x8x8xf32>
    %26 = vector.extract_strided_slice %21 {offsets = [0, 0], sizes = [16, 8], strides = [1, 1]} : vector<16x32xf32> to vector<16x8xf32>
    %27 = vector.shape_cast %26 : vector<16x8xf32> to vector<2x8x8xf32>
    "tpu.trace_start"() <{level = 10 : i32, message = "bqd,bkd->bqk"}> : () -> ()
    %cst_30 = arith.constant dense<0.000000e+00> : vector<2x8x8xf32>
    %28 = tpu.matmul %23, %25, %cst_30 {dimension_numbers = #tpu.dot_dimension_numbers<[2], [2], [1], [1], [0, 0, 0, 1, 1, 1], [0], [0]>} : vector<2x8x8xf32>, vector<2x8x8xf32>, vector<2x8x8xf32> -> vector<2x8x8xf32>
    "tpu.trace_stop"() : () -> ()
    %cst_31 = arith.constant 0.353553385 : f32
    %29 = vector.broadcast %cst_31 : f32 to vector<2x8x8xf32>
    %30 = arith.mulf %28, %29 : vector<2x8x8xf32>
    %cst_32 = arith.constant dense<0xFF800000> : vector<2x8xf32>
    %31 = vector.multi_reduction <maximumf>, %30, %cst_32 [2] : vector<2x8x8xf32> to vector<2x8xf32>
    %32 = vector.shape_cast %31 : vector<2x8xf32> to vector<2x8x1xf32>
    %33 = vector.broadcast %32 : vector<2x8x1xf32> to vector<2x8x8xf32>
    %34 = arith.subf %30, %33 : vector<2x8x8xf32>
    %35 = math.exp %34 : vector<2x8x8xf32>
    %cst_33 = arith.constant dense<0.000000e+00> : vector<2x8xf32>
    %36 = vector.multi_reduction <add>, %35, %cst_33 [2] : vector<2x8x8xf32> to vector<2x8xf32>
    %37 = vector.shape_cast %36 : vector<2x8xf32> to vector<2x8x1xf32>
    %38 = tpu.reciprocal %37 {approx = true} : vector<2x8x1xf32> -> vector<2x8x1xf32>
    %39 = vector.broadcast %38 : vector<2x8x1xf32> to vector<2x8x8xf32>
    %40 = arith.mulf %35, %39 : vector<2x8x8xf32>
    "tpu.trace_start"() <{level = 10 : i32, message = "bqk,bkd->bqd"}> : () -> ()
    %cst_34 = arith.constant dense<0.000000e+00> : vector<2x8x8xf32>
    %41 = tpu.matmul %40, %27, %cst_34 {dimension_numbers = #tpu.dot_dimension_numbers<[2], [1], [1], [2], [0, 0, 0, 1, 1, 2], [0], [0]>} : vector<2x8x8xf32>, vector<2x8x8xf32>, vector<2x8x8xf32> -> vector<2x8x8xf32>
    "tpu.trace_stop"() : () -> ()
    %42 = vector.shape_cast %41 : vector<2x8x8xf32> to vector<16x8xf32>
    %43 = vector.extract_strided_slice %8 {offsets = [0, 0], sizes = [8, 32], strides = [1, 1]} : vector<32x32xf32> to vector<8x32xf32>
    %cst_35 = arith.constant dense<0.000000e+00> : vector<16x32xf32>
    %44 = tpu.matmul %42, %43, %cst_35 {dimension_numbers = #tpu.dot_dimension_numbers<[1], [0], [0], [1], [0, 0, 1, 1], [], []>} : vector<16x8xf32>, vector<8x32xf32>, vector<16x32xf32> -> vector<16x32xf32>
    %45 = vector.extract_strided_slice %19 {offsets = [0, 8], sizes = [16, 8], strides = [1, 1]} : vector<16x32xf32> to vector<16x8xf32>
    %46 = vector.shape_cast %45 : vector<16x8xf32> to vector<2x8x8xf32>
    %47 = vector.extract_strided_slice %20 {offsets = [0, 8], sizes = [16, 8], strides = [1, 1]} : vector<16x32xf32> to vector<16x8xf32>
    %48 = vector.shape_cast %47 : vector<16x8xf32> to vector<2x8x8xf32>
    %49 = vector.extract_strided_slice %21 {offsets = [0, 8], sizes = [16, 8], strides = [1, 1]} : vector<16x32xf32> to vector<16x8xf32>
    %50 = vector.shape_cast %49 : vector<16x8xf32> to vector<2x8x8xf32>
    "tpu.trace_start"() <{level = 10 : i32, message = "bqd,bkd->bqk"}> : () -> ()
    %cst_36 = arith.constant dense<0.000000e+00> : vector<2x8x8xf32>
    %51 = tpu.matmul %46, %48, %cst_36 {dimension_numbers = #tpu.dot_dimension_numbers<[2], [2], [1], [1], [0, 0, 0, 1, 1, 1], [0], [0]>} : vector<2x8x8xf32>, vector<2x8x8xf32>, vector<2x8x8xf32> -> vector<2x8x8xf32>
    "tpu.trace_stop"() : () -> ()
    %cst_37 = arith.constant 0.353553385 : f32
    %52 = vector.broadcast %cst_37 : f32 to vector<2x8x8xf32>
    %53 = arith.mulf %51, %52 : vector<2x8x8xf32>
    %cst_38 = arith.constant dense<0xFF800000> : vector<2x8xf32>
    %54 = vector.multi_reduction <maximumf>, %53, %cst_38 [2] : vector<2x8x8xf32> to vector<2x8xf32>
    %55 = vector.shape_cast %54 : vector<2x8xf32> to vector<2x8x1xf32>
    %56 = vector.broadcast %55 : vector<2x8x1xf32> to vector<2x8x8xf32>
    %57 = arith.subf %53, %56 : vector<2x8x8xf32>
    %58 = math.exp %57 : vector<2x8x8xf32>
    %cst_39 = arith.constant dense<0.000000e+00> : vector<2x8xf32>
    %59 = vector.multi_reduction <add>, %58, %cst_39 [2] : vector<2x8x8xf32> to vector<2x8xf32>
    %60 = vector.shape_cast %59 : vector<2x8xf32> to vector<2x8x1xf32>
    %61 = tpu.reciprocal %60 {approx = true} : vector<2x8x1xf32> -> vector<2x8x1xf32>
    %62 = vector.broadcast %61 : vector<2x8x1xf32> to vector<2x8x8xf32>
    %63 = arith.mulf %58, %62 : vector<2x8x8xf32>
    "tpu.trace_start"() <{level = 10 : i32, message = "bqk,bkd->bqd"}> : () -> ()
    %cst_40 = arith.constant dense<0.000000e+00> : vector<2x8x8xf32>
    %64 = tpu.matmul %63, %50, %cst_40 {dimension_numbers = #tpu.dot_dimension_numbers<[2], [1], [1], [2], [0, 0, 0, 1, 1, 2], [0], [0]>} : vector<2x8x8xf32>, vector<2x8x8xf32>, vector<2x8x8xf32> -> vector<2x8x8xf32>
    "tpu.trace_stop"() : () -> ()
    %65 = vector.shape_cast %64 : vector<2x8x8xf32> to vector<16x8xf32>
    %66 = vector.extract_strided_slice %8 {offsets = [8, 0], sizes = [8, 32], strides = [1, 1]} : vector<32x32xf32> to vector<8x32xf32>
    %cst_41 = arith.constant dense<0.000000e+00> : vector<16x32xf32>
    %67 = tpu.matmul %65, %66, %cst_41 {dimension_numbers = #tpu.dot_dimension_numbers<[1], [0], [0], [1], [0, 0, 1, 1], [], []>} : vector<16x8xf32>, vector<8x32xf32>, vector<16x32xf32> -> vector<16x32xf32>
    %68 = arith.addf %44, %67 : vector<16x32xf32>
    %69 = vector.extract_strided_slice %19 {offsets = [0, 16], sizes = [16, 8], strides = [1, 1]} : vector<16x32xf32> to vector<16x8xf32>
    %70 = vector.shape_cast %69 : vector<16x8xf32> to vector<2x8x8xf32>
    %71 = vector.extract_strided_slice %20 {offsets = [0, 16], sizes = [16, 8], strides = [1, 1]} : vector<16x32xf32> to vector<16x8xf32>
    %72 = vector.shape_cast %71 : vector<16x8xf32> to vector<2x8x8xf32>
    %73 = vector.extract_strided_slice %21 {offsets = [0, 16], sizes = [16, 8], strides = [1, 1]} : vector<16x32xf32> to vector<16x8xf32>
    %74 = vector.shape_cast %73 : vector<16x8xf32> to vector<2x8x8xf32>
    "tpu.trace_start"() <{level = 10 : i32, message = "bqd,bkd->bqk"}> : () -> ()
    %cst_42 = arith.constant dense<0.000000e+00> : vector<2x8x8xf32>
    %75 = tpu.matmul %70, %72, %cst_42 {dimension_numbers = #tpu.dot_dimension_numbers<[2], [2], [1], [1], [0, 0, 0, 1, 1, 1], [0], [0]>} : vector<2x8x8xf32>, vector<2x8x8xf32>, vector<2x8x8xf32> -> vector<2x8x8xf32>
    "tpu.trace_stop"() : () -> ()
    %cst_43 = arith.constant 0.353553385 : f32
    %76 = vector.broadcast %cst_43 : f32 to vector<2x8x8xf32>
    %77 = arith.mulf %75, %76 : vector<2x8x8xf32>
    %cst_44 = arith.constant dense<0xFF800000> : vector<2x8xf32>
    %78 = vector.multi_reduction <maximumf>, %77, %cst_44 [2] : vector<2x8x8xf32> to vector<2x8xf32>
    %79 = vector.shape_cast %78 : vector<2x8xf32> to vector<2x8x1xf32>
    %80 = vector.broadcast %79 : vector<2x8x1xf32> to vector<2x8x8xf32>
    %81 = arith.subf %77, %80 : vector<2x8x8xf32>
    %82 = math.exp %81 : vector<2x8x8xf32>
    %cst_45 = arith.constant dense<0.000000e+00> : vector<2x8xf32>
    %83 = vector.multi_reduction <add>, %82, %cst_45 [2] : vector<2x8x8xf32> to vector<2x8xf32>
    %84 = vector.shape_cast %83 : vector<2x8xf32> to vector<2x8x1xf32>
    %85 = tpu.reciprocal %84 {approx = true} : vector<2x8x1xf32> -> vector<2x8x1xf32>
    %86 = vector.broadcast %85 : vector<2x8x1xf32> to vector<2x8x8xf32>
    %87 = arith.mulf %82, %86 : vector<2x8x8xf32>
    "tpu.trace_start"() <{level = 10 : i32, message = "bqk,bkd->bqd"}> : () -> ()
    %cst_46 = arith.constant dense<0.000000e+00> : vector<2x8x8xf32>
    %88 = tpu.matmul %87, %74, %cst_46 {dimension_numbers = #tpu.dot_dimension_numbers<[2], [1], [1], [2], [0, 0, 0, 1, 1, 2], [0], [0]>} : vector<2x8x8xf32>, vector<2x8x8xf32>, vector<2x8x8xf32> -> vector<2x8x8xf32>
    "tpu.trace_stop"() : () -> ()
    %89 = vector.shape_cast %88 : vector<2x8x8xf32> to vector<16x8xf32>
    %90 = vector.extract_strided_slice %8 {offsets = [16, 0], sizes = [8, 32], strides = [1, 1]} : vector<32x32xf32> to vector<8x32xf32>
    %cst_47 = arith.constant dense<0.000000e+00> : vector<16x32xf32>
    %91 = tpu.matmul %89, %90, %cst_47 {dimension_numbers = #tpu.dot_dimension_numbers<[1], [0], [0], [1], [0, 0, 1, 1], [], []>} : vector<16x8xf32>, vector<8x32xf32>, vector<16x32xf32> -> vector<16x32xf32>
    %92 = arith.addf %68, %91 : vector<16x32xf32>
    %93 = vector.extract_strided_slice %19 {offsets = [0, 24], sizes = [16, 8], strides = [1, 1]} : vector<16x32xf32> to vector<16x8xf32>
    %94 = vector.shape_cast %93 : vector<16x8xf32> to vector<2x8x8xf32>
    %95 = vector.extract_strided_slice %20 {offsets = [0, 24], sizes = [16, 8], strides = [1, 1]} : vector<16x32xf32> to vector<16x8xf32>
    %96 = vector.shape_cast %95 : vector<16x8xf32> to vector<2x8x8xf32>
    %97 = vector.extract_strided_slice %21 {offsets = [0, 24], sizes = [16, 8], strides = [1, 1]} : vector<16x32xf32> to vector<16x8xf32>
    %98 = vector.shape_cast %97 : vector<16x8xf32> to vector<2x8x8xf32>
    "tpu.trace_start"() <{level = 10 : i32, message = "bqd,bkd->bqk"}> : () -> ()
    %cst_48 = arith.constant dense<0.000000e+00> : vector<2x8x8xf32>
    %99 = tpu.matmul %94, %96, %cst_48 {dimension_numbers = #tpu.dot_dimension_numbers<[2], [2], [1], [1], [0, 0, 0, 1, 1, 1], [0], [0]>} : vector<2x8x8xf32>, vector<2x8x8xf32>, vector<2x8x8xf32> -> vector<2x8x8xf32>
    "tpu.trace_stop"() : () -> ()
    %cst_49 = arith.constant 0.353553385 : f32
    %100 = vector.broadcast %cst_49 : f32 to vector<2x8x8xf32>
    %101 = arith.mulf %99, %100 : vector<2x8x8xf32>
    %cst_50 = arith.constant dense<0xFF800000> : vector<2x8xf32>
    %102 = vector.multi_reduction <maximumf>, %101, %cst_50 [2] : vector<2x8x8xf32> to vector<2x8xf32>
    %103 = vector.shape_cast %102 : vector<2x8xf32> to vector<2x8x1xf32>
    %104 = vector.broadcast %103 : vector<2x8x1xf32> to vector<2x8x8xf32>
    %105 = arith.subf %101, %104 : vector<2x8x8xf32>
    %106 = math.exp %105 : vector<2x8x8xf32>
    %cst_51 = arith.constant dense<0.000000e+00> : vector<2x8xf32>
    %107 = vector.multi_reduction <add>, %106, %cst_51 [2] : vector<2x8x8xf32> to vector<2x8xf32>
    %108 = vector.shape_cast %107 : vector<2x8xf32> to vector<2x8x1xf32>
    %109 = tpu.reciprocal %108 {approx = true} : vector<2x8x1xf32> -> vector<2x8x1xf32>
    %110 = vector.broadcast %109 : vector<2x8x1xf32> to vector<2x8x8xf32>
    %111 = arith.mulf %106, %110 : vector<2x8x8xf32>
    "tpu.trace_start"() <{level = 10 : i32, message = "bqk,bkd->bqd"}> : () -> ()
    %cst_52 = arith.constant dense<0.000000e+00> : vector<2x8x8xf32>
    %112 = tpu.matmul %111, %98, %cst_52 {dimension_numbers = #tpu.dot_dimension_numbers<[2], [1], [1], [2], [0, 0, 0, 1, 1, 2], [0], [0]>} : vector<2x8x8xf32>, vector<2x8x8xf32>, vector<2x8x8xf32> -> vector<2x8x8xf32>
    "tpu.trace_stop"() : () -> ()
    %113 = vector.shape_cast %112 : vector<2x8x8xf32> to vector<16x8xf32>
    %114 = vector.extract_strided_slice %8 {offsets = [24, 0], sizes = [8, 32], strides = [1, 1]} : vector<32x32xf32> to vector<8x32xf32>
    %cst_53 = arith.constant dense<0.000000e+00> : vector<16x32xf32>
    %115 = tpu.matmul %113, %114, %cst_53 {dimension_numbers = #tpu.dot_dimension_numbers<[1], [0], [0], [1], [0, 0, 1, 1], [], []>} : vector<16x8xf32>, vector<8x32xf32>, vector<16x32xf32> -> vector<16x32xf32>
    %116 = arith.addf %92, %115 : vector<16x32xf32>
    %117 = vector.broadcast %9 : vector<1x32xf32> to vector<16x32xf32>
    %118 = arith.addf %116, %117 : vector<16x32xf32>
    %119 = vector.shape_cast %118 : vector<16x32xf32> to vector<2x8x32xf32>
    %120 = arith.addf %14, %119 : vector<2x8x32xf32>
    %121 = vector.shape_cast %120 : vector<2x8x32xf32> to vector<16x32xf32>
    %cst_54 = arith.constant dense<0.000000e+00> : vector<16xf32>
    %122 = vector.multi_reduction <add>, %121, %cst_54 [1] : vector<16x32xf32> to vector<16xf32>
    %123 = vector.shape_cast %122 : vector<16xf32> to vector<16x1xf32>
    %cst_55 = arith.constant 3.200000e+01 : f32
    %124 = vector.broadcast %cst_55 : f32 to vector<16x1xf32>
    %125 = arith.divf %123, %124 : vector<16x1xf32>
    %126 = vector.broadcast %125 : vector<16x1xf32> to vector<16x32xf32>
    %127 = arith.subf %121, %126 : vector<16x32xf32>
    %128 = arith.mulf %127, %127 : vector<16x32xf32>
    %cst_56 = arith.constant dense<0.000000e+00> : vector<16xf32>
    %129 = vector.multi_reduction <add>, %128, %cst_56 [1] : vector<16x32xf32> to vector<16xf32>
    %130 = vector.shape_cast %129 : vector<16xf32> to vector<16x1xf32>
    %cst_57 = arith.constant 3.200000e+01 : f32
    %131 = vector.broadcast %cst_57 : f32 to vector<16x1xf32>
    %132 = arith.divf %130, %131 : vector<16x1xf32>
    %133 = vector.broadcast %125 : vector<16x1xf32> to vector<16x32xf32>
    %134 = arith.subf %121, %133 : vector<16x32xf32>
    %cst_58 = arith.constant 9.99999974E-6 : f32
    %135 = vector.broadcast %cst_58 : f32 to vector<16x1xf32>
    %136 = arith.addf %132, %135 : vector<16x1xf32>
    %137 = math.rsqrt %136 : vector<16x1xf32>
    %138 = vector.broadcast %137 : vector<16x1xf32> to vector<16x32xf32>
    %139 = arith.mulf %134, %138 : vector<16x32xf32>
    %140 = vector.broadcast %0 : vector<1x32xf32> to vector<16x32xf32>
    %141 = arith.mulf %139, %140 : vector<16x32xf32>
    %142 = vector.broadcast %1 : vector<1x32xf32> to vector<16x32xf32>
    %143 = arith.addf %141, %142 : vector<16x32xf32>
    %cst_59 = arith.constant dense<0.000000e+00> : vector<16x64xf32>
    %144 = tpu.matmul %143, %2, %cst_59 {dimension_numbers = #tpu.dot_dimension_numbers<[1], [0], [0], [1], [0, 0, 1, 1], [], []>} : vector<16x32xf32>, vector<32x64xf32>, vector<16x64xf32> -> vector<16x64xf32>
    %145 = vector.broadcast %3 : vector<1x64xf32> to vector<16x64xf32>
    %146 = arith.addf %144, %145 : vector<16x64xf32>
    %cst_60 = arith.constant 0.000000e+00 : f32
    %147 = vector.broadcast %cst_60 : f32 to vector<16x64xf32>
    %148 = arith.maximumf %146, %147 : vector<16x64xf32>
    %cst_61 = arith.constant dense<0.000000e+00> : vector<16x32xf32>
    %149 = tpu.matmul %148, %4, %cst_61 {dimension_numbers = #tpu.dot_dimension_numbers<[1], [0], [0], [1], [0, 0, 1, 1], [], []>} : vector<16x64xf32>, vector<64x32xf32>, vector<16x32xf32> -> vector<16x32xf32>
    %150 = vector.broadcast %5 : vector<1x32xf32> to vector<16x32xf32>
    %151 = arith.addf %149, %150 : vector<16x32xf32>
    %152 = arith.addf %143, %151 : vector<16x32xf32>
    %cst_62 = arith.constant dense<0.000000e+00> : vector<16xf32>
    %153 = vector.multi_reduction <add>, %152, %cst_62 [1] : vector<16x32xf32> to vector<16xf32>
    %154 = vector.shape_cast %153 : vector<16xf32> to vector<16x1xf32>
    %cst_63 = arith.constant 3.200000e+01 : f32
    %155 = vector.broadcast %cst_63 : f32 to vector<16x1xf32>
    %156 = arith.divf %154, %155 : vector<16x1xf32>
    %157 = vector.broadcast %156 : vector<16x1xf32> to vector<16x32xf32>
    %158 = arith.subf %152, %157 : vector<16x32xf32>
    %159 = arith.mulf %158, %158 : vector<16x32xf32>
    %cst_64 = arith.constant dense<0.000000e+00> : vector<16xf32>
    %160 = vector.multi_reduction <add>, %159, %cst_64 [1] : vector<16x32xf32> to vector<16xf32>
    %161 = vector.shape_cast %160 : vector<16xf32> to vector<16x1xf32>
    %cst_65 = arith.constant 3.200000e+01 : f32
    %162 = vector.broadcast %cst_65 : f32 to vector<16x1xf32>
    %163 = arith.divf %161, %162 : vector<16x1xf32>
    %164 = vector.broadcast %156 : vector<16x1xf32> to vector<16x32xf32>
    %165 = arith.subf %152, %164 : vector<16x32xf32>
    %cst_66 = arith.constant 9.99999974E-6 : f32
    %166 = vector.broadcast %cst_66 : f32 to vector<16x1xf32>
    %167 = arith.addf %163, %166 : vector<16x1xf32>
    %168 = math.rsqrt %167 : vector<16x1xf32>
    %169 = vector.broadcast %168 : vector<16x1xf32> to vector<16x32xf32>
    %170 = arith.mulf %165, %169 : vector<16x32xf32>
    %171 = vector.broadcast %0 : vector<1x32xf32> to vector<16x32xf32>
    %172 = arith.mulf %170, %171 : vector<16x32xf32>
    %173 = vector.broadcast %1 : vector<1x32xf32> to vector<16x32xf32>
    %174 = arith.addf %172, %173 : vector<16x32xf32>
    %175 = vector.shape_cast %174 : vector<16x32xf32> to vector<2x8x32xf32>
    %176 = vector.shape_cast %175 : vector<2x8x32xf32> to vector<16x32xf32>
    %cst_67 = arith.constant dense<0.000000e+00> : vector<16x96xf32>
    %177 = tpu.matmul %176, %6, %cst_67 {dimension_numbers = #tpu.dot_dimension_numbers<[1], [0], [0], [1], [0, 0, 1, 1], [], []>} : vector<16x32xf32>, vector<32x96xf32>, vector<16x96xf32> -> vector<16x96xf32>
    %178 = vector.broadcast %7 : vector<1x96xf32> to vector<16x96xf32>
    %179 = arith.addf %177, %178 : vector<16x96xf32>
    %180 = vector.extract_strided_slice %179 {offsets = [0, 0], sizes = [16, 32], strides = [1, 1]} : vector<16x96xf32> to vector<16x32xf32>
    %181 = vector.extract_strided_slice %179 {offsets = [0, 32], sizes = [16, 32], strides = [1, 1]} : vector<16x96xf32> to vector<16x32xf32>
    %182 = vector.extract_strided_slice %179 {offsets = [0, 64], sizes = [16, 32], strides = [1, 1]} : vector<16x96xf32> to vector<16x32xf32>
    %183 = vector.extract_strided_slice %180 {offsets = [0, 0], sizes = [16, 8], strides = [1, 1]} : vector<16x32xf32> to vector<16x8xf32>
    %184 = vector.shape_cast %183 : vector<16x8xf32> to vector<2x8x8xf32>
    %185 = vector.extract_strided_slice %181 {offsets = [0, 0], sizes = [16, 8], strides = [1, 1]} : vector<16x32xf32> to vector<16x8xf32>
    %186 = vector.shape_cast %185 : vector<16x8xf32> to vector<2x8x8xf32>
    %187 = vector.extract_strided_slice %182 {offsets = [0, 0], sizes = [16, 8], strides = [1, 1]} : vector<16x32xf32> to vector<16x8xf32>
    %188 = vector.shape_cast %187 : vector<16x8xf32> to vector<2x8x8xf32>
    "tpu.trace_start"() <{level = 10 : i32, message = "bqd,bkd->bqk"}> : () -> ()
    %cst_68 = arith.constant dense<0.000000e+00> : vector<2x8x8xf32>
    %189 = tpu.matmul %184, %186, %cst_68 {dimension_numbers = #tpu.dot_dimension_numbers<[2], [2], [1], [1], [0, 0, 0, 1, 1, 1], [0], [0]>} : vector<2x8x8xf32>, vector<2x8x8xf32>, vector<2x8x8xf32> -> vector<2x8x8xf32>
    "tpu.trace_stop"() : () -> ()
    %cst_69 = arith.constant 0.353553385 : f32
    %190 = vector.broadcast %cst_69 : f32 to vector<2x8x8xf32>
    %191 = arith.mulf %189, %190 : vector<2x8x8xf32>
    %cst_70 = arith.constant dense<0xFF800000> : vector<2x8xf32>
    %192 = vector.multi_reduction <maximumf>, %191, %cst_70 [2] : vector<2x8x8xf32> to vector<2x8xf32>
    %193 = vector.shape_cast %192 : vector<2x8xf32> to vector<2x8x1xf32>
    %194 = vector.broadcast %193 : vector<2x8x1xf32> to vector<2x8x8xf32>
    %195 = arith.subf %191, %194 : vector<2x8x8xf32>
    %196 = math.exp %195 : vector<2x8x8xf32>
    %cst_71 = arith.constant dense<0.000000e+00> : vector<2x8xf32>
    %197 = vector.multi_reduction <add>, %196, %cst_71 [2] : vector<2x8x8xf32> to vector<2x8xf32>
    %198 = vector.shape_cast %197 : vector<2x8xf32> to vector<2x8x1xf32>
    %199 = tpu.reciprocal %198 {approx = true} : vector<2x8x1xf32> -> vector<2x8x1xf32>
    %200 = vector.broadcast %199 : vector<2x8x1xf32> to vector<2x8x8xf32>
    %201 = arith.mulf %196, %200 : vector<2x8x8xf32>
    "tpu.trace_start"() <{level = 10 : i32, message = "bqk,bkd->bqd"}> : () -> ()
    %cst_72 = arith.constant dense<0.000000e+00> : vector<2x8x8xf32>
    %202 = tpu.matmul %201, %188, %cst_72 {dimension_numbers = #tpu.dot_dimension_numbers<[2], [1], [1], [2], [0, 0, 0, 1, 1, 2], [0], [0]>} : vector<2x8x8xf32>, vector<2x8x8xf32>, vector<2x8x8xf32> -> vector<2x8x8xf32>
    "tpu.trace_stop"() : () -> ()
    %203 = vector.shape_cast %202 : vector<2x8x8xf32> to vector<16x8xf32>
    %204 = vector.extract_strided_slice %8 {offsets = [0, 0], sizes = [8, 32], strides = [1, 1]} : vector<32x32xf32> to vector<8x32xf32>
    %cst_73 = arith.constant dense<0.000000e+00> : vector<16x32xf32>
    %205 = tpu.matmul %203, %204, %cst_73 {dimension_numbers = #tpu.dot_dimension_numbers<[1], [0], [0], [1], [0, 0, 1, 1], [], []>} : vector<16x8xf32>, vector<8x32xf32>, vector<16x32xf32> -> vector<16x32xf32>
    %206 = vector.extract_strided_slice %180 {offsets = [0, 8], sizes = [16, 8], strides = [1, 1]} : vector<16x32xf32> to vector<16x8xf32>
    %207 = vector.shape_cast %206 : vector<16x8xf32> to vector<2x8x8xf32>
    %208 = vector.extract_strided_slice %181 {offsets = [0, 8], sizes = [16, 8], strides = [1, 1]} : vector<16x32xf32> to vector<16x8xf32>
    %209 = vector.shape_cast %208 : vector<16x8xf32> to vector<2x8x8xf32>
    %210 = vector.extract_strided_slice %182 {offsets = [0, 8], sizes = [16, 8], strides = [1, 1]} : vector<16x32xf32> to vector<16x8xf32>
    %211 = vector.shape_cast %210 : vector<16x8xf32> to vector<2x8x8xf32>
    "tpu.trace_start"() <{level = 10 : i32, message = "bqd,bkd->bqk"}> : () -> ()
    %cst_74 = arith.constant dense<0.000000e+00> : vector<2x8x8xf32>
    %212 = tpu.matmul %207, %209, %cst_74 {dimension_numbers = #tpu.dot_dimension_numbers<[2], [2], [1], [1], [0, 0, 0, 1, 1, 1], [0], [0]>} : vector<2x8x8xf32>, vector<2x8x8xf32>, vector<2x8x8xf32> -> vector<2x8x8xf32>
    "tpu.trace_stop"() : () -> ()
    %cst_75 = arith.constant 0.353553385 : f32
    %213 = vector.broadcast %cst_75 : f32 to vector<2x8x8xf32>
    %214 = arith.mulf %212, %213 : vector<2x8x8xf32>
    %cst_76 = arith.constant dense<0xFF800000> : vector<2x8xf32>
    %215 = vector.multi_reduction <maximumf>, %214, %cst_76 [2] : vector<2x8x8xf32> to vector<2x8xf32>
    %216 = vector.shape_cast %215 : vector<2x8xf32> to vector<2x8x1xf32>
    %217 = vector.broadcast %216 : vector<2x8x1xf32> to vector<2x8x8xf32>
    %218 = arith.subf %214, %217 : vector<2x8x8xf32>
    %219 = math.exp %218 : vector<2x8x8xf32>
    %cst_77 = arith.constant dense<0.000000e+00> : vector<2x8xf32>
    %220 = vector.multi_reduction <add>, %219, %cst_77 [2] : vector<2x8x8xf32> to vector<2x8xf32>
    %221 = vector.shape_cast %220 : vector<2x8xf32> to vector<2x8x1xf32>
    %222 = tpu.reciprocal %221 {approx = true} : vector<2x8x1xf32> -> vector<2x8x1xf32>
    %223 = vector.broadcast %222 : vector<2x8x1xf32> to vector<2x8x8xf32>
    %224 = arith.mulf %219, %223 : vector<2x8x8xf32>
    "tpu.trace_start"() <{level = 10 : i32, message = "bqk,bkd->bqd"}> : () -> ()
    %cst_78 = arith.constant dense<0.000000e+00> : vector<2x8x8xf32>
    %225 = tpu.matmul %224, %211, %cst_78 {dimension_numbers = #tpu.dot_dimension_numbers<[2], [1], [1], [2], [0, 0, 0, 1, 1, 2], [0], [0]>} : vector<2x8x8xf32>, vector<2x8x8xf32>, vector<2x8x8xf32> -> vector<2x8x8xf32>
    "tpu.trace_stop"() : () -> ()
    %226 = vector.shape_cast %225 : vector<2x8x8xf32> to vector<16x8xf32>
    %227 = vector.extract_strided_slice %8 {offsets = [8, 0], sizes = [8, 32], strides = [1, 1]} : vector<32x32xf32> to vector<8x32xf32>
    %cst_79 = arith.constant dense<0.000000e+00> : vector<16x32xf32>
    %228 = tpu.matmul %226, %227, %cst_79 {dimension_numbers = #tpu.dot_dimension_numbers<[1], [0], [0], [1], [0, 0, 1, 1], [], []>} : vector<16x8xf32>, vector<8x32xf32>, vector<16x32xf32> -> vector<16x32xf32>
    %229 = arith.addf %205, %228 : vector<16x32xf32>
    %230 = vector.extract_strided_slice %180 {offsets = [0, 16], sizes = [16, 8], strides = [1, 1]} : vector<16x32xf32> to vector<16x8xf32>
    %231 = vector.shape_cast %230 : vector<16x8xf32> to vector<2x8x8xf32>
    %232 = vector.extract_strided_slice %181 {offsets = [0, 16], sizes = [16, 8], strides = [1, 1]} : vector<16x32xf32> to vector<16x8xf32>
    %233 = vector.shape_cast %232 : vector<16x8xf32> to vector<2x8x8xf32>
    %234 = vector.extract_strided_slice %182 {offsets = [0, 16], sizes = [16, 8], strides = [1, 1]} : vector<16x32xf32> to vector<16x8xf32>
    %235 = vector.shape_cast %234 : vector<16x8xf32> to vector<2x8x8xf32>
    "tpu.trace_start"() <{level = 10 : i32, message = "bqd,bkd->bqk"}> : () -> ()
    %cst_80 = arith.constant dense<0.000000e+00> : vector<2x8x8xf32>
    %236 = tpu.matmul %231, %233, %cst_80 {dimension_numbers = #tpu.dot_dimension_numbers<[2], [2], [1], [1], [0, 0, 0, 1, 1, 1], [0], [0]>} : vector<2x8x8xf32>, vector<2x8x8xf32>, vector<2x8x8xf32> -> vector<2x8x8xf32>
    "tpu.trace_stop"() : () -> ()
    %cst_81 = arith.constant 0.353553385 : f32
    %237 = vector.broadcast %cst_81 : f32 to vector<2x8x8xf32>
    %238 = arith.mulf %236, %237 : vector<2x8x8xf32>
    %cst_82 = arith.constant dense<0xFF800000> : vector<2x8xf32>
    %239 = vector.multi_reduction <maximumf>, %238, %cst_82 [2] : vector<2x8x8xf32> to vector<2x8xf32>
    %240 = vector.shape_cast %239 : vector<2x8xf32> to vector<2x8x1xf32>
    %241 = vector.broadcast %240 : vector<2x8x1xf32> to vector<2x8x8xf32>
    %242 = arith.subf %238, %241 : vector<2x8x8xf32>
    %243 = math.exp %242 : vector<2x8x8xf32>
    %cst_83 = arith.constant dense<0.000000e+00> : vector<2x8xf32>
    %244 = vector.multi_reduction <add>, %243, %cst_83 [2] : vector<2x8x8xf32> to vector<2x8xf32>
    %245 = vector.shape_cast %244 : vector<2x8xf32> to vector<2x8x1xf32>
    %246 = tpu.reciprocal %245 {approx = true} : vector<2x8x1xf32> -> vector<2x8x1xf32>
    %247 = vector.broadcast %246 : vector<2x8x1xf32> to vector<2x8x8xf32>
    %248 = arith.mulf %243, %247 : vector<2x8x8xf32>
    "tpu.trace_start"() <{level = 10 : i32, message = "bqk,bkd->bqd"}> : () -> ()
    %cst_84 = arith.constant dense<0.000000e+00> : vector<2x8x8xf32>
    %249 = tpu.matmul %248, %235, %cst_84 {dimension_numbers = #tpu.dot_dimension_numbers<[2], [1], [1], [2], [0, 0, 0, 1, 1, 2], [0], [0]>} : vector<2x8x8xf32>, vector<2x8x8xf32>, vector<2x8x8xf32> -> vector<2x8x8xf32>
    "tpu.trace_stop"() : () -> ()
    %250 = vector.shape_cast %249 : vector<2x8x8xf32> to vector<16x8xf32>
    %251 = vector.extract_strided_slice %8 {offsets = [16, 0], sizes = [8, 32], strides = [1, 1]} : vector<32x32xf32> to vector<8x32xf32>
    %cst_85 = arith.constant dense<0.000000e+00> : vector<16x32xf32>
    %252 = tpu.matmul %250, %251, %cst_85 {dimension_numbers = #tpu.dot_dimension_numbers<[1], [0], [0], [1], [0, 0, 1, 1], [], []>} : vector<16x8xf32>, vector<8x32xf32>, vector<16x32xf32> -> vector<16x32xf32>
    %253 = arith.addf %229, %252 : vector<16x32xf32>
    %254 = vector.extract_strided_slice %180 {offsets = [0, 24], sizes = [16, 8], strides = [1, 1]} : vector<16x32xf32> to vector<16x8xf32>
    %255 = vector.shape_cast %254 : vector<16x8xf32> to vector<2x8x8xf32>
    %256 = vector.extract_strided_slice %181 {offsets = [0, 24], sizes = [16, 8], strides = [1, 1]} : vector<16x32xf32> to vector<16x8xf32>
    %257 = vector.shape_cast %256 : vector<16x8xf32> to vector<2x8x8xf32>
    %258 = vector.extract_strided_slice %182 {offsets = [0, 24], sizes = [16, 8], strides = [1, 1]} : vector<16x32xf32> to vector<16x8xf32>
    %259 = vector.shape_cast %258 : vector<16x8xf32> to vector<2x8x8xf32>
    "tpu.trace_start"() <{level = 10 : i32, message = "bqd,bkd->bqk"}> : () -> ()
    %cst_86 = arith.constant dense<0.000000e+00> : vector<2x8x8xf32>
    %260 = tpu.matmul %255, %257, %cst_86 {dimension_numbers = #tpu.dot_dimension_numbers<[2], [2], [1], [1], [0, 0, 0, 1, 1, 1], [0], [0]>} : vector<2x8x8xf32>, vector<2x8x8xf32>, vector<2x8x8xf32> -> vector<2x8x8xf32>
    "tpu.trace_stop"() : () -> ()
    %cst_87 = arith.constant 0.353553385 : f32
    %261 = vector.broadcast %cst_87 : f32 to vector<2x8x8xf32>
    %262 = arith.mulf %260, %261 : vector<2x8x8xf32>
    %cst_88 = arith.constant dense<0xFF800000> : vector<2x8xf32>
    %263 = vector.multi_reduction <maximumf>, %262, %cst_88 [2] : vector<2x8x8xf32> to vector<2x8xf32>
    %264 = vector.shape_cast %263 : vector<2x8xf32> to vector<2x8x1xf32>
    %265 = vector.broadcast %264 : vector<2x8x1xf32> to vector<2x8x8xf32>
    %266 = arith.subf %262, %265 : vector<2x8x8xf32>
    %267 = math.exp %266 : vector<2x8x8xf32>
    %cst_89 = arith.constant dense<0.000000e+00> : vector<2x8xf32>
    %268 = vector.multi_reduction <add>, %267, %cst_89 [2] : vector<2x8x8xf32> to vector<2x8xf32>
    %269 = vector.shape_cast %268 : vector<2x8xf32> to vector<2x8x1xf32>
    %270 = tpu.reciprocal %269 {approx = true} : vector<2x8x1xf32> -> vector<2x8x1xf32>
    %271 = vector.broadcast %270 : vector<2x8x1xf32> to vector<2x8x8xf32>
    %272 = arith.mulf %267, %271 : vector<2x8x8xf32>
    "tpu.trace_start"() <{level = 10 : i32, message = "bqk,bkd->bqd"}> : () -> ()
    %cst_90 = arith.constant dense<0.000000e+00> : vector<2x8x8xf32>
    %273 = tpu.matmul %272, %259, %cst_90 {dimension_numbers = #tpu.dot_dimension_numbers<[2], [1], [1], [2], [0, 0, 0, 1, 1, 2], [0], [0]>} : vector<2x8x8xf32>, vector<2x8x8xf32>, vector<2x8x8xf32> -> vector<2x8x8xf32>
    "tpu.trace_stop"() : () -> ()
    %274 = vector.shape_cast %273 : vector<2x8x8xf32> to vector<16x8xf32>
    %275 = vector.extract_strided_slice %8 {offsets = [24, 0], sizes = [8, 32], strides = [1, 1]} : vector<32x32xf32> to vector<8x32xf32>
    %cst_91 = arith.constant dense<0.000000e+00> : vector<16x32xf32>
    %276 = tpu.matmul %274, %275, %cst_91 {dimension_numbers = #tpu.dot_dimension_numbers<[1], [0], [0], [1], [0, 0, 1, 1], [], []>} : vector<16x8xf32>, vector<8x32xf32>, vector<16x32xf32> -> vector<16x32xf32>
    %277 = arith.addf %253, %276 : vector<16x32xf32>
    %278 = vector.broadcast %9 : vector<1x32xf32> to vector<16x32xf32>
    %279 = arith.addf %277, %278 : vector<16x32xf32>
    %280 = vector.shape_cast %279 : vector<16x32xf32> to vector<2x8x32xf32>
    %281 = arith.addf %175, %280 : vector<2x8x32xf32>
    %282 = vector.shape_cast %281 : vector<2x8x32xf32> to vector<16x32xf32>
    %cst_92 = arith.constant dense<0.000000e+00> : vector<16xf32>
    %283 = vector.multi_reduction <add>, %282, %cst_92 [1] : vector<16x32xf32> to vector<16xf32>
    %284 = vector.shape_cast %283 : vector<16xf32> to vector<16x1xf32>
    %cst_93 = arith.constant 3.200000e+01 : f32
    %285 = vector.broadcast %cst_93 : f32 to vector<16x1xf32>
    %286 = arith.divf %284, %285 : vector<16x1xf32>
    %287 = vector.broadcast %286 : vector<16x1xf32> to vector<16x32xf32>
    %288 = arith.subf %282, %287 : vector<16x32xf32>
    %289 = arith.mulf %288, %288 : vector<16x32xf32>
    %cst_94 = arith.constant dense<0.000000e+00> : vector<16xf32>
    %290 = vector.multi_reduction <add>, %289, %cst_94 [1] : vector<16x32xf32> to vector<16xf32>
    %291 = vector.shape_cast %290 : vector<16xf32> to vector<16x1xf32>
    %cst_95 = arith.constant 3.200000e+01 : f32
    %292 = vector.broadcast %cst_95 : f32 to vector<16x1xf32>
    %293 = arith.divf %291, %292 : vector<16x1xf32>
    %294 = vector.broadcast %286 : vector<16x1xf32> to vector<16x32xf32>
    %295 = arith.subf %282, %294 : vector<16x32xf32>
    %cst_96 = arith.constant 9.99999974E-6 : f32
    %296 = vector.broadcast %cst_96 : f32 to vector<16x1xf32>
    %297 = arith.addf %293, %296 : vector<16x1xf32>
    %298 = math.rsqrt %297 : vector<16x1xf32>
    %299 = vector.broadcast %298 : vector<16x1xf32> to vector<16x32xf32>
    %300 = arith.mulf %295, %299 : vector<16x32xf32>
    %301 = vector.broadcast %0 : vector<1x32xf32> to vector<16x32xf32>
    %302 = arith.mulf %300, %301 : vector<16x32xf32>
    %303 = vector.broadcast %1 : vector<1x32xf32> to vector<16x32xf32>
    %304 = arith.addf %302, %303 : vector<16x32xf32>
    %cst_97 = arith.constant dense<0.000000e+00> : vector<16x64xf32>
    %305 = tpu.matmul %304, %2, %cst_97 {dimension_numbers = #tpu.dot_dimension_numbers<[1], [0], [0], [1], [0, 0, 1, 1], [], []>} : vector<16x32xf32>, vector<32x64xf32>, vector<16x64xf32> -> vector<16x64xf32>
    %306 = vector.broadcast %3 : vector<1x64xf32> to vector<16x64xf32>
    %307 = arith.addf %305, %306 : vector<16x64xf32>
    %cst_98 = arith.constant 0.000000e+00 : f32
    %308 = vector.broadcast %cst_98 : f32 to vector<16x64xf32>
    %309 = arith.maximumf %307, %308 : vector<16x64xf32>
    %cst_99 = arith.constant dense<0.000000e+00> : vector<16x32xf32>
    %310 = tpu.matmul %309, %4, %cst_99 {dimension_numbers = #tpu.dot_dimension_numbers<[1], [0], [0], [1], [0, 0, 1, 1], [], []>} : vector<16x64xf32>, vector<64x32xf32>, vector<16x32xf32> -> vector<16x32xf32>
    %311 = vector.broadcast %5 : vector<1x32xf32> to vector<16x32xf32>
    %312 = arith.addf %310, %311 : vector<16x32xf32>
    %313 = arith.addf %304, %312 : vector<16x32xf32>
    %cst_100 = arith.constant dense<0.000000e+00> : vector<16xf32>
    %314 = vector.multi_reduction <add>, %313, %cst_100 [1] : vector<16x32xf32> to vector<16xf32>
    %315 = vector.shape_cast %314 : vector<16xf32> to vector<16x1xf32>
    %cst_101 = arith.constant 3.200000e+01 : f32
    %316 = vector.broadcast %cst_101 : f32 to vector<16x1xf32>
    %317 = arith.divf %315, %316 : vector<16x1xf32>
    %318 = vector.broadcast %317 : vector<16x1xf32> to vector<16x32xf32>
    %319 = arith.subf %313, %318 : vector<16x32xf32>
    %320 = arith.mulf %319, %319 : vector<16x32xf32>
    %cst_102 = arith.constant dense<0.000000e+00> : vector<16xf32>
    %321 = vector.multi_reduction <add>, %320, %cst_102 [1] : vector<16x32xf32> to vector<16xf32>
    %322 = vector.shape_cast %321 : vector<16xf32> to vector<16x1xf32>
    %cst_103 = arith.constant 3.200000e+01 : f32
    %323 = vector.broadcast %cst_103 : f32 to vector<16x1xf32>
    %324 = arith.divf %322, %323 : vector<16x1xf32>
    %325 = vector.broadcast %317 : vector<16x1xf32> to vector<16x32xf32>
    %326 = arith.subf %313, %325 : vector<16x32xf32>
    %cst_104 = arith.constant 9.99999974E-6 : f32
    %327 = vector.broadcast %cst_104 : f32 to vector<16x1xf32>
    %328 = arith.addf %324, %327 : vector<16x1xf32>
    %329 = math.rsqrt %328 : vector<16x1xf32>
    %330 = vector.broadcast %329 : vector<16x1xf32> to vector<16x32xf32>
    %331 = arith.mulf %326, %330 : vector<16x32xf32>
    %332 = vector.broadcast %0 : vector<1x32xf32> to vector<16x32xf32>
    %333 = arith.mulf %331, %332 : vector<16x32xf32>
    %334 = vector.broadcast %1 : vector<1x32xf32> to vector<16x32xf32>
    %335 = arith.addf %333, %334 : vector<16x32xf32>
    %336 = vector.shape_cast %335 : vector<16x32xf32> to vector<2x8x32xf32>
    %c0_105 = arith.constant 0 : index
    %c0_106 = arith.constant 0 : index
    %c0_107 = arith.constant 0 : index
    %337 = vector.load %arg1[%c0_105, %c0_106, %c0_107] : memref<2x8x32xf32, #tpu.memory_space<vmem>>, vector<2x8x32xf32>
    %c0_108 = arith.constant 0 : index
    %c0_109 = arith.constant 0 : index
    %338 = vector.load %arg2[%c0_108, %c0_109] : memref<8x8xf32, #tpu.memory_space<vmem>>, vector<8x8xf32>
    %339 = vector.shape_cast %337 : vector<2x8x32xf32> to vector<16x32xf32>
    %cst_110 = arith.constant dense<0.000000e+00> : vector<16x96xf32>
    %340 = tpu.matmul %339, %10, %cst_110 {dimension_numbers = #tpu.dot_dimension_numbers<[1], [0], [0], [1], [0, 0, 1, 1], [], []>} : vector<16x32xf32>, vector<32x96xf32>, vector<16x96xf32> -> vector<16x96xf32>
    %341 = vector.broadcast %11 : vector<1x96xf32> to vector<16x96xf32>
    %342 = arith.addf %340, %341 : vector<16x96xf32>
    %343 = vector.extract_strided_slice %342 {offsets = [0, 0], sizes = [16, 32], strides = [1, 1]} : vector<16x96xf32> to vector<16x32xf32>
    %344 = vector.extract_strided_slice %342 {offsets = [0, 32], sizes = [16, 32], strides = [1, 1]} : vector<16x96xf32> to vector<16x32xf32>
    %345 = vector.extract_strided_slice %342 {offsets = [0, 64], sizes = [16, 32], strides = [1, 1]} : vector<16x96xf32> to vector<16x32xf32>
    %346 = vector.extract_strided_slice %343 {offsets = [0, 0], sizes = [16, 8], strides = [1, 1]} : vector<16x32xf32> to vector<16x8xf32>
    %347 = vector.shape_cast %346 : vector<16x8xf32> to vector<2x8x8xf32>
    %348 = vector.extract_strided_slice %344 {offsets = [0, 0], sizes = [16, 8], strides = [1, 1]} : vector<16x32xf32> to vector<16x8xf32>
    %349 = vector.shape_cast %348 : vector<16x8xf32> to vector<2x8x8xf32>
    %350 = vector.extract_strided_slice %345 {offsets = [0, 0], sizes = [16, 8], strides = [1, 1]} : vector<16x32xf32> to vector<16x8xf32>
    %351 = vector.shape_cast %350 : vector<16x8xf32> to vector<2x8x8xf32>
    "tpu.trace_start"() <{level = 10 : i32, message = "bqd,bkd->bqk"}> : () -> ()
    %cst_111 = arith.constant dense<0.000000e+00> : vector<2x8x8xf32>
    %352 = tpu.matmul %347, %349, %cst_111 {dimension_numbers = #tpu.dot_dimension_numbers<[2], [2], [1], [1], [0, 0, 0, 1, 1, 1], [0], [0]>} : vector<2x8x8xf32>, vector<2x8x8xf32>, vector<2x8x8xf32> -> vector<2x8x8xf32>
    "tpu.trace_stop"() : () -> ()
    %cst_112 = arith.constant 0.353553385 : f32
    %353 = vector.broadcast %cst_112 : f32 to vector<2x8x8xf32>
    %354 = arith.mulf %352, %353 : vector<2x8x8xf32>
    %355 = vector.shape_cast %338 : vector<8x8xf32> to vector<1x8x8xf32>
    %356 = vector.broadcast %355 : vector<1x8x8xf32> to vector<2x8x8xf32>
    %357 = arith.addf %354, %356 : vector<2x8x8xf32>
    %cst_113 = arith.constant dense<0xFF800000> : vector<2x8xf32>
    %358 = vector.multi_reduction <maximumf>, %357, %cst_113 [2] : vector<2x8x8xf32> to vector<2x8xf32>
    %359 = vector.shape_cast %358 : vector<2x8xf32> to vector<2x8x1xf32>
    %360 = vector.broadcast %359 : vector<2x8x1xf32> to vector<2x8x8xf32>
    %361 = arith.subf %357, %360 : vector<2x8x8xf32>
    %362 = math.exp %361 : vector<2x8x8xf32>
    %cst_114 = arith.constant dense<0.000000e+00> : vector<2x8xf32>
    %363 = vector.multi_reduction <add>, %362, %cst_114 [2] : vector<2x8x8xf32> to vector<2x8xf32>
    %364 = vector.shape_cast %363 : vector<2x8xf32> to vector<2x8x1xf32>
    %365 = tpu.reciprocal %364 {approx = true} : vector<2x8x1xf32> -> vector<2x8x1xf32>
    %366 = vector.broadcast %365 : vector<2x8x1xf32> to vector<2x8x8xf32>
    %367 = arith.mulf %362, %366 : vector<2x8x8xf32>
    "tpu.trace_start"() <{level = 10 : i32, message = "bqk,bkd->bqd"}> : () -> ()
    %cst_115 = arith.constant dense<0.000000e+00> : vector<2x8x8xf32>
    %368 = tpu.matmul %367, %351, %cst_115 {dimension_numbers = #tpu.dot_dimension_numbers<[2], [1], [1], [2], [0, 0, 0, 1, 1, 2], [0], [0]>} : vector<2x8x8xf32>, vector<2x8x8xf32>, vector<2x8x8xf32> -> vector<2x8x8xf32>
    "tpu.trace_stop"() : () -> ()
    %369 = vector.shape_cast %368 : vector<2x8x8xf32> to vector<16x8xf32>
    %370 = vector.extract_strided_slice %12 {offsets = [0, 0], sizes = [8, 32], strides = [1, 1]} : vector<32x32xf32> to vector<8x32xf32>
    %cst_116 = arith.constant dense<0.000000e+00> : vector<16x32xf32>
    %371 = tpu.matmul %369, %370, %cst_116 {dimension_numbers = #tpu.dot_dimension_numbers<[1], [0], [0], [1], [0, 0, 1, 1], [], []>} : vector<16x8xf32>, vector<8x32xf32>, vector<16x32xf32> -> vector<16x32xf32>
    %372 = vector.extract_strided_slice %343 {offsets = [0, 8], sizes = [16, 8], strides = [1, 1]} : vector<16x32xf32> to vector<16x8xf32>
    %373 = vector.shape_cast %372 : vector<16x8xf32> to vector<2x8x8xf32>
    %374 = vector.extract_strided_slice %344 {offsets = [0, 8], sizes = [16, 8], strides = [1, 1]} : vector<16x32xf32> to vector<16x8xf32>
    %375 = vector.shape_cast %374 : vector<16x8xf32> to vector<2x8x8xf32>
    %376 = vector.extract_strided_slice %345 {offsets = [0, 8], sizes = [16, 8], strides = [1, 1]} : vector<16x32xf32> to vector<16x8xf32>
    %377 = vector.shape_cast %376 : vector<16x8xf32> to vector<2x8x8xf32>
    "tpu.trace_start"() <{level = 10 : i32, message = "bqd,bkd->bqk"}> : () -> ()
    %cst_117 = arith.constant dense<0.000000e+00> : vector<2x8x8xf32>
    %378 = tpu.matmul %373, %375, %cst_117 {dimension_numbers = #tpu.dot_dimension_numbers<[2], [2], [1], [1], [0, 0, 0, 1, 1, 1], [0], [0]>} : vector<2x8x8xf32>, vector<2x8x8xf32>, vector<2x8x8xf32> -> vector<2x8x8xf32>
    "tpu.trace_stop"() : () -> ()
    %cst_118 = arith.constant 0.353553385 : f32
    %379 = vector.broadcast %cst_118 : f32 to vector<2x8x8xf32>
    %380 = arith.mulf %378, %379 : vector<2x8x8xf32>
    %381 = vector.shape_cast %338 : vector<8x8xf32> to vector<1x8x8xf32>
    %382 = vector.broadcast %381 : vector<1x8x8xf32> to vector<2x8x8xf32>
    %383 = arith.addf %380, %382 : vector<2x8x8xf32>
    %cst_119 = arith.constant dense<0xFF800000> : vector<2x8xf32>
    %384 = vector.multi_reduction <maximumf>, %383, %cst_119 [2] : vector<2x8x8xf32> to vector<2x8xf32>
    %385 = vector.shape_cast %384 : vector<2x8xf32> to vector<2x8x1xf32>
    %386 = vector.broadcast %385 : vector<2x8x1xf32> to vector<2x8x8xf32>
    %387 = arith.subf %383, %386 : vector<2x8x8xf32>
    %388 = math.exp %387 : vector<2x8x8xf32>
    %cst_120 = arith.constant dense<0.000000e+00> : vector<2x8xf32>
    %389 = vector.multi_reduction <add>, %388, %cst_120 [2] : vector<2x8x8xf32> to vector<2x8xf32>
    %390 = vector.shape_cast %389 : vector<2x8xf32> to vector<2x8x1xf32>
    %391 = tpu.reciprocal %390 {approx = true} : vector<2x8x1xf32> -> vector<2x8x1xf32>
    %392 = vector.broadcast %391 : vector<2x8x1xf32> to vector<2x8x8xf32>
    %393 = arith.mulf %388, %392 : vector<2x8x8xf32>
    "tpu.trace_start"() <{level = 10 : i32, message = "bqk,bkd->bqd"}> : () -> ()
    %cst_121 = arith.constant dense<0.000000e+00> : vector<2x8x8xf32>
    %394 = tpu.matmul %393, %377, %cst_121 {dimension_numbers = #tpu.dot_dimension_numbers<[2], [1], [1], [2], [0, 0, 0, 1, 1, 2], [0], [0]>} : vector<2x8x8xf32>, vector<2x8x8xf32>, vector<2x8x8xf32> -> vector<2x8x8xf32>
    "tpu.trace_stop"() : () -> ()
    %395 = vector.shape_cast %394 : vector<2x8x8xf32> to vector<16x8xf32>
    %396 = vector.extract_strided_slice %12 {offsets = [8, 0], sizes = [8, 32], strides = [1, 1]} : vector<32x32xf32> to vector<8x32xf32>
    %cst_122 = arith.constant dense<0.000000e+00> : vector<16x32xf32>
    %397 = tpu.matmul %395, %396, %cst_122 {dimension_numbers = #tpu.dot_dimension_numbers<[1], [0], [0], [1], [0, 0, 1, 1], [], []>} : vector<16x8xf32>, vector<8x32xf32>, vector<16x32xf32> -> vector<16x32xf32>
    %398 = arith.addf %371, %397 : vector<16x32xf32>
    %399 = vector.extract_strided_slice %343 {offsets = [0, 16], sizes = [16, 8], strides = [1, 1]} : vector<16x32xf32> to vector<16x8xf32>
    %400 = vector.shape_cast %399 : vector<16x8xf32> to vector<2x8x8xf32>
    %401 = vector.extract_strided_slice %344 {offsets = [0, 16], sizes = [16, 8], strides = [1, 1]} : vector<16x32xf32> to vector<16x8xf32>
    %402 = vector.shape_cast %401 : vector<16x8xf32> to vector<2x8x8xf32>
    %403 = vector.extract_strided_slice %345 {offsets = [0, 16], sizes = [16, 8], strides = [1, 1]} : vector<16x32xf32> to vector<16x8xf32>
    %404 = vector.shape_cast %403 : vector<16x8xf32> to vector<2x8x8xf32>
    "tpu.trace_start"() <{level = 10 : i32, message = "bqd,bkd->bqk"}> : () -> ()
    %cst_123 = arith.constant dense<0.000000e+00> : vector<2x8x8xf32>
    %405 = tpu.matmul %400, %402, %cst_123 {dimension_numbers = #tpu.dot_dimension_numbers<[2], [2], [1], [1], [0, 0, 0, 1, 1, 1], [0], [0]>} : vector<2x8x8xf32>, vector<2x8x8xf32>, vector<2x8x8xf32> -> vector<2x8x8xf32>
    "tpu.trace_stop"() : () -> ()
    %cst_124 = arith.constant 0.353553385 : f32
    %406 = vector.broadcast %cst_124 : f32 to vector<2x8x8xf32>
    %407 = arith.mulf %405, %406 : vector<2x8x8xf32>
    %408 = vector.shape_cast %338 : vector<8x8xf32> to vector<1x8x8xf32>
    %409 = vector.broadcast %408 : vector<1x8x8xf32> to vector<2x8x8xf32>
    %410 = arith.addf %407, %409 : vector<2x8x8xf32>
    %cst_125 = arith.constant dense<0xFF800000> : vector<2x8xf32>
    %411 = vector.multi_reduction <maximumf>, %410, %cst_125 [2] : vector<2x8x8xf32> to vector<2x8xf32>
    %412 = vector.shape_cast %411 : vector<2x8xf32> to vector<2x8x1xf32>
    %413 = vector.broadcast %412 : vector<2x8x1xf32> to vector<2x8x8xf32>
    %414 = arith.subf %410, %413 : vector<2x8x8xf32>
    %415 = math.exp %414 : vector<2x8x8xf32>
    %cst_126 = arith.constant dense<0.000000e+00> : vector<2x8xf32>
    %416 = vector.multi_reduction <add>, %415, %cst_126 [2] : vector<2x8x8xf32> to vector<2x8xf32>
    %417 = vector.shape_cast %416 : vector<2x8xf32> to vector<2x8x1xf32>
    %418 = tpu.reciprocal %417 {approx = true} : vector<2x8x1xf32> -> vector<2x8x1xf32>
    %419 = vector.broadcast %418 : vector<2x8x1xf32> to vector<2x8x8xf32>
    %420 = arith.mulf %415, %419 : vector<2x8x8xf32>
    "tpu.trace_start"() <{level = 10 : i32, message = "bqk,bkd->bqd"}> : () -> ()
    %cst_127 = arith.constant dense<0.000000e+00> : vector<2x8x8xf32>
    %421 = tpu.matmul %420, %404, %cst_127 {dimension_numbers = #tpu.dot_dimension_numbers<[2], [1], [1], [2], [0, 0, 0, 1, 1, 2], [0], [0]>} : vector<2x8x8xf32>, vector<2x8x8xf32>, vector<2x8x8xf32> -> vector<2x8x8xf32>
    "tpu.trace_stop"() : () -> ()
    %422 = vector.shape_cast %421 : vector<2x8x8xf32> to vector<16x8xf32>
    %423 = vector.extract_strided_slice %12 {offsets = [16, 0], sizes = [8, 32], strides = [1, 1]} : vector<32x32xf32> to vector<8x32xf32>
    %cst_128 = arith.constant dense<0.000000e+00> : vector<16x32xf32>
    %424 = tpu.matmul %422, %423, %cst_128 {dimension_numbers = #tpu.dot_dimension_numbers<[1], [0], [0], [1], [0, 0, 1, 1], [], []>} : vector<16x8xf32>, vector<8x32xf32>, vector<16x32xf32> -> vector<16x32xf32>
    %425 = arith.addf %398, %424 : vector<16x32xf32>
    %426 = vector.extract_strided_slice %343 {offsets = [0, 24], sizes = [16, 8], strides = [1, 1]} : vector<16x32xf32> to vector<16x8xf32>
    %427 = vector.shape_cast %426 : vector<16x8xf32> to vector<2x8x8xf32>
    %428 = vector.extract_strided_slice %344 {offsets = [0, 24], sizes = [16, 8], strides = [1, 1]} : vector<16x32xf32> to vector<16x8xf32>
    %429 = vector.shape_cast %428 : vector<16x8xf32> to vector<2x8x8xf32>
    %430 = vector.extract_strided_slice %345 {offsets = [0, 24], sizes = [16, 8], strides = [1, 1]} : vector<16x32xf32> to vector<16x8xf32>
    %431 = vector.shape_cast %430 : vector<16x8xf32> to vector<2x8x8xf32>
    "tpu.trace_start"() <{level = 10 : i32, message = "bqd,bkd->bqk"}> : () -> ()
    %cst_129 = arith.constant dense<0.000000e+00> : vector<2x8x8xf32>
    %432 = tpu.matmul %427, %429, %cst_129 {dimension_numbers = #tpu.dot_dimension_numbers<[2], [2], [1], [1], [0, 0, 0, 1, 1, 1], [0], [0]>} : vector<2x8x8xf32>, vector<2x8x8xf32>, vector<2x8x8xf32> -> vector<2x8x8xf32>
    "tpu.trace_stop"() : () -> ()
    %cst_130 = arith.constant 0.353553385 : f32
    %433 = vector.broadcast %cst_130 : f32 to vector<2x8x8xf32>
    %434 = arith.mulf %432, %433 : vector<2x8x8xf32>
    %435 = vector.shape_cast %338 : vector<8x8xf32> to vector<1x8x8xf32>
    %436 = vector.broadcast %435 : vector<1x8x8xf32> to vector<2x8x8xf32>
    %437 = arith.addf %434, %436 : vector<2x8x8xf32>
    %cst_131 = arith.constant dense<0xFF800000> : vector<2x8xf32>
    %438 = vector.multi_reduction <maximumf>, %437, %cst_131 [2] : vector<2x8x8xf32> to vector<2x8xf32>
    %439 = vector.shape_cast %438 : vector<2x8xf32> to vector<2x8x1xf32>
    %440 = vector.broadcast %439 : vector<2x8x1xf32> to vector<2x8x8xf32>
    %441 = arith.subf %437, %440 : vector<2x8x8xf32>
    %442 = math.exp %441 : vector<2x8x8xf32>
    %cst_132 = arith.constant dense<0.000000e+00> : vector<2x8xf32>
    %443 = vector.multi_reduction <add>, %442, %cst_132 [2] : vector<2x8x8xf32> to vector<2x8xf32>
    %444 = vector.shape_cast %443 : vector<2x8xf32> to vector<2x8x1xf32>
    %445 = tpu.reciprocal %444 {approx = true} : vector<2x8x1xf32> -> vector<2x8x1xf32>
    %446 = vector.broadcast %445 : vector<2x8x1xf32> to vector<2x8x8xf32>
    %447 = arith.mulf %442, %446 : vector<2x8x8xf32>
    "tpu.trace_start"() <{level = 10 : i32, message = "bqk,bkd->bqd"}> : () -> ()
    %cst_133 = arith.constant dense<0.000000e+00> : vector<2x8x8xf32>
    %448 = tpu.matmul %447, %431, %cst_133 {dimension_numbers = #tpu.dot_dimension_numbers<[2], [1], [1], [2], [0, 0, 0, 1, 1, 2], [0], [0]>} : vector<2x8x8xf32>, vector<2x8x8xf32>, vector<2x8x8xf32> -> vector<2x8x8xf32>
    "tpu.trace_stop"() : () -> ()
    %449 = vector.shape_cast %448 : vector<2x8x8xf32> to vector<16x8xf32>
    %450 = vector.extract_strided_slice %12 {offsets = [24, 0], sizes = [8, 32], strides = [1, 1]} : vector<32x32xf32> to vector<8x32xf32>
    %cst_134 = arith.constant dense<0.000000e+00> : vector<16x32xf32>
    %451 = tpu.matmul %449, %450, %cst_134 {dimension_numbers = #tpu.dot_dimension_numbers<[1], [0], [0], [1], [0, 0, 1, 1], [], []>} : vector<16x8xf32>, vector<8x32xf32>, vector<16x32xf32> -> vector<16x32xf32>
    %452 = arith.addf %425, %451 : vector<16x32xf32>
    %453 = vector.broadcast %13 : vector<1x32xf32> to vector<16x32xf32>
    %454 = arith.addf %452, %453 : vector<16x32xf32>
    %455 = vector.shape_cast %454 : vector<16x32xf32> to vector<2x8x32xf32>
    %456 = arith.addf %337, %455 : vector<2x8x32xf32>
    %457 = vector.shape_cast %456 : vector<2x8x32xf32> to vector<16x32xf32>
    %cst_135 = arith.constant dense<0.000000e+00> : vector<16xf32>
    %458 = vector.multi_reduction <add>, %457, %cst_135 [1] : vector<16x32xf32> to vector<16xf32>
    %459 = vector.shape_cast %458 : vector<16xf32> to vector<16x1xf32>
    %cst_136 = arith.constant 3.200000e+01 : f32
    %460 = vector.broadcast %cst_136 : f32 to vector<16x1xf32>
    %461 = arith.divf %459, %460 : vector<16x1xf32>
    %462 = vector.broadcast %461 : vector<16x1xf32> to vector<16x32xf32>
    %463 = arith.subf %457, %462 : vector<16x32xf32>
    %464 = arith.mulf %463, %463 : vector<16x32xf32>
    %cst_137 = arith.constant dense<0.000000e+00> : vector<16xf32>
    %465 = vector.multi_reduction <add>, %464, %cst_137 [1] : vector<16x32xf32> to vector<16xf32>
    %466 = vector.shape_cast %465 : vector<16xf32> to vector<16x1xf32>
    %cst_138 = arith.constant 3.200000e+01 : f32
    %467 = vector.broadcast %cst_138 : f32 to vector<16x1xf32>
    %468 = arith.divf %466, %467 : vector<16x1xf32>
    %469 = vector.broadcast %461 : vector<16x1xf32> to vector<16x32xf32>
    %470 = arith.subf %457, %469 : vector<16x32xf32>
    %cst_139 = arith.constant 9.99999974E-6 : f32
    %471 = vector.broadcast %cst_139 : f32 to vector<16x1xf32>
    %472 = arith.addf %468, %471 : vector<16x1xf32>
    %473 = math.rsqrt %472 : vector<16x1xf32>
    %474 = vector.broadcast %473 : vector<16x1xf32> to vector<16x32xf32>
    %475 = arith.mulf %470, %474 : vector<16x32xf32>
    %476 = vector.broadcast %0 : vector<1x32xf32> to vector<16x32xf32>
    %477 = arith.mulf %475, %476 : vector<16x32xf32>
    %478 = vector.broadcast %1 : vector<1x32xf32> to vector<16x32xf32>
    %479 = arith.addf %477, %478 : vector<16x32xf32>
    %480 = vector.shape_cast %479 : vector<16x32xf32> to vector<2x8x32xf32>
    %481 = vector.shape_cast %480 : vector<2x8x32xf32> to vector<16x32xf32>
    %482 = vector.shape_cast %336 : vector<2x8x32xf32> to vector<16x32xf32>
    %483 = vector.extract_strided_slice %6 {offsets = [0, 0], sizes = [32, 32], strides = [1, 1]} : vector<32x96xf32> to vector<32x32xf32>
    %cst_140 = arith.constant dense<0.000000e+00> : vector<16x32xf32>
    %484 = tpu.matmul %481, %483, %cst_140 {dimension_numbers = #tpu.dot_dimension_numbers<[1], [0], [0], [1], [0, 0, 1, 1], [], []>} : vector<16x32xf32>, vector<32x32xf32>, vector<16x32xf32> -> vector<16x32xf32>
    %485 = vector.extract_strided_slice %7 {offsets = [0, 0], sizes = [1, 32], strides = [1, 1]} : vector<1x96xf32> to vector<1x32xf32>
    %486 = vector.broadcast %485 : vector<1x32xf32> to vector<16x32xf32>
    %487 = arith.addf %484, %486 : vector<16x32xf32>
    %488 = vector.extract_strided_slice %6 {offsets = [0, 32], sizes = [32, 64], strides = [1, 1]} : vector<32x96xf32> to vector<32x64xf32>
    %cst_141 = arith.constant dense<0.000000e+00> : vector<16x64xf32>
    %489 = tpu.matmul %482, %488, %cst_141 {dimension_numbers = #tpu.dot_dimension_numbers<[1], [0], [0], [1], [0, 0, 1, 1], [], []>} : vector<16x32xf32>, vector<32x64xf32>, vector<16x64xf32> -> vector<16x64xf32>
    %490 = vector.extract_strided_slice %7 {offsets = [0, 32], sizes = [1, 64], strides = [1, 1]} : vector<1x96xf32> to vector<1x64xf32>
    %491 = vector.broadcast %490 : vector<1x64xf32> to vector<16x64xf32>
    %492 = arith.addf %489, %491 : vector<16x64xf32>
    %493 = vector.extract_strided_slice %492 {offsets = [0, 0], sizes = [16, 32], strides = [1, 1]} : vector<16x64xf32> to vector<16x32xf32>
    %494 = vector.extract_strided_slice %492 {offsets = [0, 32], sizes = [16, 32], strides = [1, 1]} : vector<16x64xf32> to vector<16x32xf32>
    %495 = vector.extract_strided_slice %487 {offsets = [0, 0], sizes = [16, 8], strides = [1, 1]} : vector<16x32xf32> to vector<16x8xf32>
    %496 = vector.shape_cast %495 : vector<16x8xf32> to vector<2x8x8xf32>
    %497 = vector.extract_strided_slice %493 {offsets = [0, 0], sizes = [16, 8], strides = [1, 1]} : vector<16x32xf32> to vector<16x8xf32>
    %498 = vector.shape_cast %497 : vector<16x8xf32> to vector<2x8x8xf32>
    %499 = vector.extract_strided_slice %494 {offsets = [0, 0], sizes = [16, 8], strides = [1, 1]} : vector<16x32xf32> to vector<16x8xf32>
    %500 = vector.shape_cast %499 : vector<16x8xf32> to vector<2x8x8xf32>
    "tpu.trace_start"() <{level = 10 : i32, message = "bqd,bkd->bqk"}> : () -> ()
    %cst_142 = arith.constant dense<0.000000e+00> : vector<2x8x8xf32>
    %501 = tpu.matmul %496, %498, %cst_142 {dimension_numbers = #tpu.dot_dimension_numbers<[2], [2], [1], [1], [0, 0, 0, 1, 1, 1], [0], [0]>} : vector<2x8x8xf32>, vector<2x8x8xf32>, vector<2x8x8xf32> -> vector<2x8x8xf32>
    "tpu.trace_stop"() : () -> ()
    %cst_143 = arith.constant 0.353553385 : f32
    %502 = vector.broadcast %cst_143 : f32 to vector<2x8x8xf32>
    %503 = arith.mulf %501, %502 : vector<2x8x8xf32>
    %cst_144 = arith.constant dense<0xFF800000> : vector<2x8xf32>
    %504 = vector.multi_reduction <maximumf>, %503, %cst_144 [2] : vector<2x8x8xf32> to vector<2x8xf32>
    %505 = vector.shape_cast %504 : vector<2x8xf32> to vector<2x8x1xf32>
    %506 = vector.broadcast %505 : vector<2x8x1xf32> to vector<2x8x8xf32>
    %507 = arith.subf %503, %506 : vector<2x8x8xf32>
    %508 = math.exp %507 : vector<2x8x8xf32>
    %cst_145 = arith.constant dense<0.000000e+00> : vector<2x8xf32>
    %509 = vector.multi_reduction <add>, %508, %cst_145 [2] : vector<2x8x8xf32> to vector<2x8xf32>
    %510 = vector.shape_cast %509 : vector<2x8xf32> to vector<2x8x1xf32>
    %511 = tpu.reciprocal %510 {approx = true} : vector<2x8x1xf32> -> vector<2x8x1xf32>
    %512 = vector.broadcast %511 : vector<2x8x1xf32> to vector<2x8x8xf32>
    %513 = arith.mulf %508, %512 : vector<2x8x8xf32>
    "tpu.trace_start"() <{level = 10 : i32, message = "bqk,bkd->bqd"}> : () -> ()
    %cst_146 = arith.constant dense<0.000000e+00> : vector<2x8x8xf32>
    %514 = tpu.matmul %513, %500, %cst_146 {dimension_numbers = #tpu.dot_dimension_numbers<[2], [1], [1], [2], [0, 0, 0, 1, 1, 2], [0], [0]>} : vector<2x8x8xf32>, vector<2x8x8xf32>, vector<2x8x8xf32> -> vector<2x8x8xf32>
    "tpu.trace_stop"() : () -> ()
    %515 = vector.shape_cast %514 : vector<2x8x8xf32> to vector<16x8xf32>
    %516 = vector.extract_strided_slice %8 {offsets = [0, 0], sizes = [8, 32], strides = [1, 1]} : vector<32x32xf32> to vector<8x32xf32>
    %cst_147 = arith.constant dense<0.000000e+00> : vector<16x32xf32>
    %517 = tpu.matmul %515, %516, %cst_147 {dimension_numbers = #tpu.dot_dimension_numbers<[1], [0], [0], [1], [0, 0, 1, 1], [], []>} : vector<16x8xf32>, vector<8x32xf32>, vector<16x32xf32> -> vector<16x32xf32>
    %518 = vector.extract_strided_slice %487 {offsets = [0, 8], sizes = [16, 8], strides = [1, 1]} : vector<16x32xf32> to vector<16x8xf32>
    %519 = vector.shape_cast %518 : vector<16x8xf32> to vector<2x8x8xf32>
    %520 = vector.extract_strided_slice %493 {offsets = [0, 8], sizes = [16, 8], strides = [1, 1]} : vector<16x32xf32> to vector<16x8xf32>
    %521 = vector.shape_cast %520 : vector<16x8xf32> to vector<2x8x8xf32>
    %522 = vector.extract_strided_slice %494 {offsets = [0, 8], sizes = [16, 8], strides = [1, 1]} : vector<16x32xf32> to vector<16x8xf32>
    %523 = vector.shape_cast %522 : vector<16x8xf32> to vector<2x8x8xf32>
    "tpu.trace_start"() <{level = 10 : i32, message = "bqd,bkd->bqk"}> : () -> ()
    %cst_148 = arith.constant dense<0.000000e+00> : vector<2x8x8xf32>
    %524 = tpu.matmul %519, %521, %cst_148 {dimension_numbers = #tpu.dot_dimension_numbers<[2], [2], [1], [1], [0, 0, 0, 1, 1, 1], [0], [0]>} : vector<2x8x8xf32>, vector<2x8x8xf32>, vector<2x8x8xf32> -> vector<2x8x8xf32>
    "tpu.trace_stop"() : () -> ()
    %cst_149 = arith.constant 0.353553385 : f32
    %525 = vector.broadcast %cst_149 : f32 to vector<2x8x8xf32>
    %526 = arith.mulf %524, %525 : vector<2x8x8xf32>
    %cst_150 = arith.constant dense<0xFF800000> : vector<2x8xf32>
    %527 = vector.multi_reduction <maximumf>, %526, %cst_150 [2] : vector<2x8x8xf32> to vector<2x8xf32>
    %528 = vector.shape_cast %527 : vector<2x8xf32> to vector<2x8x1xf32>
    %529 = vector.broadcast %528 : vector<2x8x1xf32> to vector<2x8x8xf32>
    %530 = arith.subf %526, %529 : vector<2x8x8xf32>
    %531 = math.exp %530 : vector<2x8x8xf32>
    %cst_151 = arith.constant dense<0.000000e+00> : vector<2x8xf32>
    %532 = vector.multi_reduction <add>, %531, %cst_151 [2] : vector<2x8x8xf32> to vector<2x8xf32>
    %533 = vector.shape_cast %532 : vector<2x8xf32> to vector<2x8x1xf32>
    %534 = tpu.reciprocal %533 {approx = true} : vector<2x8x1xf32> -> vector<2x8x1xf32>
    %535 = vector.broadcast %534 : vector<2x8x1xf32> to vector<2x8x8xf32>
    %536 = arith.mulf %531, %535 : vector<2x8x8xf32>
    "tpu.trace_start"() <{level = 10 : i32, message = "bqk,bkd->bqd"}> : () -> ()
    %cst_152 = arith.constant dense<0.000000e+00> : vector<2x8x8xf32>
    %537 = tpu.matmul %536, %523, %cst_152 {dimension_numbers = #tpu.dot_dimension_numbers<[2], [1], [1], [2], [0, 0, 0, 1, 1, 2], [0], [0]>} : vector<2x8x8xf32>, vector<2x8x8xf32>, vector<2x8x8xf32> -> vector<2x8x8xf32>
    "tpu.trace_stop"() : () -> ()
    %538 = vector.shape_cast %537 : vector<2x8x8xf32> to vector<16x8xf32>
    %539 = vector.extract_strided_slice %8 {offsets = [8, 0], sizes = [8, 32], strides = [1, 1]} : vector<32x32xf32> to vector<8x32xf32>
    %cst_153 = arith.constant dense<0.000000e+00> : vector<16x32xf32>
    %540 = tpu.matmul %538, %539, %cst_153 {dimension_numbers = #tpu.dot_dimension_numbers<[1], [0], [0], [1], [0, 0, 1, 1], [], []>} : vector<16x8xf32>, vector<8x32xf32>, vector<16x32xf32> -> vector<16x32xf32>
    %541 = arith.addf %517, %540 : vector<16x32xf32>
    %542 = vector.extract_strided_slice %487 {offsets = [0, 16], sizes = [16, 8], strides = [1, 1]} : vector<16x32xf32> to vector<16x8xf32>
    %543 = vector.shape_cast %542 : vector<16x8xf32> to vector<2x8x8xf32>
    %544 = vector.extract_strided_slice %493 {offsets = [0, 16], sizes = [16, 8], strides = [1, 1]} : vector<16x32xf32> to vector<16x8xf32>
    %545 = vector.shape_cast %544 : vector<16x8xf32> to vector<2x8x8xf32>
    %546 = vector.extract_strided_slice %494 {offsets = [0, 16], sizes = [16, 8], strides = [1, 1]} : vector<16x32xf32> to vector<16x8xf32>
    %547 = vector.shape_cast %546 : vector<16x8xf32> to vector<2x8x8xf32>
    "tpu.trace_start"() <{level = 10 : i32, message = "bqd,bkd->bqk"}> : () -> ()
    %cst_154 = arith.constant dense<0.000000e+00> : vector<2x8x8xf32>
    %548 = tpu.matmul %543, %545, %cst_154 {dimension_numbers = #tpu.dot_dimension_numbers<[2], [2], [1], [1], [0, 0, 0, 1, 1, 1], [0], [0]>} : vector<2x8x8xf32>, vector<2x8x8xf32>, vector<2x8x8xf32> -> vector<2x8x8xf32>
    "tpu.trace_stop"() : () -> ()
    %cst_155 = arith.constant 0.353553385 : f32
    %549 = vector.broadcast %cst_155 : f32 to vector<2x8x8xf32>
    %550 = arith.mulf %548, %549 : vector<2x8x8xf32>
    %cst_156 = arith.constant dense<0xFF800000> : vector<2x8xf32>
    %551 = vector.multi_reduction <maximumf>, %550, %cst_156 [2] : vector<2x8x8xf32> to vector<2x8xf32>
    %552 = vector.shape_cast %551 : vector<2x8xf32> to vector<2x8x1xf32>
    %553 = vector.broadcast %552 : vector<2x8x1xf32> to vector<2x8x8xf32>
    %554 = arith.subf %550, %553 : vector<2x8x8xf32>
    %555 = math.exp %554 : vector<2x8x8xf32>
    %cst_157 = arith.constant dense<0.000000e+00> : vector<2x8xf32>
    %556 = vector.multi_reduction <add>, %555, %cst_157 [2] : vector<2x8x8xf32> to vector<2x8xf32>
    %557 = vector.shape_cast %556 : vector<2x8xf32> to vector<2x8x1xf32>
    %558 = tpu.reciprocal %557 {approx = true} : vector<2x8x1xf32> -> vector<2x8x1xf32>
    %559 = vector.broadcast %558 : vector<2x8x1xf32> to vector<2x8x8xf32>
    %560 = arith.mulf %555, %559 : vector<2x8x8xf32>
    "tpu.trace_start"() <{level = 10 : i32, message = "bqk,bkd->bqd"}> : () -> ()
    %cst_158 = arith.constant dense<0.000000e+00> : vector<2x8x8xf32>
    %561 = tpu.matmul %560, %547, %cst_158 {dimension_numbers = #tpu.dot_dimension_numbers<[2], [1], [1], [2], [0, 0, 0, 1, 1, 2], [0], [0]>} : vector<2x8x8xf32>, vector<2x8x8xf32>, vector<2x8x8xf32> -> vector<2x8x8xf32>
    "tpu.trace_stop"() : () -> ()
    %562 = vector.shape_cast %561 : vector<2x8x8xf32> to vector<16x8xf32>
    %563 = vector.extract_strided_slice %8 {offsets = [16, 0], sizes = [8, 32], strides = [1, 1]} : vector<32x32xf32> to vector<8x32xf32>
    %cst_159 = arith.constant dense<0.000000e+00> : vector<16x32xf32>
    %564 = tpu.matmul %562, %563, %cst_159 {dimension_numbers = #tpu.dot_dimension_numbers<[1], [0], [0], [1], [0, 0, 1, 1], [], []>} : vector<16x8xf32>, vector<8x32xf32>, vector<16x32xf32> -> vector<16x32xf32>
    %565 = arith.addf %541, %564 : vector<16x32xf32>
    %566 = vector.extract_strided_slice %487 {offsets = [0, 24], sizes = [16, 8], strides = [1, 1]} : vector<16x32xf32> to vector<16x8xf32>
    %567 = vector.shape_cast %566 : vector<16x8xf32> to vector<2x8x8xf32>
    %568 = vector.extract_strided_slice %493 {offsets = [0, 24], sizes = [16, 8], strides = [1, 1]} : vector<16x32xf32> to vector<16x8xf32>
    %569 = vector.shape_cast %568 : vector<16x8xf32> to vector<2x8x8xf32>
    %570 = vector.extract_strided_slice %494 {offsets = [0, 24], sizes = [16, 8], strides = [1, 1]} : vector<16x32xf32> to vector<16x8xf32>
    %571 = vector.shape_cast %570 : vector<16x8xf32> to vector<2x8x8xf32>
    "tpu.trace_start"() <{level = 10 : i32, message = "bqd,bkd->bqk"}> : () -> ()
    %cst_160 = arith.constant dense<0.000000e+00> : vector<2x8x8xf32>
    %572 = tpu.matmul %567, %569, %cst_160 {dimension_numbers = #tpu.dot_dimension_numbers<[2], [2], [1], [1], [0, 0, 0, 1, 1, 1], [0], [0]>} : vector<2x8x8xf32>, vector<2x8x8xf32>, vector<2x8x8xf32> -> vector<2x8x8xf32>
    "tpu.trace_stop"() : () -> ()
    %cst_161 = arith.constant 0.353553385 : f32
    %573 = vector.broadcast %cst_161 : f32 to vector<2x8x8xf32>
    %574 = arith.mulf %572, %573 : vector<2x8x8xf32>
    %cst_162 = arith.constant dense<0xFF800000> : vector<2x8xf32>
    %575 = vector.multi_reduction <maximumf>, %574, %cst_162 [2] : vector<2x8x8xf32> to vector<2x8xf32>
    %576 = vector.shape_cast %575 : vector<2x8xf32> to vector<2x8x1xf32>
    %577 = vector.broadcast %576 : vector<2x8x1xf32> to vector<2x8x8xf32>
    %578 = arith.subf %574, %577 : vector<2x8x8xf32>
    %579 = math.exp %578 : vector<2x8x8xf32>
    %cst_163 = arith.constant dense<0.000000e+00> : vector<2x8xf32>
    %580 = vector.multi_reduction <add>, %579, %cst_163 [2] : vector<2x8x8xf32> to vector<2x8xf32>
    %581 = vector.shape_cast %580 : vector<2x8xf32> to vector<2x8x1xf32>
    %582 = tpu.reciprocal %581 {approx = true} : vector<2x8x1xf32> -> vector<2x8x1xf32>
    %583 = vector.broadcast %582 : vector<2x8x1xf32> to vector<2x8x8xf32>
    %584 = arith.mulf %579, %583 : vector<2x8x8xf32>
    "tpu.trace_start"() <{level = 10 : i32, message = "bqk,bkd->bqd"}> : () -> ()
    %cst_164 = arith.constant dense<0.000000e+00> : vector<2x8x8xf32>
    %585 = tpu.matmul %584, %571, %cst_164 {dimension_numbers = #tpu.dot_dimension_numbers<[2], [1], [1], [2], [0, 0, 0, 1, 1, 2], [0], [0]>} : vector<2x8x8xf32>, vector<2x8x8xf32>, vector<2x8x8xf32> -> vector<2x8x8xf32>
    "tpu.trace_stop"() : () -> ()
    %586 = vector.shape_cast %585 : vector<2x8x8xf32> to vector<16x8xf32>
    %587 = vector.extract_strided_slice %8 {offsets = [24, 0], sizes = [8, 32], strides = [1, 1]} : vector<32x32xf32> to vector<8x32xf32>
    %cst_165 = arith.constant dense<0.000000e+00> : vector<16x32xf32>
    %588 = tpu.matmul %586, %587, %cst_165 {dimension_numbers = #tpu.dot_dimension_numbers<[1], [0], [0], [1], [0, 0, 1, 1], [], []>} : vector<16x8xf32>, vector<8x32xf32>, vector<16x32xf32> -> vector<16x32xf32>
    %589 = arith.addf %565, %588 : vector<16x32xf32>
    %590 = vector.broadcast %9 : vector<1x32xf32> to vector<16x32xf32>
    %591 = arith.addf %589, %590 : vector<16x32xf32>
    %592 = vector.shape_cast %591 : vector<16x32xf32> to vector<2x8x32xf32>
    %593 = vector.shape_cast %592 : vector<2x8x32xf32> to vector<16x32xf32>
    %594 = arith.addf %479, %593 : vector<16x32xf32>
    %cst_166 = arith.constant dense<0.000000e+00> : vector<16xf32>
    %595 = vector.multi_reduction <add>, %594, %cst_166 [1] : vector<16x32xf32> to vector<16xf32>
    %596 = vector.shape_cast %595 : vector<16xf32> to vector<16x1xf32>
    %cst_167 = arith.constant 3.200000e+01 : f32
    %597 = vector.broadcast %cst_167 : f32 to vector<16x1xf32>
    %598 = arith.divf %596, %597 : vector<16x1xf32>
    %599 = vector.broadcast %598 : vector<16x1xf32> to vector<16x32xf32>
    %600 = arith.subf %594, %599 : vector<16x32xf32>
    %601 = arith.mulf %600, %600 : vector<16x32xf32>
    %cst_168 = arith.constant dense<0.000000e+00> : vector<16xf32>
    %602 = vector.multi_reduction <add>, %601, %cst_168 [1] : vector<16x32xf32> to vector<16xf32>
    %603 = vector.shape_cast %602 : vector<16xf32> to vector<16x1xf32>
    %cst_169 = arith.constant 3.200000e+01 : f32
    %604 = vector.broadcast %cst_169 : f32 to vector<16x1xf32>
    %605 = arith.divf %603, %604 : vector<16x1xf32>
    %606 = vector.broadcast %598 : vector<16x1xf32> to vector<16x32xf32>
    %607 = arith.subf %594, %606 : vector<16x32xf32>
    %cst_170 = arith.constant 9.99999974E-6 : f32
    %608 = vector.broadcast %cst_170 : f32 to vector<16x1xf32>
    %609 = arith.addf %605, %608 : vector<16x1xf32>
    %610 = math.rsqrt %609 : vector<16x1xf32>
    %611 = vector.broadcast %610 : vector<16x1xf32> to vector<16x32xf32>
    %612 = arith.mulf %607, %611 : vector<16x32xf32>
    %613 = vector.broadcast %0 : vector<1x32xf32> to vector<16x32xf32>
    %614 = arith.mulf %612, %613 : vector<16x32xf32>
    %615 = vector.broadcast %1 : vector<1x32xf32> to vector<16x32xf32>
    %616 = arith.addf %614, %615 : vector<16x32xf32>
    %cst_171 = arith.constant dense<0.000000e+00> : vector<16x64xf32>
    %617 = tpu.matmul %616, %2, %cst_171 {dimension_numbers = #tpu.dot_dimension_numbers<[1], [0], [0], [1], [0, 0, 1, 1], [], []>} : vector<16x32xf32>, vector<32x64xf32>, vector<16x64xf32> -> vector<16x64xf32>
    %618 = vector.broadcast %3 : vector<1x64xf32> to vector<16x64xf32>
    %619 = arith.addf %617, %618 : vector<16x64xf32>
    %cst_172 = arith.constant 0.000000e+00 : f32
    %620 = vector.broadcast %cst_172 : f32 to vector<16x64xf32>
    %621 = arith.maximumf %619, %620 : vector<16x64xf32>
    %cst_173 = arith.constant dense<0.000000e+00> : vector<16x32xf32>
    %622 = tpu.matmul %621, %4, %cst_173 {dimension_numbers = #tpu.dot_dimension_numbers<[1], [0], [0], [1], [0, 0, 1, 1], [], []>} : vector<16x64xf32>, vector<64x32xf32>, vector<16x32xf32> -> vector<16x32xf32>
    %623 = vector.broadcast %5 : vector<1x32xf32> to vector<16x32xf32>
    %624 = arith.addf %622, %623 : vector<16x32xf32>
    %625 = arith.addf %616, %624 : vector<16x32xf32>
    %cst_174 = arith.constant dense<0.000000e+00> : vector<16xf32>
    %626 = vector.multi_reduction <add>, %625, %cst_174 [1] : vector<16x32xf32> to vector<16xf32>
    %627 = vector.shape_cast %626 : vector<16xf32> to vector<16x1xf32>
    %cst_175 = arith.constant 3.200000e+01 : f32
    %628 = vector.broadcast %cst_175 : f32 to vector<16x1xf32>
    %629 = arith.divf %627, %628 : vector<16x1xf32>
    %630 = vector.broadcast %629 : vector<16x1xf32> to vector<16x32xf32>
    %631 = arith.subf %625, %630 : vector<16x32xf32>
    %632 = arith.mulf %631, %631 : vector<16x32xf32>
    %cst_176 = arith.constant dense<0.000000e+00> : vector<16xf32>
    %633 = vector.multi_reduction <add>, %632, %cst_176 [1] : vector<16x32xf32> to vector<16xf32>
    %634 = vector.shape_cast %633 : vector<16xf32> to vector<16x1xf32>
    %cst_177 = arith.constant 3.200000e+01 : f32
    %635 = vector.broadcast %cst_177 : f32 to vector<16x1xf32>
    %636 = arith.divf %634, %635 : vector<16x1xf32>
    %637 = vector.broadcast %629 : vector<16x1xf32> to vector<16x32xf32>
    %638 = arith.subf %625, %637 : vector<16x32xf32>
    %cst_178 = arith.constant 9.99999974E-6 : f32
    %639 = vector.broadcast %cst_178 : f32 to vector<16x1xf32>
    %640 = arith.addf %636, %639 : vector<16x1xf32>
    %641 = math.rsqrt %640 : vector<16x1xf32>
    %642 = vector.broadcast %641 : vector<16x1xf32> to vector<16x32xf32>
    %643 = arith.mulf %638, %642 : vector<16x32xf32>
    %644 = vector.broadcast %0 : vector<1x32xf32> to vector<16x32xf32>
    %645 = arith.mulf %643, %644 : vector<16x32xf32>
    %646 = vector.broadcast %1 : vector<1x32xf32> to vector<16x32xf32>
    %647 = arith.addf %645, %646 : vector<16x32xf32>
    %648 = vector.shape_cast %647 : vector<16x32xf32> to vector<2x8x32xf32>
    %649 = vector.shape_cast %648 : vector<2x8x32xf32> to vector<16x32xf32>
    %cst_179 = arith.constant dense<0.000000e+00> : vector<16x96xf32>
    %650 = tpu.matmul %649, %10, %cst_179 {dimension_numbers = #tpu.dot_dimension_numbers<[1], [0], [0], [1], [0, 0, 1, 1], [], []>} : vector<16x32xf32>, vector<32x96xf32>, vector<16x96xf32> -> vector<16x96xf32>
    %651 = vector.broadcast %11 : vector<1x96xf32> to vector<16x96xf32>
    %652 = arith.addf %650, %651 : vector<16x96xf32>
    %653 = vector.extract_strided_slice %652 {offsets = [0, 0], sizes = [16, 32], strides = [1, 1]} : vector<16x96xf32> to vector<16x32xf32>
    %654 = vector.extract_strided_slice %652 {offsets = [0, 32], sizes = [16, 32], strides = [1, 1]} : vector<16x96xf32> to vector<16x32xf32>
    %655 = vector.extract_strided_slice %652 {offsets = [0, 64], sizes = [16, 32], strides = [1, 1]} : vector<16x96xf32> to vector<16x32xf32>
    %656 = vector.extract_strided_slice %653 {offsets = [0, 0], sizes = [16, 8], strides = [1, 1]} : vector<16x32xf32> to vector<16x8xf32>
    %657 = vector.shape_cast %656 : vector<16x8xf32> to vector<2x8x8xf32>
    %658 = vector.extract_strided_slice %654 {offsets = [0, 0], sizes = [16, 8], strides = [1, 1]} : vector<16x32xf32> to vector<16x8xf32>
    %659 = vector.shape_cast %658 : vector<16x8xf32> to vector<2x8x8xf32>
    %660 = vector.extract_strided_slice %655 {offsets = [0, 0], sizes = [16, 8], strides = [1, 1]} : vector<16x32xf32> to vector<16x8xf32>
    %661 = vector.shape_cast %660 : vector<16x8xf32> to vector<2x8x8xf32>
    "tpu.trace_start"() <{level = 10 : i32, message = "bqd,bkd->bqk"}> : () -> ()
    %cst_180 = arith.constant dense<0.000000e+00> : vector<2x8x8xf32>
    %662 = tpu.matmul %657, %659, %cst_180 {dimension_numbers = #tpu.dot_dimension_numbers<[2], [2], [1], [1], [0, 0, 0, 1, 1, 1], [0], [0]>} : vector<2x8x8xf32>, vector<2x8x8xf32>, vector<2x8x8xf32> -> vector<2x8x8xf32>
    "tpu.trace_stop"() : () -> ()
    %cst_181 = arith.constant 0.353553385 : f32
    %663 = vector.broadcast %cst_181 : f32 to vector<2x8x8xf32>
    %664 = arith.mulf %662, %663 : vector<2x8x8xf32>
    %665 = vector.shape_cast %338 : vector<8x8xf32> to vector<1x8x8xf32>
    %666 = vector.broadcast %665 : vector<1x8x8xf32> to vector<2x8x8xf32>
    %667 = arith.addf %664, %666 : vector<2x8x8xf32>
    %cst_182 = arith.constant dense<0xFF800000> : vector<2x8xf32>
    %668 = vector.multi_reduction <maximumf>, %667, %cst_182 [2] : vector<2x8x8xf32> to vector<2x8xf32>
    %669 = vector.shape_cast %668 : vector<2x8xf32> to vector<2x8x1xf32>
    %670 = vector.broadcast %669 : vector<2x8x1xf32> to vector<2x8x8xf32>
    %671 = arith.subf %667, %670 : vector<2x8x8xf32>
    %672 = math.exp %671 : vector<2x8x8xf32>
    %cst_183 = arith.constant dense<0.000000e+00> : vector<2x8xf32>
    %673 = vector.multi_reduction <add>, %672, %cst_183 [2] : vector<2x8x8xf32> to vector<2x8xf32>
    %674 = vector.shape_cast %673 : vector<2x8xf32> to vector<2x8x1xf32>
    %675 = tpu.reciprocal %674 {approx = true} : vector<2x8x1xf32> -> vector<2x8x1xf32>
    %676 = vector.broadcast %675 : vector<2x8x1xf32> to vector<2x8x8xf32>
    %677 = arith.mulf %672, %676 : vector<2x8x8xf32>
    "tpu.trace_start"() <{level = 10 : i32, message = "bqk,bkd->bqd"}> : () -> ()
    %cst_184 = arith.constant dense<0.000000e+00> : vector<2x8x8xf32>
    %678 = tpu.matmul %677, %661, %cst_184 {dimension_numbers = #tpu.dot_dimension_numbers<[2], [1], [1], [2], [0, 0, 0, 1, 1, 2], [0], [0]>} : vector<2x8x8xf32>, vector<2x8x8xf32>, vector<2x8x8xf32> -> vector<2x8x8xf32>
    "tpu.trace_stop"() : () -> ()
    %679 = vector.shape_cast %678 : vector<2x8x8xf32> to vector<16x8xf32>
    %680 = vector.extract_strided_slice %12 {offsets = [0, 0], sizes = [8, 32], strides = [1, 1]} : vector<32x32xf32> to vector<8x32xf32>
    %cst_185 = arith.constant dense<0.000000e+00> : vector<16x32xf32>
    %681 = tpu.matmul %679, %680, %cst_185 {dimension_numbers = #tpu.dot_dimension_numbers<[1], [0], [0], [1], [0, 0, 1, 1], [], []>} : vector<16x8xf32>, vector<8x32xf32>, vector<16x32xf32> -> vector<16x32xf32>
    %682 = vector.extract_strided_slice %653 {offsets = [0, 8], sizes = [16, 8], strides = [1, 1]} : vector<16x32xf32> to vector<16x8xf32>
    %683 = vector.shape_cast %682 : vector<16x8xf32> to vector<2x8x8xf32>
    %684 = vector.extract_strided_slice %654 {offsets = [0, 8], sizes = [16, 8], strides = [1, 1]} : vector<16x32xf32> to vector<16x8xf32>
    %685 = vector.shape_cast %684 : vector<16x8xf32> to vector<2x8x8xf32>
    %686 = vector.extract_strided_slice %655 {offsets = [0, 8], sizes = [16, 8], strides = [1, 1]} : vector<16x32xf32> to vector<16x8xf32>
    %687 = vector.shape_cast %686 : vector<16x8xf32> to vector<2x8x8xf32>
    "tpu.trace_start"() <{level = 10 : i32, message = "bqd,bkd->bqk"}> : () -> ()
    %cst_186 = arith.constant dense<0.000000e+00> : vector<2x8x8xf32>
    %688 = tpu.matmul %683, %685, %cst_186 {dimension_numbers = #tpu.dot_dimension_numbers<[2], [2], [1], [1], [0, 0, 0, 1, 1, 1], [0], [0]>} : vector<2x8x8xf32>, vector<2x8x8xf32>, vector<2x8x8xf32> -> vector<2x8x8xf32>
    "tpu.trace_stop"() : () -> ()
    %cst_187 = arith.constant 0.353553385 : f32
    %689 = vector.broadcast %cst_187 : f32 to vector<2x8x8xf32>
    %690 = arith.mulf %688, %689 : vector<2x8x8xf32>
    %691 = vector.shape_cast %338 : vector<8x8xf32> to vector<1x8x8xf32>
    %692 = vector.broadcast %691 : vector<1x8x8xf32> to vector<2x8x8xf32>
    %693 = arith.addf %690, %692 : vector<2x8x8xf32>
    %cst_188 = arith.constant dense<0xFF800000> : vector<2x8xf32>
    %694 = vector.multi_reduction <maximumf>, %693, %cst_188 [2] : vector<2x8x8xf32> to vector<2x8xf32>
    %695 = vector.shape_cast %694 : vector<2x8xf32> to vector<2x8x1xf32>
    %696 = vector.broadcast %695 : vector<2x8x1xf32> to vector<2x8x8xf32>
    %697 = arith.subf %693, %696 : vector<2x8x8xf32>
    %698 = math.exp %697 : vector<2x8x8xf32>
    %cst_189 = arith.constant dense<0.000000e+00> : vector<2x8xf32>
    %699 = vector.multi_reduction <add>, %698, %cst_189 [2] : vector<2x8x8xf32> to vector<2x8xf32>
    %700 = vector.shape_cast %699 : vector<2x8xf32> to vector<2x8x1xf32>
    %701 = tpu.reciprocal %700 {approx = true} : vector<2x8x1xf32> -> vector<2x8x1xf32>
    %702 = vector.broadcast %701 : vector<2x8x1xf32> to vector<2x8x8xf32>
    %703 = arith.mulf %698, %702 : vector<2x8x8xf32>
    "tpu.trace_start"() <{level = 10 : i32, message = "bqk,bkd->bqd"}> : () -> ()
    %cst_190 = arith.constant dense<0.000000e+00> : vector<2x8x8xf32>
    %704 = tpu.matmul %703, %687, %cst_190 {dimension_numbers = #tpu.dot_dimension_numbers<[2], [1], [1], [2], [0, 0, 0, 1, 1, 2], [0], [0]>} : vector<2x8x8xf32>, vector<2x8x8xf32>, vector<2x8x8xf32> -> vector<2x8x8xf32>
    "tpu.trace_stop"() : () -> ()
    %705 = vector.shape_cast %704 : vector<2x8x8xf32> to vector<16x8xf32>
    %706 = vector.extract_strided_slice %12 {offsets = [8, 0], sizes = [8, 32], strides = [1, 1]} : vector<32x32xf32> to vector<8x32xf32>
    %cst_191 = arith.constant dense<0.000000e+00> : vector<16x32xf32>
    %707 = tpu.matmul %705, %706, %cst_191 {dimension_numbers = #tpu.dot_dimension_numbers<[1], [0], [0], [1], [0, 0, 1, 1], [], []>} : vector<16x8xf32>, vector<8x32xf32>, vector<16x32xf32> -> vector<16x32xf32>
    %708 = arith.addf %681, %707 : vector<16x32xf32>
    %709 = vector.extract_strided_slice %653 {offsets = [0, 16], sizes = [16, 8], strides = [1, 1]} : vector<16x32xf32> to vector<16x8xf32>
    %710 = vector.shape_cast %709 : vector<16x8xf32> to vector<2x8x8xf32>
    %711 = vector.extract_strided_slice %654 {offsets = [0, 16], sizes = [16, 8], strides = [1, 1]} : vector<16x32xf32> to vector<16x8xf32>
    %712 = vector.shape_cast %711 : vector<16x8xf32> to vector<2x8x8xf32>
    %713 = vector.extract_strided_slice %655 {offsets = [0, 16], sizes = [16, 8], strides = [1, 1]} : vector<16x32xf32> to vector<16x8xf32>
    %714 = vector.shape_cast %713 : vector<16x8xf32> to vector<2x8x8xf32>
    "tpu.trace_start"() <{level = 10 : i32, message = "bqd,bkd->bqk"}> : () -> ()
    %cst_192 = arith.constant dense<0.000000e+00> : vector<2x8x8xf32>
    %715 = tpu.matmul %710, %712, %cst_192 {dimension_numbers = #tpu.dot_dimension_numbers<[2], [2], [1], [1], [0, 0, 0, 1, 1, 1], [0], [0]>} : vector<2x8x8xf32>, vector<2x8x8xf32>, vector<2x8x8xf32> -> vector<2x8x8xf32>
    "tpu.trace_stop"() : () -> ()
    %cst_193 = arith.constant 0.353553385 : f32
    %716 = vector.broadcast %cst_193 : f32 to vector<2x8x8xf32>
    %717 = arith.mulf %715, %716 : vector<2x8x8xf32>
    %718 = vector.shape_cast %338 : vector<8x8xf32> to vector<1x8x8xf32>
    %719 = vector.broadcast %718 : vector<1x8x8xf32> to vector<2x8x8xf32>
    %720 = arith.addf %717, %719 : vector<2x8x8xf32>
    %cst_194 = arith.constant dense<0xFF800000> : vector<2x8xf32>
    %721 = vector.multi_reduction <maximumf>, %720, %cst_194 [2] : vector<2x8x8xf32> to vector<2x8xf32>
    %722 = vector.shape_cast %721 : vector<2x8xf32> to vector<2x8x1xf32>
    %723 = vector.broadcast %722 : vector<2x8x1xf32> to vector<2x8x8xf32>
    %724 = arith.subf %720, %723 : vector<2x8x8xf32>
    %725 = math.exp %724 : vector<2x8x8xf32>
    %cst_195 = arith.constant dense<0.000000e+00> : vector<2x8xf32>
    %726 = vector.multi_reduction <add>, %725, %cst_195 [2] : vector<2x8x8xf32> to vector<2x8xf32>
    %727 = vector.shape_cast %726 : vector<2x8xf32> to vector<2x8x1xf32>
    %728 = tpu.reciprocal %727 {approx = true} : vector<2x8x1xf32> -> vector<2x8x1xf32>
    %729 = vector.broadcast %728 : vector<2x8x1xf32> to vector<2x8x8xf32>
    %730 = arith.mulf %725, %729 : vector<2x8x8xf32>
    "tpu.trace_start"() <{level = 10 : i32, message = "bqk,bkd->bqd"}> : () -> ()
    %cst_196 = arith.constant dense<0.000000e+00> : vector<2x8x8xf32>
    %731 = tpu.matmul %730, %714, %cst_196 {dimension_numbers = #tpu.dot_dimension_numbers<[2], [1], [1], [2], [0, 0, 0, 1, 1, 2], [0], [0]>} : vector<2x8x8xf32>, vector<2x8x8xf32>, vector<2x8x8xf32> -> vector<2x8x8xf32>
    "tpu.trace_stop"() : () -> ()
    %732 = vector.shape_cast %731 : vector<2x8x8xf32> to vector<16x8xf32>
    %733 = vector.extract_strided_slice %12 {offsets = [16, 0], sizes = [8, 32], strides = [1, 1]} : vector<32x32xf32> to vector<8x32xf32>
    %cst_197 = arith.constant dense<0.000000e+00> : vector<16x32xf32>
    %734 = tpu.matmul %732, %733, %cst_197 {dimension_numbers = #tpu.dot_dimension_numbers<[1], [0], [0], [1], [0, 0, 1, 1], [], []>} : vector<16x8xf32>, vector<8x32xf32>, vector<16x32xf32> -> vector<16x32xf32>
    %735 = arith.addf %708, %734 : vector<16x32xf32>
    %736 = vector.extract_strided_slice %653 {offsets = [0, 24], sizes = [16, 8], strides = [1, 1]} : vector<16x32xf32> to vector<16x8xf32>
    %737 = vector.shape_cast %736 : vector<16x8xf32> to vector<2x8x8xf32>
    %738 = vector.extract_strided_slice %654 {offsets = [0, 24], sizes = [16, 8], strides = [1, 1]} : vector<16x32xf32> to vector<16x8xf32>
    %739 = vector.shape_cast %738 : vector<16x8xf32> to vector<2x8x8xf32>
    %740 = vector.extract_strided_slice %655 {offsets = [0, 24], sizes = [16, 8], strides = [1, 1]} : vector<16x32xf32> to vector<16x8xf32>
    %741 = vector.shape_cast %740 : vector<16x8xf32> to vector<2x8x8xf32>
    "tpu.trace_start"() <{level = 10 : i32, message = "bqd,bkd->bqk"}> : () -> ()
    %cst_198 = arith.constant dense<0.000000e+00> : vector<2x8x8xf32>
    %742 = tpu.matmul %737, %739, %cst_198 {dimension_numbers = #tpu.dot_dimension_numbers<[2], [2], [1], [1], [0, 0, 0, 1, 1, 1], [0], [0]>} : vector<2x8x8xf32>, vector<2x8x8xf32>, vector<2x8x8xf32> -> vector<2x8x8xf32>
    "tpu.trace_stop"() : () -> ()
    %cst_199 = arith.constant 0.353553385 : f32
    %743 = vector.broadcast %cst_199 : f32 to vector<2x8x8xf32>
    %744 = arith.mulf %742, %743 : vector<2x8x8xf32>
    %745 = vector.shape_cast %338 : vector<8x8xf32> to vector<1x8x8xf32>
    %746 = vector.broadcast %745 : vector<1x8x8xf32> to vector<2x8x8xf32>
    %747 = arith.addf %744, %746 : vector<2x8x8xf32>
    %cst_200 = arith.constant dense<0xFF800000> : vector<2x8xf32>
    %748 = vector.multi_reduction <maximumf>, %747, %cst_200 [2] : vector<2x8x8xf32> to vector<2x8xf32>
    %749 = vector.shape_cast %748 : vector<2x8xf32> to vector<2x8x1xf32>
    %750 = vector.broadcast %749 : vector<2x8x1xf32> to vector<2x8x8xf32>
    %751 = arith.subf %747, %750 : vector<2x8x8xf32>
    %752 = math.exp %751 : vector<2x8x8xf32>
    %cst_201 = arith.constant dense<0.000000e+00> : vector<2x8xf32>
    %753 = vector.multi_reduction <add>, %752, %cst_201 [2] : vector<2x8x8xf32> to vector<2x8xf32>
    %754 = vector.shape_cast %753 : vector<2x8xf32> to vector<2x8x1xf32>
    %755 = tpu.reciprocal %754 {approx = true} : vector<2x8x1xf32> -> vector<2x8x1xf32>
    %756 = vector.broadcast %755 : vector<2x8x1xf32> to vector<2x8x8xf32>
    %757 = arith.mulf %752, %756 : vector<2x8x8xf32>
    "tpu.trace_start"() <{level = 10 : i32, message = "bqk,bkd->bqd"}> : () -> ()
    %cst_202 = arith.constant dense<0.000000e+00> : vector<2x8x8xf32>
    %758 = tpu.matmul %757, %741, %cst_202 {dimension_numbers = #tpu.dot_dimension_numbers<[2], [1], [1], [2], [0, 0, 0, 1, 1, 2], [0], [0]>} : vector<2x8x8xf32>, vector<2x8x8xf32>, vector<2x8x8xf32> -> vector<2x8x8xf32>
    "tpu.trace_stop"() : () -> ()
    %759 = vector.shape_cast %758 : vector<2x8x8xf32> to vector<16x8xf32>
    %760 = vector.extract_strided_slice %12 {offsets = [24, 0], sizes = [8, 32], strides = [1, 1]} : vector<32x32xf32> to vector<8x32xf32>
    %cst_203 = arith.constant dense<0.000000e+00> : vector<16x32xf32>
    %761 = tpu.matmul %759, %760, %cst_203 {dimension_numbers = #tpu.dot_dimension_numbers<[1], [0], [0], [1], [0, 0, 1, 1], [], []>} : vector<16x8xf32>, vector<8x32xf32>, vector<16x32xf32> -> vector<16x32xf32>
    %762 = arith.addf %735, %761 : vector<16x32xf32>
    %763 = vector.broadcast %13 : vector<1x32xf32> to vector<16x32xf32>
    %764 = arith.addf %762, %763 : vector<16x32xf32>
    %765 = vector.shape_cast %764 : vector<16x32xf32> to vector<2x8x32xf32>
    %766 = arith.addf %648, %765 : vector<2x8x32xf32>
    %767 = vector.shape_cast %766 : vector<2x8x32xf32> to vector<16x32xf32>
    %cst_204 = arith.constant dense<0.000000e+00> : vector<16xf32>
    %768 = vector.multi_reduction <add>, %767, %cst_204 [1] : vector<16x32xf32> to vector<16xf32>
    %769 = vector.shape_cast %768 : vector<16xf32> to vector<16x1xf32>
    %cst_205 = arith.constant 3.200000e+01 : f32
    %770 = vector.broadcast %cst_205 : f32 to vector<16x1xf32>
    %771 = arith.divf %769, %770 : vector<16x1xf32>
    %772 = vector.broadcast %771 : vector<16x1xf32> to vector<16x32xf32>
    %773 = arith.subf %767, %772 : vector<16x32xf32>
    %774 = arith.mulf %773, %773 : vector<16x32xf32>
    %cst_206 = arith.constant dense<0.000000e+00> : vector<16xf32>
    %775 = vector.multi_reduction <add>, %774, %cst_206 [1] : vector<16x32xf32> to vector<16xf32>
    %776 = vector.shape_cast %775 : vector<16xf32> to vector<16x1xf32>
    %cst_207 = arith.constant 3.200000e+01 : f32
    %777 = vector.broadcast %cst_207 : f32 to vector<16x1xf32>
    %778 = arith.divf %776, %777 : vector<16x1xf32>
    %779 = vector.broadcast %771 : vector<16x1xf32> to vector<16x32xf32>
    %780 = arith.subf %767, %779 : vector<16x32xf32>
    %cst_208 = arith.constant 9.99999974E-6 : f32
    %781 = vector.broadcast %cst_208 : f32 to vector<16x1xf32>
    %782 = arith.addf %778, %781 : vector<16x1xf32>
    %783 = math.rsqrt %782 : vector<16x1xf32>
    %784 = vector.broadcast %783 : vector<16x1xf32> to vector<16x32xf32>
    %785 = arith.mulf %780, %784 : vector<16x32xf32>
    %786 = vector.broadcast %0 : vector<1x32xf32> to vector<16x32xf32>
    %787 = arith.mulf %785, %786 : vector<16x32xf32>
    %788 = vector.broadcast %1 : vector<1x32xf32> to vector<16x32xf32>
    %789 = arith.addf %787, %788 : vector<16x32xf32>
    %790 = vector.shape_cast %789 : vector<16x32xf32> to vector<2x8x32xf32>
    %791 = vector.shape_cast %790 : vector<2x8x32xf32> to vector<16x32xf32>
    %792 = vector.shape_cast %336 : vector<2x8x32xf32> to vector<16x32xf32>
    %793 = vector.extract_strided_slice %6 {offsets = [0, 0], sizes = [32, 32], strides = [1, 1]} : vector<32x96xf32> to vector<32x32xf32>
    %cst_209 = arith.constant dense<0.000000e+00> : vector<16x32xf32>
    %794 = tpu.matmul %791, %793, %cst_209 {dimension_numbers = #tpu.dot_dimension_numbers<[1], [0], [0], [1], [0, 0, 1, 1], [], []>} : vector<16x32xf32>, vector<32x32xf32>, vector<16x32xf32> -> vector<16x32xf32>
    %795 = vector.extract_strided_slice %7 {offsets = [0, 0], sizes = [1, 32], strides = [1, 1]} : vector<1x96xf32> to vector<1x32xf32>
    %796 = vector.broadcast %795 : vector<1x32xf32> to vector<16x32xf32>
    %797 = arith.addf %794, %796 : vector<16x32xf32>
    %798 = vector.extract_strided_slice %6 {offsets = [0, 32], sizes = [32, 64], strides = [1, 1]} : vector<32x96xf32> to vector<32x64xf32>
    %cst_210 = arith.constant dense<0.000000e+00> : vector<16x64xf32>
    %799 = tpu.matmul %792, %798, %cst_210 {dimension_numbers = #tpu.dot_dimension_numbers<[1], [0], [0], [1], [0, 0, 1, 1], [], []>} : vector<16x32xf32>, vector<32x64xf32>, vector<16x64xf32> -> vector<16x64xf32>
    %800 = vector.extract_strided_slice %7 {offsets = [0, 32], sizes = [1, 64], strides = [1, 1]} : vector<1x96xf32> to vector<1x64xf32>
    %801 = vector.broadcast %800 : vector<1x64xf32> to vector<16x64xf32>
    %802 = arith.addf %799, %801 : vector<16x64xf32>
    %803 = vector.extract_strided_slice %802 {offsets = [0, 0], sizes = [16, 32], strides = [1, 1]} : vector<16x64xf32> to vector<16x32xf32>
    %804 = vector.extract_strided_slice %802 {offsets = [0, 32], sizes = [16, 32], strides = [1, 1]} : vector<16x64xf32> to vector<16x32xf32>
    %805 = vector.extract_strided_slice %797 {offsets = [0, 0], sizes = [16, 8], strides = [1, 1]} : vector<16x32xf32> to vector<16x8xf32>
    %806 = vector.shape_cast %805 : vector<16x8xf32> to vector<2x8x8xf32>
    %807 = vector.extract_strided_slice %803 {offsets = [0, 0], sizes = [16, 8], strides = [1, 1]} : vector<16x32xf32> to vector<16x8xf32>
    %808 = vector.shape_cast %807 : vector<16x8xf32> to vector<2x8x8xf32>
    %809 = vector.extract_strided_slice %804 {offsets = [0, 0], sizes = [16, 8], strides = [1, 1]} : vector<16x32xf32> to vector<16x8xf32>
    %810 = vector.shape_cast %809 : vector<16x8xf32> to vector<2x8x8xf32>
    "tpu.trace_start"() <{level = 10 : i32, message = "bqd,bkd->bqk"}> : () -> ()
    %cst_211 = arith.constant dense<0.000000e+00> : vector<2x8x8xf32>
    %811 = tpu.matmul %806, %808, %cst_211 {dimension_numbers = #tpu.dot_dimension_numbers<[2], [2], [1], [1], [0, 0, 0, 1, 1, 1], [0], [0]>} : vector<2x8x8xf32>, vector<2x8x8xf32>, vector<2x8x8xf32> -> vector<2x8x8xf32>
    "tpu.trace_stop"() : () -> ()
    %cst_212 = arith.constant 0.353553385 : f32
    %812 = vector.broadcast %cst_212 : f32 to vector<2x8x8xf32>
    %813 = arith.mulf %811, %812 : vector<2x8x8xf32>
    %cst_213 = arith.constant dense<0xFF800000> : vector<2x8xf32>
    %814 = vector.multi_reduction <maximumf>, %813, %cst_213 [2] : vector<2x8x8xf32> to vector<2x8xf32>
    %815 = vector.shape_cast %814 : vector<2x8xf32> to vector<2x8x1xf32>
    %816 = vector.broadcast %815 : vector<2x8x1xf32> to vector<2x8x8xf32>
    %817 = arith.subf %813, %816 : vector<2x8x8xf32>
    %818 = math.exp %817 : vector<2x8x8xf32>
    %cst_214 = arith.constant dense<0.000000e+00> : vector<2x8xf32>
    %819 = vector.multi_reduction <add>, %818, %cst_214 [2] : vector<2x8x8xf32> to vector<2x8xf32>
    %820 = vector.shape_cast %819 : vector<2x8xf32> to vector<2x8x1xf32>
    %821 = tpu.reciprocal %820 {approx = true} : vector<2x8x1xf32> -> vector<2x8x1xf32>
    %822 = vector.broadcast %821 : vector<2x8x1xf32> to vector<2x8x8xf32>
    %823 = arith.mulf %818, %822 : vector<2x8x8xf32>
    "tpu.trace_start"() <{level = 10 : i32, message = "bqk,bkd->bqd"}> : () -> ()
    %cst_215 = arith.constant dense<0.000000e+00> : vector<2x8x8xf32>
    %824 = tpu.matmul %823, %810, %cst_215 {dimension_numbers = #tpu.dot_dimension_numbers<[2], [1], [1], [2], [0, 0, 0, 1, 1, 2], [0], [0]>} : vector<2x8x8xf32>, vector<2x8x8xf32>, vector<2x8x8xf32> -> vector<2x8x8xf32>
    "tpu.trace_stop"() : () -> ()
    %825 = vector.shape_cast %824 : vector<2x8x8xf32> to vector<16x8xf32>
    %826 = vector.extract_strided_slice %8 {offsets = [0, 0], sizes = [8, 32], strides = [1, 1]} : vector<32x32xf32> to vector<8x32xf32>
    %cst_216 = arith.constant dense<0.000000e+00> : vector<16x32xf32>
    %827 = tpu.matmul %825, %826, %cst_216 {dimension_numbers = #tpu.dot_dimension_numbers<[1], [0], [0], [1], [0, 0, 1, 1], [], []>} : vector<16x8xf32>, vector<8x32xf32>, vector<16x32xf32> -> vector<16x32xf32>
    %828 = vector.extract_strided_slice %797 {offsets = [0, 8], sizes = [16, 8], strides = [1, 1]} : vector<16x32xf32> to vector<16x8xf32>
    %829 = vector.shape_cast %828 : vector<16x8xf32> to vector<2x8x8xf32>
    %830 = vector.extract_strided_slice %803 {offsets = [0, 8], sizes = [16, 8], strides = [1, 1]} : vector<16x32xf32> to vector<16x8xf32>
    %831 = vector.shape_cast %830 : vector<16x8xf32> to vector<2x8x8xf32>
    %832 = vector.extract_strided_slice %804 {offsets = [0, 8], sizes = [16, 8], strides = [1, 1]} : vector<16x32xf32> to vector<16x8xf32>
    %833 = vector.shape_cast %832 : vector<16x8xf32> to vector<2x8x8xf32>
    "tpu.trace_start"() <{level = 10 : i32, message = "bqd,bkd->bqk"}> : () -> ()
    %cst_217 = arith.constant dense<0.000000e+00> : vector<2x8x8xf32>
    %834 = tpu.matmul %829, %831, %cst_217 {dimension_numbers = #tpu.dot_dimension_numbers<[2], [2], [1], [1], [0, 0, 0, 1, 1, 1], [0], [0]>} : vector<2x8x8xf32>, vector<2x8x8xf32>, vector<2x8x8xf32> -> vector<2x8x8xf32>
    "tpu.trace_stop"() : () -> ()
    %cst_218 = arith.constant 0.353553385 : f32
    %835 = vector.broadcast %cst_218 : f32 to vector<2x8x8xf32>
    %836 = arith.mulf %834, %835 : vector<2x8x8xf32>
    %cst_219 = arith.constant dense<0xFF800000> : vector<2x8xf32>
    %837 = vector.multi_reduction <maximumf>, %836, %cst_219 [2] : vector<2x8x8xf32> to vector<2x8xf32>
    %838 = vector.shape_cast %837 : vector<2x8xf32> to vector<2x8x1xf32>
    %839 = vector.broadcast %838 : vector<2x8x1xf32> to vector<2x8x8xf32>
    %840 = arith.subf %836, %839 : vector<2x8x8xf32>
    %841 = math.exp %840 : vector<2x8x8xf32>
    %cst_220 = arith.constant dense<0.000000e+00> : vector<2x8xf32>
    %842 = vector.multi_reduction <add>, %841, %cst_220 [2] : vector<2x8x8xf32> to vector<2x8xf32>
    %843 = vector.shape_cast %842 : vector<2x8xf32> to vector<2x8x1xf32>
    %844 = tpu.reciprocal %843 {approx = true} : vector<2x8x1xf32> -> vector<2x8x1xf32>
    %845 = vector.broadcast %844 : vector<2x8x1xf32> to vector<2x8x8xf32>
    %846 = arith.mulf %841, %845 : vector<2x8x8xf32>
    "tpu.trace_start"() <{level = 10 : i32, message = "bqk,bkd->bqd"}> : () -> ()
    %cst_221 = arith.constant dense<0.000000e+00> : vector<2x8x8xf32>
    %847 = tpu.matmul %846, %833, %cst_221 {dimension_numbers = #tpu.dot_dimension_numbers<[2], [1], [1], [2], [0, 0, 0, 1, 1, 2], [0], [0]>} : vector<2x8x8xf32>, vector<2x8x8xf32>, vector<2x8x8xf32> -> vector<2x8x8xf32>
    "tpu.trace_stop"() : () -> ()
    %848 = vector.shape_cast %847 : vector<2x8x8xf32> to vector<16x8xf32>
    %849 = vector.extract_strided_slice %8 {offsets = [8, 0], sizes = [8, 32], strides = [1, 1]} : vector<32x32xf32> to vector<8x32xf32>
    %cst_222 = arith.constant dense<0.000000e+00> : vector<16x32xf32>
    %850 = tpu.matmul %848, %849, %cst_222 {dimension_numbers = #tpu.dot_dimension_numbers<[1], [0], [0], [1], [0, 0, 1, 1], [], []>} : vector<16x8xf32>, vector<8x32xf32>, vector<16x32xf32> -> vector<16x32xf32>
    %851 = arith.addf %827, %850 : vector<16x32xf32>
    %852 = vector.extract_strided_slice %797 {offsets = [0, 16], sizes = [16, 8], strides = [1, 1]} : vector<16x32xf32> to vector<16x8xf32>
    %853 = vector.shape_cast %852 : vector<16x8xf32> to vector<2x8x8xf32>
    %854 = vector.extract_strided_slice %803 {offsets = [0, 16], sizes = [16, 8], strides = [1, 1]} : vector<16x32xf32> to vector<16x8xf32>
    %855 = vector.shape_cast %854 : vector<16x8xf32> to vector<2x8x8xf32>
    %856 = vector.extract_strided_slice %804 {offsets = [0, 16], sizes = [16, 8], strides = [1, 1]} : vector<16x32xf32> to vector<16x8xf32>
    %857 = vector.shape_cast %856 : vector<16x8xf32> to vector<2x8x8xf32>
    "tpu.trace_start"() <{level = 10 : i32, message = "bqd,bkd->bqk"}> : () -> ()
    %cst_223 = arith.constant dense<0.000000e+00> : vector<2x8x8xf32>
    %858 = tpu.matmul %853, %855, %cst_223 {dimension_numbers = #tpu.dot_dimension_numbers<[2], [2], [1], [1], [0, 0, 0, 1, 1, 1], [0], [0]>} : vector<2x8x8xf32>, vector<2x8x8xf32>, vector<2x8x8xf32> -> vector<2x8x8xf32>
    "tpu.trace_stop"() : () -> ()
    %cst_224 = arith.constant 0.353553385 : f32
    %859 = vector.broadcast %cst_224 : f32 to vector<2x8x8xf32>
    %860 = arith.mulf %858, %859 : vector<2x8x8xf32>
    %cst_225 = arith.constant dense<0xFF800000> : vector<2x8xf32>
    %861 = vector.multi_reduction <maximumf>, %860, %cst_225 [2] : vector<2x8x8xf32> to vector<2x8xf32>
    %862 = vector.shape_cast %861 : vector<2x8xf32> to vector<2x8x1xf32>
    %863 = vector.broadcast %862 : vector<2x8x1xf32> to vector<2x8x8xf32>
    %864 = arith.subf %860, %863 : vector<2x8x8xf32>
    %865 = math.exp %864 : vector<2x8x8xf32>
    %cst_226 = arith.constant dense<0.000000e+00> : vector<2x8xf32>
    %866 = vector.multi_reduction <add>, %865, %cst_226 [2] : vector<2x8x8xf32> to vector<2x8xf32>
    %867 = vector.shape_cast %866 : vector<2x8xf32> to vector<2x8x1xf32>
    %868 = tpu.reciprocal %867 {approx = true} : vector<2x8x1xf32> -> vector<2x8x1xf32>
    %869 = vector.broadcast %868 : vector<2x8x1xf32> to vector<2x8x8xf32>
    %870 = arith.mulf %865, %869 : vector<2x8x8xf32>
    "tpu.trace_start"() <{level = 10 : i32, message = "bqk,bkd->bqd"}> : () -> ()
    %cst_227 = arith.constant dense<0.000000e+00> : vector<2x8x8xf32>
    %871 = tpu.matmul %870, %857, %cst_227 {dimension_numbers = #tpu.dot_dimension_numbers<[2], [1], [1], [2], [0, 0, 0, 1, 1, 2], [0], [0]>} : vector<2x8x8xf32>, vector<2x8x8xf32>, vector<2x8x8xf32> -> vector<2x8x8xf32>
    "tpu.trace_stop"() : () -> ()
    %872 = vector.shape_cast %871 : vector<2x8x8xf32> to vector<16x8xf32>
    %873 = vector.extract_strided_slice %8 {offsets = [16, 0], sizes = [8, 32], strides = [1, 1]} : vector<32x32xf32> to vector<8x32xf32>
    %cst_228 = arith.constant dense<0.000000e+00> : vector<16x32xf32>
    %874 = tpu.matmul %872, %873, %cst_228 {dimension_numbers = #tpu.dot_dimension_numbers<[1], [0], [0], [1], [0, 0, 1, 1], [], []>} : vector<16x8xf32>, vector<8x32xf32>, vector<16x32xf32> -> vector<16x32xf32>
    %875 = arith.addf %851, %874 : vector<16x32xf32>
    %876 = vector.extract_strided_slice %797 {offsets = [0, 24], sizes = [16, 8], strides = [1, 1]} : vector<16x32xf32> to vector<16x8xf32>
    %877 = vector.shape_cast %876 : vector<16x8xf32> to vector<2x8x8xf32>
    %878 = vector.extract_strided_slice %803 {offsets = [0, 24], sizes = [16, 8], strides = [1, 1]} : vector<16x32xf32> to vector<16x8xf32>
    %879 = vector.shape_cast %878 : vector<16x8xf32> to vector<2x8x8xf32>
    %880 = vector.extract_strided_slice %804 {offsets = [0, 24], sizes = [16, 8], strides = [1, 1]} : vector<16x32xf32> to vector<16x8xf32>
    %881 = vector.shape_cast %880 : vector<16x8xf32> to vector<2x8x8xf32>
    "tpu.trace_start"() <{level = 10 : i32, message = "bqd,bkd->bqk"}> : () -> ()
    %cst_229 = arith.constant dense<0.000000e+00> : vector<2x8x8xf32>
    %882 = tpu.matmul %877, %879, %cst_229 {dimension_numbers = #tpu.dot_dimension_numbers<[2], [2], [1], [1], [0, 0, 0, 1, 1, 1], [0], [0]>} : vector<2x8x8xf32>, vector<2x8x8xf32>, vector<2x8x8xf32> -> vector<2x8x8xf32>
    "tpu.trace_stop"() : () -> ()
    %cst_230 = arith.constant 0.353553385 : f32
    %883 = vector.broadcast %cst_230 : f32 to vector<2x8x8xf32>
    %884 = arith.mulf %882, %883 : vector<2x8x8xf32>
    %cst_231 = arith.constant dense<0xFF800000> : vector<2x8xf32>
    %885 = vector.multi_reduction <maximumf>, %884, %cst_231 [2] : vector<2x8x8xf32> to vector<2x8xf32>
    %886 = vector.shape_cast %885 : vector<2x8xf32> to vector<2x8x1xf32>
    %887 = vector.broadcast %886 : vector<2x8x1xf32> to vector<2x8x8xf32>
    %888 = arith.subf %884, %887 : vector<2x8x8xf32>
    %889 = math.exp %888 : vector<2x8x8xf32>
    %cst_232 = arith.constant dense<0.000000e+00> : vector<2x8xf32>
    %890 = vector.multi_reduction <add>, %889, %cst_232 [2] : vector<2x8x8xf32> to vector<2x8xf32>
    %891 = vector.shape_cast %890 : vector<2x8xf32> to vector<2x8x1xf32>
    %892 = tpu.reciprocal %891 {approx = true} : vector<2x8x1xf32> -> vector<2x8x1xf32>
    %893 = vector.broadcast %892 : vector<2x8x1xf32> to vector<2x8x8xf32>
    %894 = arith.mulf %889, %893 : vector<2x8x8xf32>
    "tpu.trace_start"() <{level = 10 : i32, message = "bqk,bkd->bqd"}> : () -> ()
    %cst_233 = arith.constant dense<0.000000e+00> : vector<2x8x8xf32>
    %895 = tpu.matmul %894, %881, %cst_233 {dimension_numbers = #tpu.dot_dimension_numbers<[2], [1], [1], [2], [0, 0, 0, 1, 1, 2], [0], [0]>} : vector<2x8x8xf32>, vector<2x8x8xf32>, vector<2x8x8xf32> -> vector<2x8x8xf32>
    "tpu.trace_stop"() : () -> ()
    %896 = vector.shape_cast %895 : vector<2x8x8xf32> to vector<16x8xf32>
    %897 = vector.extract_strided_slice %8 {offsets = [24, 0], sizes = [8, 32], strides = [1, 1]} : vector<32x32xf32> to vector<8x32xf32>
    %cst_234 = arith.constant dense<0.000000e+00> : vector<16x32xf32>
    %898 = tpu.matmul %896, %897, %cst_234 {dimension_numbers = #tpu.dot_dimension_numbers<[1], [0], [0], [1], [0, 0, 1, 1], [], []>} : vector<16x8xf32>, vector<8x32xf32>, vector<16x32xf32> -> vector<16x32xf32>
    %899 = arith.addf %875, %898 : vector<16x32xf32>
    %900 = vector.broadcast %9 : vector<1x32xf32> to vector<16x32xf32>
    %901 = arith.addf %899, %900 : vector<16x32xf32>
    %902 = vector.shape_cast %901 : vector<16x32xf32> to vector<2x8x32xf32>
    %903 = vector.shape_cast %902 : vector<2x8x32xf32> to vector<16x32xf32>
    %904 = arith.addf %789, %903 : vector<16x32xf32>
    %cst_235 = arith.constant dense<0.000000e+00> : vector<16xf32>
    %905 = vector.multi_reduction <add>, %904, %cst_235 [1] : vector<16x32xf32> to vector<16xf32>
    %906 = vector.shape_cast %905 : vector<16xf32> to vector<16x1xf32>
    %cst_236 = arith.constant 3.200000e+01 : f32
    %907 = vector.broadcast %cst_236 : f32 to vector<16x1xf32>
    %908 = arith.divf %906, %907 : vector<16x1xf32>
    %909 = vector.broadcast %908 : vector<16x1xf32> to vector<16x32xf32>
    %910 = arith.subf %904, %909 : vector<16x32xf32>
    %911 = arith.mulf %910, %910 : vector<16x32xf32>
    %cst_237 = arith.constant dense<0.000000e+00> : vector<16xf32>
    %912 = vector.multi_reduction <add>, %911, %cst_237 [1] : vector<16x32xf32> to vector<16xf32>
    %913 = vector.shape_cast %912 : vector<16xf32> to vector<16x1xf32>
    %cst_238 = arith.constant 3.200000e+01 : f32
    %914 = vector.broadcast %cst_238 : f32 to vector<16x1xf32>
    %915 = arith.divf %913, %914 : vector<16x1xf32>
    %916 = vector.broadcast %908 : vector<16x1xf32> to vector<16x32xf32>
    %917 = arith.subf %904, %916 : vector<16x32xf32>
    %cst_239 = arith.constant 9.99999974E-6 : f32
    %918 = vector.broadcast %cst_239 : f32 to vector<16x1xf32>
    %919 = arith.addf %915, %918 : vector<16x1xf32>
    %920 = math.rsqrt %919 : vector<16x1xf32>
    %921 = vector.broadcast %920 : vector<16x1xf32> to vector<16x32xf32>
    %922 = arith.mulf %917, %921 : vector<16x32xf32>
    %923 = vector.broadcast %0 : vector<1x32xf32> to vector<16x32xf32>
    %924 = arith.mulf %922, %923 : vector<16x32xf32>
    %925 = vector.broadcast %1 : vector<1x32xf32> to vector<16x32xf32>
    %926 = arith.addf %924, %925 : vector<16x32xf32>
    %cst_240 = arith.constant dense<0.000000e+00> : vector<16x64xf32>
    %927 = tpu.matmul %926, %2, %cst_240 {dimension_numbers = #tpu.dot_dimension_numbers<[1], [0], [0], [1], [0, 0, 1, 1], [], []>} : vector<16x32xf32>, vector<32x64xf32>, vector<16x64xf32> -> vector<16x64xf32>
    %928 = vector.broadcast %3 : vector<1x64xf32> to vector<16x64xf32>
    %929 = arith.addf %927, %928 : vector<16x64xf32>
    %cst_241 = arith.constant 0.000000e+00 : f32
    %930 = vector.broadcast %cst_241 : f32 to vector<16x64xf32>
    %931 = arith.maximumf %929, %930 : vector<16x64xf32>
    %cst_242 = arith.constant dense<0.000000e+00> : vector<16x32xf32>
    %932 = tpu.matmul %931, %4, %cst_242 {dimension_numbers = #tpu.dot_dimension_numbers<[1], [0], [0], [1], [0, 0, 1, 1], [], []>} : vector<16x64xf32>, vector<64x32xf32>, vector<16x32xf32> -> vector<16x32xf32>
    %933 = vector.broadcast %5 : vector<1x32xf32> to vector<16x32xf32>
    %934 = arith.addf %932, %933 : vector<16x32xf32>
    %935 = arith.addf %926, %934 : vector<16x32xf32>
    %cst_243 = arith.constant dense<0.000000e+00> : vector<16xf32>
    %936 = vector.multi_reduction <add>, %935, %cst_243 [1] : vector<16x32xf32> to vector<16xf32>
    %937 = vector.shape_cast %936 : vector<16xf32> to vector<16x1xf32>
    %cst_244 = arith.constant 3.200000e+01 : f32
    %938 = vector.broadcast %cst_244 : f32 to vector<16x1xf32>
    %939 = arith.divf %937, %938 : vector<16x1xf32>
    %940 = vector.broadcast %939 : vector<16x1xf32> to vector<16x32xf32>
    %941 = arith.subf %935, %940 : vector<16x32xf32>
    %942 = arith.mulf %941, %941 : vector<16x32xf32>
    %cst_245 = arith.constant dense<0.000000e+00> : vector<16xf32>
    %943 = vector.multi_reduction <add>, %942, %cst_245 [1] : vector<16x32xf32> to vector<16xf32>
    %944 = vector.shape_cast %943 : vector<16xf32> to vector<16x1xf32>
    %cst_246 = arith.constant 3.200000e+01 : f32
    %945 = vector.broadcast %cst_246 : f32 to vector<16x1xf32>
    %946 = arith.divf %944, %945 : vector<16x1xf32>
    %947 = vector.broadcast %939 : vector<16x1xf32> to vector<16x32xf32>
    %948 = arith.subf %935, %947 : vector<16x32xf32>
    %cst_247 = arith.constant 9.99999974E-6 : f32
    %949 = vector.broadcast %cst_247 : f32 to vector<16x1xf32>
    %950 = arith.addf %946, %949 : vector<16x1xf32>
    %951 = math.rsqrt %950 : vector<16x1xf32>
    %952 = vector.broadcast %951 : vector<16x1xf32> to vector<16x32xf32>
    %953 = arith.mulf %948, %952 : vector<16x32xf32>
    %954 = vector.broadcast %0 : vector<1x32xf32> to vector<16x32xf32>
    %955 = arith.mulf %953, %954 : vector<16x32xf32>
    %956 = vector.broadcast %1 : vector<1x32xf32> to vector<16x32xf32>
    %957 = arith.addf %955, %956 : vector<16x32xf32>
    %958 = vector.shape_cast %957 : vector<16x32xf32> to vector<2x8x32xf32>
    %959 = vector.shape_cast %958 : vector<2x8x32xf32> to vector<16x32xf32>
    %c0_248 = arith.constant 0 : index
    %c0_249 = arith.constant 0 : index
    %960 = vector.load %arg17[%c0_248, %c0_249] : memref<32x128xf32, #tpu.memory_space<vmem>>, vector<32x128xf32>
    %cst_250 = arith.constant dense<0.000000e+00> : vector<16x128xf32>
    %961 = tpu.matmul %959, %960, %cst_250 {dimension_numbers = #tpu.dot_dimension_numbers<[1], [0], [0], [1], [0, 0, 1, 1], [], []>} : vector<16x32xf32>, vector<32x128xf32>, vector<16x128xf32> -> vector<16x128xf32>
    %c0_251 = arith.constant 0 : index
    %c0_252 = arith.constant 0 : index
    %962 = vector.load %arg18[%c0_251, %c0_252] : memref<1x128xf32, #tpu.memory_space<vmem>>, vector<1x128xf32>
    %963 = vector.broadcast %962 : vector<1x128xf32> to vector<16x128xf32>
    %964 = arith.addf %961, %963 : vector<16x128xf32>
    %cst_253 = arith.constant dense<0xFF800000> : vector<16xf32>
    %965 = vector.multi_reduction <maximumf>, %964, %cst_253 [1] : vector<16x128xf32> to vector<16xf32>
    %966 = vector.shape_cast %965 : vector<16xf32> to vector<16x1xf32>
    %967 = vector.broadcast %966 : vector<16x1xf32> to vector<16x128xf32>
    %968 = arith.subf %964, %967 : vector<16x128xf32>
    %969 = math.exp %968 : vector<16x128xf32>
    %cst_254 = arith.constant dense<0.000000e+00> : vector<16xf32>
    %970 = vector.multi_reduction <add>, %969, %cst_254 [1] : vector<16x128xf32> to vector<16xf32>
    %971 = vector.shape_cast %970 : vector<16xf32> to vector<16x1xf32>
    %972 = vector.broadcast %971 : vector<16x1xf32> to vector<16x128xf32>
    %973 = arith.divf %969, %972 : vector<16x128xf32>
    %974 = vector.shape_cast %973 : vector<16x128xf32> to vector<2x8x128xf32>
    %c0_255 = arith.constant 0 : index
    %c0_256 = arith.constant 0 : index
    %c0_257 = arith.constant 0 : index
    %975 = vector.load %arg19[%c0_255, %c0_256, %c0_257] : memref<2x8x128xf32, #tpu.memory_space<vmem>>, vector<2x8x128xf32>
    tpu.vector_store %arg19[%c0_255, %c0_256, %c0_257], %974 {strides = array<i32>} : memref<2x8x128xf32, #tpu.memory_space<vmem>>, vector<2x8x128xf32>,
    return
  }
}

</mosaic_0001>

<bundles_post_ra>
// kernel: transformer_forward.1
= control target key start
LH: loop header
LB: loop body
LE: loop exit
PB: predicated region body
PF: predicated region fallthrough
CT: control target
= control target key end

     0   :  { %s15311_s0 = inlined_call_operand.vmem [shape: f32[2,8,32], index: 0, kind: input, shape index: {}]   ;;  %s15312_s1 = inlined_call_operand.vmem [shape: f32[2,8,32], index: 1, kind: input, shape index: {}]   ;;  %s15313_s2 = inlined_call_operand.vmem [shape: f32[8,8], index: 2, kind: input, shape index: {}]   ;;  %s15314_s3 = inlined_call_operand.vmem [shape: f32[32,96], index: 3, kind: input, shape index: {}]   ;;  %s15315_s4 = inlined_call_operand.vmem [shape: f32[1,96], index: 4, kind: input, shape index: {}]   ;;  %s15316_s5 = inlined_call_operand.vmem [shape: f32[32,32], index: 5, kind: input, shape index: {}]   ;;  %s15317_s6 = inlined_call_operand.vmem [shape: f32[1,32], index: 6, kind: input, shape index: {}]   ;;  %s15318_s7 = inlined_call_operand.vmem [shape: f32[32,96], index: 7, kind: input, shape index: {}]   ;;  %s15319_s8 = inlined_call_operand.vmem [shape: f32[1,96], index: 8, kind: input, shape index: {}]   ;;  %s15320_s9 = inlined_call_operand.vmem [shape: f32[32,32], index: 9, kind: input, shape index: {}]   ;;  %s15321_s10 = inlined_call_operand.vmem [shape: f32[1,32], index: 10, kind: input, shape index: {}]   ;;  %s15322_s11 = inlined_call_operand.vmem [shape: f32[32,64], index: 11, kind: input, shape index: {}]   ;;  %s15323_s12 = inlined_call_operand.vmem [shape: f32[1,64], index: 12, kind: input, shape index: {}]   ;;  %s15324_s13 = inlined_call_operand.vmem [shape: f32[64,32], index: 13, kind: input, shape index: {}]   ;;  %s15325_s14 = inlined_call_operand.vmem [shape: f32[1,32], index: 14, kind: input, shape index: {}]   ;;  %s15326_s15 = inlined_call_operand.vmem [shape: f32[1,32], index: 15, kind: input, shape index: {}]   ;;  %s15327_s16 = inlined_call_operand.vmem [shape: f32[1,32], index: 16, kind: input, shape index: {}]   ;;  %s15328_s17 = inlined_call_operand.vmem [shape: f32[32,128], index: 17, kind: input, shape index: {}]   ;;  %s15329_s18 = inlined_call_operand.vmem [shape: f32[1,128], index: 18, kind: input, shape index: {}]   ;;  %s15330_s19 = inlined_call_operand.hbm [shape: f32[2,8,128], index: 19, kind: output, shape index: {}]  }
   0x1   :  { %15361 = sst [smem:[#allocation5_spill]] %s15311_s0 }
   0x2   :  { %15362 = sst [smem:[#allocation6_spill]] %s15312_s1 }
   0x3   :  { %15363 = sst [smem:[#allocation7_spill]] %s15313_s2 }
   0x4   :  { %15364 = sst [smem:[#allocation8_spill]] %s15314_s3 }
   0x5   :  { %15365 = sst [smem:[#allocation9_spill]] %s15316_s5 }
   0x6   :  { %15366 = sst [smem:[#allocation10_spill]] %s15325_s14 }
   0x7   :  { %15367 = sst [smem:[#allocation11_spill]] %s15328_s17 }
   0x8   :  { %15368 = sst [smem:[#allocation12_spill]] %s15329_s18 }
   0x9   :  { %15369 = sst [smem:[#allocation13_spill]] %s15330_s19 }
   0xa   :  { %s15370_s20 = sld [smem:[#allocation8_spill]]  ;;  %vm107_vm0 = vcmask 261120  }
   0xb   :  { %s15371_s23 = sld [smem:[#allocation5_spill]] }
  0x10   :  { %v13617_v0 = vld [vmem:[%s15370_s20 + $0x18] sm:$0xff]  ;;  %v13622_v1 = vld [vmem:[%s15370_s20 + $0x10] sm:$0xff]  ;;  %v13634_v3 = vld [vmem:[%s15370_s20 + $0x8] sm:$0xff] }
  0x11   :  { %12349 = vmatprep.subr.mxu0 %v13617_v0  ;;  %v13628_v2 = vld [vmem:[%s15371_s23] sm:$0xff] }
  0x12   :  { %12350 = vmatpush3.msra.mxu0 %v13617_v0  ;;  %12357 = vmatprep.mubr.msk.f32.mxu0 %vm107_vm0, %v13628_v2 }
  0x13   :  { %24 = vsyncpa [#allocation3], 0  ;;  %12351 = vmatprep.subr.mxu0 %v13622_v1  ;;  %v13643_v4 = vld [vmem:[%s15370_s20] sm:$0xff]  ;;  %v13650_v5 = vld [vmem:[%s15371_s23 + $0x8] sm:$0xff]  ;;  %v13498_v6 = vmov 0.0   ;;  %vm13499_vm1 = vmmov 0  }
  0x14   :  { %12352 = vmatpush3.msra.mxu0 %v13622_v1  ;;  %12360 = vmatprep.subr.mxu1 %v13498_v6  ;;  %v13665_v8 = vld [vmem:[%s15315_s4] ss:$0 sm:$0xff]  ;;  %s15355_s30 = smov 96   ;;  %vm192_vm2 = vcmask 64512   ;;  %s15349_s21 = smov 64   ;;  %vm1992_vm3 = vcmask 523264  }
  0x15   :  { %12353 = vmatprep.subr.mxu0 %v13634_v3  ;;  %12362 = vmatprep.mubr.msk.f32.mxu1 %vm13499_vm1, %v13498_v6  ;;  %s15351_s1 = smov 88   ;;  %s15353_s22 = smov 120  }
  0x16   :  { %12354 = vmatpush3.msra.mxu0 %v13634_v3  ;;  %s15347_s2 = smov 56   ;;  %s15343_s23 = smov 112  }
  0x17   :  { %12355 = vmatprep.subr.mxu0 %v13643_v4  ;;  %s15345_s24 = smov 80   ;;  %s15341_s28 = smov 48  }
  0x18   :  { %12356 = vmatpush3.msra.mxu0 %v13643_v4  ;;  %s15339_s29 = smov 72   ;;  %s15337_s0 = smov 104  }
  0x19   :  { %12358 = vmatmul.mubr.msk.f32.vlgmr.msra.gmra.mxu0 %vm107_vm0, %v13650_v5  ;;  %12370 = vmatprep.subr.mxu0 %v13498_v6  ;;  %s15335_s26 = smov 40   ;;  %s15375_s25 = sld [smem:[#allocation6_spill]] }
  0x1a   :  { %12372 = vmatprep.mubr.msk.f32.mxu0 %vm13499_vm1, %v13498_v6  ;;  %s15376_s27 = sld [smem:[#allocation7_spill]]  ;;  %s15381_s3 = smov 96  }
  0x1b   :  { %s15384_s18 = smov 64  }
  0xd9   :  { %v12359_v7 = vpop.f32.mrf.mxu0 }
  0xda   :  { %v13673_v11 = vadd.f32 %v12359_v7, %v13665_v8 }
  0xdb   :  { %v180_v9 = vpop.f32.mrf.mxu0 }
  0xdc   :  { %v13668_v10 = vadd.f32 %v13665_v8, %v180_v9 }
  0xde   :  { %190 = vrot.lane.b32.xlu0 %v13668_v10, %s15355_s30 }
  0xe2   :  { %268 = vrot.lane.b32.xlu0 %v13673_v11, %s15355_s30 }
 0x150   :  { %v191_v12 = vpop.permute.xlu0 %190 }
 0x151   :  { %12361 = vmatpush3.xpose.msk.msra.mxu1 %vm192_vm2, %v191_v12 }
 0x152   :  { %12365 = vmatprep.subr.mxu1 %v13498_v6 }
 0x154   :  { %12363 = vmatmul.mubr.msk.f32.vlgmr.msra.gmra.mxu1 %vm192_vm2, %v13668_v10  ;;  %v269_v13 = vpop.permute.xlu0 %268 }
 0x155   :  { %12366 = vmatpush3.xpose.msk.msra.mxu1 %vm192_vm2, %v269_v13  ;;  %12367 = vmatprep.mubr.msk.f32.mxu1 %vm13499_vm1, %v13498_v6  ;;  %v13740_v13 = vld [vmem:[%s15316_s5] sm:$0xff] }
 0x156   :  { %12375 = vmatprep.subr.mxu1 %v13498_v6 }
 0x158   :  { %12368 = vmatmul.mubr.msk.f32.vlgmr.msra.gmra.mxu1 %vm192_vm2, %v13673_v11 }
 0x159   :  { %12377 = vmatprep.mubr.msk.f32.mxu1 %vm13499_vm1, %v13498_v6 }
 0x214   :  { %v263_v14 = vpop.f32.mrf.mxu1 }
 0x215   :  { %v344_v15 = vmul.f32 0.35355338, %v263_v14 }
 0x216   :  { %v12364_v16 = vpop.f32.mrf.mxu1 }
 0x217   :  { %v346_v17 = vsel %vm192_vm2, %v344_v15, -inf }
 0x218   :  { %347 = vmax.xlane.f32.xlu1 %v346_v17  ;;  %v340_v18 = vpop.f32.mrf.mxu1 }
 0x219   :  { %v345_v19 = vmul.f32 0.35355338, %v340_v18 }
 0x21a   :  { %v12369_v20 = vpop.f32.mrf.mxu1 }
 0x21b   :  { %v349_v21 = vsel %vm192_vm2, %v345_v19, -inf }
 0x21c   :  { %350 = vmax.xlane.f32.xlu1 %v349_v21 }
 0x22d   :  { %368 = vrot.lane.b32.xlu1 %v13668_v10, %s15349_s21 }
 0x231   :  { %444 = vrot.lane.b32.xlu1 %v13673_v11, %s15349_s21 }
 0x235   :  { %522 = vrot.lane.b32.xlu1 %v13668_v10, %s15351_s1 }
 0x239   :  { %600 = vrot.lane.b32.xlu1 %v13673_v11, %s15351_s1 }
 0x2a1   :  { %v348_v22 = vpop.xlane.xlu1 %347 }
 0x2a2   :  { %v352_v23 = vsub.f32 %v344_v15, %v348_v22 }
 0x2a4   :  { %v354_v24 = vmul.f32 1.442695, %v352_v23 }
 0x2a5   :  { %v351_v25 = vpop.xlane.xlu1 %350 }
 0x2a6   :  { %13173 = vpow2.f32 %v354_v24  ;;  %v353_v26 = vsub.f32 %v345_v19, %v351_v25  ;;  %v13761_v24 = vld [vmem:[%s15316_s5 + $0x8] sm:$0xff] }
 0x2a8   :  { %v356_v27 = vmul.f32 1.442695, %v353_v26 }
 0x2a9   :  { %v369_v28 = vpop.permute.xlu1 %368 }
 0x2aa   :  { %13175 = vpow2.f32 %v356_v27  ;;  %12371 = vmatpush3.msra.mxu0 %v369_v28 }
 0x2ab   :  { %12380 = vmatprep.subr.mxu0 %v13498_v6 }
 0x2ad   :  { %v445_v29 = vpop.permute.xlu1 %444 }
 0x2ae   :  { %12376 = vmatpush3.msra.mxu1 %v445_v29 }
 0x2af   :  { %12385 = vmatprep.subr.mxu1 %v13498_v6 }
 0x2b1   :  { %v523_v34 = vpop.permute.xlu1 %522 }
 0x2b3   :  { %v13174_v30 = vpop.eup %13173 }
 0x2b4   :  { %v358_v31 = vsel %vm192_vm2, %v13174_v30, 0.0 }
 0x2b5   :  { %359 = vadd.xlane.f32.xlu0 %v358_v31  ;;  %v601_v35 = vpop.permute.xlu1 %600 }
 0x2b7   :  { %v13176_v32 = vpop.eup %13175 }
 0x2b8   :  { %v361_v33 = vsel %vm192_vm2, %v13176_v32, 0.0 }
 0x2b9   :  { %362 = vadd.xlane.f32.xlu1 %v361_v33 }
 0x2ca   :  { %598 = vrot.lane.b32.xlu1 %v13673_v11, %s15353_s22 }
 0x2cb   :  { %520 = vrot.lane.b32.xlu0 %v13668_v10, %s15353_s22 }
 0x33e   :  { %v360_v36 = vpop.xlane.xlu0 %359 }
 0x33f   :  { %13177 = vrcp.f32 %v360_v36 }
 0x342   :  { %v363_v37 = vpop.xlane.xlu1 %362  ;;  %v521_v42 = vpop.permute.xlu0 %520 }
 0x343   :  { %13179 = vrcp.f32 %v363_v37 }
 0x346   :  { %v599_v43 = vpop.permute.xlu1 %598 }
 0x34c   :  { %v13178_v38 = vpop.eup %13177 }
 0x34d   :  { %v366_v39 = vmul.f32 %v13178_v38, %v13174_v30 }
 0x34f   :  { %12373 = vmatmul.mubr.msk.f32.vlgmr.msra.gmra.mxu0 %vm192_vm2, %v366_v39 }
 0x350   :  { %v13180_v40 = vpop.eup %13179  ;;  %12381 = vmatpush3.xpose.msk.msra.mxu0 %vm192_vm2, %v523_v34  ;;  %12382 = vmatprep.mubr.msk.f32.mxu0 %vm13499_vm1, %v13498_v6 }
 0x351   :  { %v367_v41 = vmul.f32 %v13180_v40, %v13176_v32  ;;  %12390 = vmatprep.subr.mxu0 %v13498_v6 }
 0x353   :  { %12378 = vmatmul.mubr.msk.f32.vlgmr.msra.gmra.mxu1 %vm192_vm2, %v367_v41  ;;  %12383 = vmatmul.mubr.msk.f32.vlgmr.msra.gmra.mxu0 %vm192_vm2, %v521_v42 }
 0x354   :  { %12386 = vmatpush3.xpose.msk.msra.mxu1 %vm192_vm2, %v601_v35  ;;  %12387 = vmatprep.mubr.msk.f32.mxu1 %vm13499_vm1, %v13498_v6 }
 0x355   :  { %12395 = vmatprep.subr.mxu1 %v13498_v6  ;;  %12392 = vmatprep.mubr.msk.f32.mxu0 %vm13499_vm1, %v13498_v6 }
 0x357   :  { %12388 = vmatmul.mubr.msk.f32.vlgmr.msra.gmra.mxu1 %vm192_vm2, %v599_v43 }
 0x358   :  { %12397 = vmatprep.mubr.msk.f32.mxu1 %vm13499_vm1, %v13498_v6 }
 0x40f   :  { %v440_v44 = vpop.f32.mrf.mxu0 }
 0x411   :  { %v12374_v45 = vpop.f32.mrf.mxu0 }
 0x413   :  { %v516_v46 = vpop.f32.mrf.mxu1  ;;  %v594_v47 = vpop.f32.mrf.mxu0 }
 0x414   :  { %v676_v48 = vmul.f32 0.35355338, %v594_v47 }
 0x415   :  { %v12379_v49 = vpop.f32.mrf.mxu1  ;;  %v12384_v50 = vpop.f32.mrf.mxu0 }
 0x416   :  { %v678_v51 = vsel %vm192_vm2, %v676_v48, -inf }
 0x417   :  { %v672_v52 = vpop.f32.mrf.mxu1  ;;  %679 = vmax.xlane.f32.xlu1 %v678_v51 }
 0x418   :  { %v677_v53 = vmul.f32 0.35355338, %v672_v52 }
 0x419   :  { %v12389_v54 = vpop.f32.mrf.mxu1 }
 0x41a   :  { %v681_v55 = vsel %vm192_vm2, %v677_v53, -inf }
 0x41b   :  { %682 = vmax.xlane.f32.xlu0 %v681_v55 }
 0x431   :  { %776 = vrot.lane.b32.xlu0 %v13673_v11, %s15347_s2 }
 0x435   :  { %1014 = vrot.lane.b32.xlu0 %v13668_v10, %s15343_s23 }
 0x4a0   :  { %v680_v56 = vpop.xlane.xlu1 %679 }
 0x4a1   :  { %v684_v57 = vsub.f32 %v676_v48, %v680_v56 }
 0x4a3   :  { %v686_v58 = vmul.f32 1.442695, %v684_v57 }
 0x4a4   :  { %v683_v59 = vpop.xlane.xlu0 %682 }
 0x4a5   :  { %13181 = vpow2.f32 %v686_v58  ;;  %v685_v60 = vsub.f32 %v677_v53, %v683_v59 }
 0x4a7   :  { %v688_v61 = vmul.f32 1.442695, %v685_v60 }
 0x4a8   :  { %v777_v62 = vpop.permute.xlu0 %776 }
 0x4a9   :  { %13183 = vpow2.f32 %v688_v61  ;;  %12396 = vmatpush3.msra.mxu1 %v777_v62  ;;  %v13812_v62 = vld [vmem:[%s15316_s5 + $0x10] sm:$0xff] }
 0x4aa   :  { %12405 = vmatprep.subr.mxu1 %v13740_v13 }
 0x4ac   :  { %v1015_v29 = vpop.permute.xlu0 %1014 }
 0x4b2   :  { %v13182_v63 = vpop.eup %13181 }
 0x4b3   :  { %v690_v7 = vsel %vm192_vm2, %v13182_v63, 0.0 }
 0x4b4   :  { %691 = vadd.xlane.f32.xlu1 %v690_v7 }
 0x4b6   :  { %v13184_v9 = vpop.eup %13183 }
 0x4b7   :  { %v693_v12 = vsel %vm192_vm2, %v13184_v9, 0.0 }
 0x4b8   :  { %694 = vadd.xlane.f32.xlu1 %v693_v12 }
 0x4c9   :  { %700 = vrot.lane.b32.xlu1 %v13668_v10, %s15347_s2 }
 0x4cd   :  { %1016 = vrot.lane.b32.xlu1 %v13668_v10, %s15345_s24 }
 0x4d1   :  { %1094 = vrot.lane.b32.xlu1 %v13673_v11, %s15345_s24 }
 0x4d5   :  { %1092 = vrot.lane.b32.xlu1 %v13673_v11, %s15343_s23 }
 0x53d   :  { %v692_v14 = vpop.xlane.xlu1 %691 }
 0x53e   :  { %13185 = vrcp.f32 %v692_v14 }
 0x541   :  { %v695_v15 = vpop.xlane.xlu1 %694 }
 0x542   :  { %13187 = vrcp.f32 %v695_v15 }
 0x545   :  { %v701_v16 = vpop.permute.xlu1 %700 }
 0x546   :  { %12391 = vmatpush3.msra.mxu0 %v701_v16 }
 0x547   :  { %12400 = vmatprep.subr.mxu0 %v13761_v24 }
 0x549   :  { %v1017_v19 = vpop.permute.xlu1 %1016 }
 0x54b   :  { %v13186_v17 = vpop.eup %13185 }
 0x54c   :  { %v698_v18 = vmul.f32 %v13186_v17, %v13182_v63 }
 0x54d   :  { %v1095_v22 = vpop.permute.xlu1 %1094 }
 0x54e   :  { %12393 = vmatmul.mubr.msk.f32.vlgmr.msra.gmra.mxu0 %vm192_vm2, %v698_v18 }
 0x54f   :  { %v13188_v20 = vpop.eup %13187  ;;  %12401 = vmatpush3.msra.mxu0 %v13761_v24 }
 0x550   :  { %v699_v21 = vmul.f32 %v13188_v20, %v13184_v9  ;;  %12410 = vmatprep.subr.mxu0 %v13498_v6 }
 0x551   :  { %v1093_v23 = vpop.permute.xlu1 %1092 }
 0x552   :  { %12398 = vmatmul.mubr.msk.f32.vlgmr.msra.gmra.mxu1 %vm192_vm2, %v699_v21 }
 0x553   :  { %12407 = vmatprep.mubr.msk.f32.mxu1 %vm192_vm2, %v440_v44  ;;  %12406 = vmatpush3.msra.mxu1 %v13740_v13 }
 0x554   :  { %12415 = vmatprep.subr.mxu1 %v13498_v6 }
 0x556   :  { %12408 = vmatmul.mubr.msk.f32.vlgmr.msra.gmra.mxu1 %vm192_vm2, %v516_v46 }
 0x557   :  { %12416 = vmatpush3.xpose.msk.msra.mxu1 %vm192_vm2, %v1095_v22  ;;  %12417 = vmatprep.mubr.msk.f32.mxu1 %vm13499_vm1, %v13498_v6 }
 0x558   :  { %12425 = vmatprep.subr.mxu1 %v13498_v6 }
 0x55a   :  { %12418 = vmatmul.mubr.msk.f32.vlgmr.msra.gmra.mxu1 %vm192_vm2, %v1093_v23 }
 0x55b   :  { %12427 = vmatprep.mubr.msk.f32.mxu1 %vm13499_vm1, %v13498_v6 }
 0x60e   :  { %v772_v25 = vpop.f32.mrf.mxu0 }
 0x60f   :  { %12402 = vmatprep.mubr.msk.f32.mxu0 %vm192_vm2, %v772_v25 }
 0x610   :  { %v12394_v26 = vpop.f32.mrf.mxu0 }
 0x612   :  { %v848_v27 = vpop.f32.mrf.mxu1 }
 0x613   :  { %12403 = vmatmul.mubr.msk.f32.vlgmr.msra.gmra.mxu0 %vm192_vm2, %v848_v27 }
 0x614   :  { %12411 = vmatpush3.xpose.msk.msra.mxu0 %vm192_vm2, %v1017_v19  ;;  %v12399_v28 = vpop.f32.mrf.mxu1  ;;  %12412 = vmatprep.mubr.msk.f32.mxu0 %vm13499_vm1, %v13498_v6 }
 0x615   :  { %12420 = vmatprep.subr.mxu0 %v13498_v6 }
 0x616   :  { %v13772_v30 = vpop.f32.mrf.mxu1 }
 0x617   :  { %12413 = vmatmul.mubr.msk.f32.vlgmr.msra.gmra.mxu0 %vm192_vm2, %v1015_v29 }
 0x618   :  { %v13775_v31 = vpop.f32.mrf.mxu1  ;;  %12422 = vmatprep.mubr.msk.f32.mxu0 %vm13499_vm1, %v13498_v6 }
 0x61a   :  { %v1166_v32 = vpop.f32.mrf.mxu1 }
 0x61b   :  { %v1171_v33 = vmul.f32 0.35355338, %v1166_v32 }
 0x61c   :  { %v12419_v34 = vpop.f32.mrf.mxu1 }
 0x61d   :  { %v1175_v35 = vsel %vm192_vm2, %v1171_v33, -inf }
 0x61e   :  { %1176 = vmax.xlane.f32.xlu1 %v1175_v35 }
 0x62f   :  { %1194 = vrot.lane.b32.xlu1 %v13668_v10, %s15341_s28 }
 0x633   :  { %1431 = vrot.lane.b32.xlu1 %v13668_v10, %s15339_s29 }
 0x637   :  { %1509 = vrot.lane.b32.xlu1 %v13673_v11, %s15339_s29  ;;  %s15372_s29 = smov 72  }
 0x63b   :  { %1507 = vrot.lane.b32.xlu1 %v13673_v11, %s15337_s0 }
 0x6a7   :  { %v1177_v36 = vpop.xlane.xlu1 %1176 }
 0x6a8   :  { %v1179_v38 = vsub.f32 %v1171_v33, %v1177_v36 }
 0x6aa   :  { %v1182_v39 = vmul.f32 1.442695, %v1179_v38 }
 0x6ab   :  { %v1195_v37 = vpop.permute.xlu1 %1194 }
 0x6ac   :  { %12421 = vmatpush3.msra.mxu0 %v1195_v37  ;;  %13189 = vpow2.f32 %v1182_v39 }
 0x6ad   :  { %12430 = vmatprep.subr.mxu0 %v13812_v62 }
 0x6af   :  { %v1432_v58 = vpop.permute.xlu1 %1431 }
 0x6b3   :  { %v1510_v16 = vpop.permute.xlu1 %1509 }
 0x6b7   :  { %v1508_v19 = vpop.permute.xlu1 %1507 }
 0x6b9   :  { %v13190_v46 = vpop.eup %13189 }
 0x6ba   :  { %v1187_v47 = vsel %vm192_vm2, %v13190_v46, 0.0 }
 0x6d3   :  { %v13788_v40 = vpop.f32.mrf.mxu0 }
 0x6d4   :  { %v1011_v26 = vadd.f32 %v13772_v30, %v13788_v40 }
 0x6d5   :  { %v13790_v41 = vpop.f32.mrf.mxu0 }
 0x6d7   :  { %v1088_v42 = vpop.f32.mrf.mxu0 }
 0x6d8   :  { %v1170_v43 = vmul.f32 0.35355338, %v1088_v42 }
 0x6d9   :  { %v12414_v44 = vpop.f32.mrf.mxu0 }
 0x6da   :  { %v1172_v45 = vsel %vm192_vm2, %v1170_v43, -inf }
 0x6db   :  { %1173 = vmax.xlane.f32.xlu0 %v1172_v45 }
 0x6df   :  { %1188 = vadd.xlane.f32.xlu0 %v1187_v47 }
 0x764   :  { %v1174_v48 = vpop.xlane.xlu0 %1173 }
 0x765   :  { %v1178_v49 = vsub.f32 %v1170_v43, %v1174_v48 }
 0x767   :  { %v1180_v50 = vmul.f32 1.442695, %v1178_v49 }
 0x768   :  { %v1189_v53 = vpop.xlane.xlu0 %1188 }
 0x769   :  { %13191 = vpow2.f32 %v1180_v50 }
 0x76a   :  { %13193 = vrcp.f32 %v1189_v53  ;;  %v13852_v53 = vld [vmem:[%s15317_s6] ss:$0 sm:$0xff] }
 0x776   :  { %v13192_v51 = vpop.eup %13191 }
 0x777   :  { %v1184_v52 = vsel %vm192_vm2, %v13192_v51, 0.0  ;;  %v13194_v55 = vpop.eup %13193 }
 0x778   :  { %1185 = vadd.xlane.f32.xlu0 %v1184_v52  ;;  %v1193_v57 = vmul.f32 %v13194_v55, %v13190_v46  ;;  %v1006_v52 = vadd.f32 %v13775_v31, %v13790_v41 }
 0x78e   :  { %1270 = vrot.lane.b32.xlu0 %v13673_v11, %s15341_s28 }
 0x792   :  { %1429 = vrot.lane.b32.xlu0 %v13668_v10, %s15337_s0  ;;  %s15373_s0 = smov 104  }
 0x801   :  { %v1186_v54 = vpop.xlane.xlu0 %1185 }
 0x802   :  { %13195 = vrcp.f32 %v1186_v54 }
 0x805   :  { %v1271_v56 = vpop.permute.xlu0 %1270 }
 0x806   :  { %12426 = vmatpush3.msra.mxu1 %v1271_v56 }
 0x807   :  { %12428 = vmatmul.mubr.msk.f32.vlgmr.msra.gmra.mxu1 %vm192_vm2, %v1193_v57  ;;  %12435 = vmatprep.subr.mxu1 %v13498_v6 }
 0x808   :  { %12436 = vmatpush3.xpose.msk.msra.mxu1 %vm192_vm2, %v1432_v58  ;;  %12437 = vmatprep.mubr.msk.f32.mxu1 %vm13499_vm1, %v13498_v6 }
 0x809   :  { %v1430_v59 = vpop.permute.xlu0 %1429  ;;  %12445 = vmatprep.subr.mxu1 %v13498_v6 }
 0x80b   :  { %12438 = vmatmul.mubr.msk.f32.vlgmr.msra.gmra.mxu1 %vm192_vm2, %v1430_v59 }
 0x80c   :  { %12447 = vmatprep.mubr.msk.f32.mxu1 %vm13499_vm1, %v13498_v6 }
 0x80f   :  { %v13196_v60 = vpop.eup %13195 }
 0x810   :  { %v1192_v61 = vmul.f32 %v13196_v60, %v13192_v51 }
 0x812   :  { %12423 = vmatmul.mubr.msk.f32.vlgmr.msra.gmra.mxu0 %vm192_vm2, %v1192_v61 }
 0x813   :  { %12431 = vmatpush3.msra.mxu0 %v13812_v62 }
 0x814   :  { %12440 = vmatprep.subr.mxu0 %v13498_v6 }
 0x8c7   :  { %v1342_v63 = vpop.f32.mrf.mxu1 }
 0x8c9   :  { %v12429_v7 = vpop.f32.mrf.mxu1 }
 0x8cb   :  { %v1503_v9 = vpop.f32.mrf.mxu1 }
 0x8cc   :  { %v1585_v12 = vmul.f32 0.35355338, %v1503_v9 }
 0x8cd   :  { %v12439_v14 = vpop.f32.mrf.mxu1 }
 0x8ce   :  { %v1587_v15 = vsel %vm192_vm2, %v1585_v12, -inf }
 0x8cf   :  { %1588 = vmax.xlane.f32.xlu0 %v1587_v15 }
 0x8d2   :  { %v1266_v17 = vpop.f32.mrf.mxu0 }
 0x8d3   :  { %12432 = vmatprep.mubr.msk.f32.mxu0 %vm192_vm2, %v1266_v17 }
 0x8d4   :  { %v12424_v18 = vpop.f32.mrf.mxu0  ;;  %12433 = vmatmul.mubr.msk.f32.vlgmr.msra.gmra.mxu0 %vm192_vm2, %v1342_v63 }
 0x8d5   :  { %12441 = vmatpush3.xpose.msk.msra.mxu0 %vm192_vm2, %v1510_v16  ;;  %12442 = vmatprep.mubr.msk.f32.mxu0 %vm13499_vm1, %v13498_v6 }
 0x8d6   :  { %12450 = vmatprep.subr.mxu0 %v13498_v6 }
 0x8d8   :  { %12443 = vmatmul.mubr.msk.f32.vlgmr.msra.gmra.mxu0 %vm192_vm2, %v1508_v19 }
 0x8d9   :  { %12452 = vmatprep.mubr.msk.f32.mxu0 %vm13499_vm1, %v13498_v6 }
 0x958   :  { %v1589_v20 = vpop.xlane.xlu0 %1588 }
 0x959   :  { %v1593_v21 = vsub.f32 %v1585_v12, %v1589_v20  ;;  %v13870_v20 = vld [vmem:[%s15322_s11 + $0x10] sm:$0xff] }
 0x95b   :  { %v1595_v22 = vmul.f32 1.442695, %v1593_v21  ;;  %v13877_v21 = vld [vmem:[%s15322_s11 + $0x8] sm:$0xff] }
 0x95d   :  { %13197 = vpow2.f32 %v1595_v22  ;;  %v13884_v22 = vld [vmem:[%s15322_s11] sm:$0xff] }
 0x96a   :  { %v13198_v23 = vpop.eup %13197 }
 0x96b   :  { %v1599_v25 = vsel %vm192_vm2, %v13198_v23, 0.0 }
 0x96c   :  { %1600 = vadd.xlane.f32.xlu0 %v1599_v25  ;;  %v13899_v25 = vld [vmem:[%s15324_s13 + $0x30] sm:$0xff] }
 0x994   :  { %v12434_v27 = vpop.f32.mrf.mxu0 }
 0x995   :  { %v1428_v28 = vadd.f32 %v12434_v27, %v1011_v26  ;;  %v13906_v26 = vld [vmem:[%s15324_s13 + $0x28] sm:$0xff]  ;;  %v13913_v27 = vld [vmem:[%s15324_s13 + $0x20] sm:$0xff] }
 0x996   :  { %v1418_v29 = vpop.f32.mrf.mxu0 }
 0x997   :  { %v1427_v55 = vadd.f32 %v1418_v29, %v1006_v52  ;;  %v11781_v52 = vld [vmem:[%s15325_s14] ss:$0 sm:$0xff] }
 0x998   :  { %v1581_v32 = vpop.f32.mrf.mxu0 }
 0x999   :  { %v1586_v33 = vmul.f32 0.35355338, %v1581_v32 }
 0x99a   :  { %v12444_v34 = vpop.f32.mrf.mxu0 }
 0x99b   :  { %v1590_v35 = vsel %vm192_vm2, %v1586_v33, -inf }
 0x99c   :  { %1591 = vmax.xlane.f32.xlu1 %v1590_v35 }
 0x9ad   :  { %1609 = vrot.lane.b32.xlu1 %v13668_v10, %s15335_s26  ;;  %v13840_v10 = vld [vmem:[%s15316_s5 + $0x18] sm:$0xff] }
 0x9f5   :  { %v1601_v36 = vpop.xlane.xlu0 %1600 }
 0x9f6   :  { %13199 = vrcp.f32 %v1601_v36 }
 0xa03   :  { %v13200_v38 = vpop.eup %13199 }
 0xa04   :  { %v1607_v40 = vmul.f32 %v13200_v38, %v13198_v23  ;;  %v13894_v23 = vld [vmem:[%s15324_s13 + $0x38] sm:$0xff] }
 0xa25   :  { %v1592_v37 = vpop.xlane.xlu1 %1591 }
 0xa26   :  { %v1594_v39 = vsub.f32 %v1586_v33, %v1592_v37  ;;  %v13922_v37 = vld [vmem:[%s15326_s15] ss:$0 sm:$0xff] }
 0xa28   :  { %v1597_v42 = vmul.f32 1.442695, %v1594_v39 }
 0xa29   :  { %v1610_v30 = vpop.permute.xlu1 %1609 }
 0xa2a   :  { %13201 = vpow2.f32 %v1597_v42  ;;  %12446 = vmatpush3.msra.mxu1 %v1610_v30 }
 0xa2b   :  { %12448 = vmatmul.mubr.msk.f32.vlgmr.msra.gmra.mxu1 %vm192_vm2, %v1607_v40  ;;  %12455 = vmatprep.subr.mxu1 %v13840_v10  ;;  %v13928_v40 = vld [vmem:[%s15327_s16] ss:$0 sm:$0xff] }
 0xa2c   :  { %12456 = vmatpush3.msra.mxu1 %v13840_v10 }
 0xa2d   :  { %12471 = vmatprep.subr.mxu1 %v13894_v23 }
 0xa37   :  { %v13202_v43 = vpop.eup %13201 }
 0xa38   :  { %v1602_v44 = vsel %vm192_vm2, %v13202_v43, 0.0 }
 0xa39   :  { %1603 = vadd.xlane.f32.xlu0 %v1602_v44 }
 0xa4f   :  { %1685 = vrot.lane.b32.xlu0 %v13673_v11, %s15335_s26  ;;  %s15374_s26 = smov 40  }
 0xac2   :  { %v1604_v45 = vpop.xlane.xlu0 %1603 }
 0xac3   :  { %13203 = vrcp.f32 %v1604_v45 }
 0xac6   :  { %v1686_v46 = vpop.permute.xlu0 %1685 }
 0xac7   :  { %12451 = vmatpush3.msra.mxu0 %v1686_v46  ;;  %v13946_v46 = vld [vmem:[%s15324_s13 + $0x18] sm:$0xff] }
 0xad0   :  { %v13204_v47 = vpop.eup %13203 }
 0xad1   :  { %v1608_v48 = vmul.f32 %v13204_v47, %v13202_v43 }
 0xad3   :  { %12453 = vmatmul.mubr.msk.f32.vlgmr.msra.gmra.mxu0 %vm192_vm2, %v1608_v48 }
 0xaeb   :  { %v1681_v49 = vpop.f32.mrf.mxu1 }
 0xaec   :  { %12457 = vmatprep.mubr.msk.f32.mxu1 %vm192_vm2, %v1681_v49 }
 0xaed   :  { %v12449_v11 = vpop.f32.mrf.mxu1 }
 0xb93   :  { %v1757_v50 = vpop.f32.mrf.mxu0 }
 0xb94   :  { %12458 = vmatmul.mubr.msk.f32.vlgmr.msra.gmra.mxu1 %vm192_vm2, %v1757_v50 }
 0xb95   :  { %v12454_v51 = vpop.f32.mrf.mxu0  ;;  %12472 = vmatpush3.msra.mxu1 %v13894_v23 }
 0xb96   :  { %12473 = vmatprep.subr.mxu1 %v13899_v25 }
 0xb97   :  { %12474 = vmatpush3.msra.mxu1 %v13899_v25 }
 0xb98   :  { %12475 = vmatprep.subr.mxu1 %v13906_v26 }
 0xb99   :  { %12476 = vmatpush3.msra.mxu1 %v13906_v26 }
 0xb9a   :  { %12477 = vmatprep.subr.mxu1 %v13913_v27 }
 0xb9b   :  { %12478 = vmatpush3.msra.mxu1 %v13913_v27 }
 0xb9c   :  { %12479 = vmatprep.subr.mxu1 %v13946_v46 }
 0xb9d   :  { %12480 = vmatpush3.msra.mxu1 %v13946_v46 }
 0xc54   :  { %v12459_v54 = vpop.f32.mrf.mxu1 }
 0xc55   :  { %v1843_v56 = vadd.f32 %v12459_v54, %v1428_v28 }
 0xc56   :  { %v1833_v57 = vpop.f32.mrf.mxu1 }
 0xc57   :  { %v1851_v58 = vadd.f32 %v13852_v53, %v1843_v56  ;;  %v1842_v59 = vadd.f32 %v1833_v57, %v1427_v55 }
 0xc59   :  { %v1850_v60 = vadd.f32 %v13852_v53, %v1842_v59  ;;  %v1853_v61 = vadd.f32 %v1851_v58, %v13650_v5 }
 0xc5b   :  { %v1857_v63 = vsel %vm107_vm0, %v1853_v61, 0.0  ;;  %v1852_v31 = vadd.f32 %v1850_v60, %v13628_v2  ;;  %v13865_v2 = vld [vmem:[%s15322_s11 + $0x18] sm:$0xff] }
 0xc5c   :  { %1858 = vadd.xlane.f32.xlu0 %v1857_v63  ;;  %12460 = vmatprep.subr.mxu0 %v13865_v2 }
 0xc5d   :  { %v1854_v41 = vsel %vm107_vm0, %v1852_v31, 0.0  ;;  %12461 = vmatpush3.msra.mxu0 %v13865_v2 }
 0xc5e   :  { %1855 = vadd.xlane.f32.xlu1 %v1854_v41  ;;  %12462 = vmatprep.subr.mxu0 %v13870_v20 }
 0xc5f   :  { %12463 = vmatpush3.msra.mxu0 %v13870_v20 }
 0xc60   :  { %12464 = vmatprep.subr.mxu0 %v13877_v21 }
 0xc61   :  { %12465 = vmatpush3.msra.mxu0 %v13877_v21 }
 0xc62   :  { %12466 = vmatprep.subr.mxu0 %v13884_v22 }
 0xc63   :  { %12467 = vmatpush3.msra.mxu0 %v13884_v22 }
 0xc64   :  { %12490 = vmatprep.subr.mxu0 %v13617_v0 }
 0xce5   :  { %v1859_v7 = vpop.xlane.xlu0 %1858 }
 0xce6   :  { %v1862_v9 = vmul.f32 0.03125, %v1859_v7 }
 0xce7   :  { %v1856_v12 = vpop.xlane.xlu1 %1855 }
 0xce8   :  { %v1864_v14 = vsub.f32 %v1853_v61, %v1862_v9  ;;  %v1861_v15 = vmul.f32 0.03125, %v1856_v12 }
 0xcea   :  { %v1863_v16 = vsub.f32 %v1852_v31, %v1861_v15  ;;  %v1866_v17 = vmul.f32 %v1864_v14, %v1864_v14 }
 0xcec   :  { %v1870_v18 = vsel %vm107_vm0, %v1866_v17, 0.0  ;;  %v1865_v19 = vmul.f32 %v1863_v16, %v1863_v16 }
 0xced   :  { %1871 = vadd.xlane.f32.xlu0 %v1870_v18 }
 0xcee   :  { %v1867_v5 = vsel %vm107_vm0, %v1865_v19, 0.0 }
 0xcef   :  { %1868 = vadd.xlane.f32.xlu1 %v1867_v5 }
 0xd76   :  { %v1872_v28 = vpop.xlane.xlu0 %1871 }
 0xd77   :  { %v1874_v29 = vmul.f32 0.03125, %v1872_v28 }
 0xd78   :  { %v1869_v32 = vpop.xlane.xlu1 %1868 }
 0xd79   :  { %v1876_v33 = vadd.f32 1e-05, %v1874_v29  ;;  %v1873_v34 = vmul.f32 0.03125, %v1869_v32 }
 0xd7b   :  { %13205 = vrsqrt.f32 %v1876_v33  ;;  %v1875_v35 = vadd.f32 1e-05, %v1873_v34 }
 0xd7d   :  { %13207 = vrsqrt.f32 %v1875_v35 }
 0xd88   :  { %v13206_v36 = vpop.eup %13205 }
 0xd89   :  { %v1880_v38 = vmul.f32 %v13206_v36, %v1864_v14 }
 0xd8a   :  { %v13208_v39 = vpop.eup %13207 }
 0xd8b   :  { %v1879_v42 = vmul.f32 %v13208_v39, %v1863_v16  ;;  %v1888_v30 = vmul.f32 %v13922_v37, %v1880_v38 }
 0xd8d   :  { %v1887_v43 = vmul.f32 %v13922_v37, %v1879_v42  ;;  %v1896_v45 = vadd.f32 %v13928_v40, %v1888_v30 }
 0xd8f   :  { %v1895_v44 = vadd.f32 %v13928_v40, %v1887_v43 }
 0xd91   :  { %12468 = vmatprep.mubr.msk.f32.mxu0 %vm107_vm0, %v1895_v44 }
 0xd92   :  { %12469 = vmatmul.mubr.msk.f32.vlgmr.msra.gmra.mxu0 %vm107_vm0, %v1896_v45 }
 0xd93   :  { %12491 = vmatpush3.msra.mxu0 %v13617_v0  ;;  %v13953_v0 = vld [vmem:[%s15324_s13 + $0x10] sm:$0xff] }
 0xd94   :  { %12492 = vmatprep.subr.mxu0 %v13622_v1  ;;  %12481 = vmatprep.subr.mxu1 %v13953_v0 }
 0xd95   :  { %12493 = vmatpush3.msra.mxu0 %v13622_v1  ;;  %12482 = vmatpush3.msra.mxu1 %v13953_v0  ;;  %v13960_v1 = vld [vmem:[%s15324_s13 + $0x8] sm:$0xff] }
 0xd96   :  { %12494 = vmatprep.subr.mxu0 %v13634_v3  ;;  %12483 = vmatprep.subr.mxu1 %v13960_v1 }
 0xd97   :  { %12495 = vmatpush3.msra.mxu0 %v13634_v3  ;;  %v13966_v3 = vld [vmem:[%s15324_s13] sm:$0xff]  ;;  %12484 = vmatpush3.msra.mxu1 %v13960_v1 }
 0xd98   :  { %12496 = vmatprep.subr.mxu0 %v13643_v4  ;;  %12485 = vmatprep.subr.mxu1 %v13966_v3 }
 0xd99   :  { %12497 = vmatpush3.msra.mxu0 %v13643_v4  ;;  %12486 = vmatpush3.msra.mxu1 %v13966_v3  ;;  %v13975_v4 = vld [vmem:[%s15323_s12] ss:$0 sm:$0xff] }
 0xd9a   :  { %12501 = vmatprep.subr.mxu0 %v13498_v6  ;;  %12506 = vmatprep.subr.mxu1 %v13498_v6 }
 0xe52   :  { %v12470_v47 = vpop.f32.mrf.mxu0 }
 0xe53   :  { %v1981_v48 = vadd.f32 %v12470_v47, %v13975_v4 }
 0xe54   :  { %v1975_v49 = vpop.f32.mrf.mxu0 }
 0xe55   :  { %v1976_v11 = vadd.f32 %v13975_v4, %v1975_v49  ;;  %v1985_v51 = vmax.f32 %v1981_v48, 0.0 }
 0xe57   :  { %v1984_v50 = vmax.f32 %v1976_v11, 0.0 }
 0xe59   :  { %12487 = vmatprep.mubr.msk.f32.mxu1 %vm1992_vm3, %v1984_v50 }
 0xe5a   :  { %12488 = vmatmul.mubr.msk.f32.vlgmr.msra.gmra.mxu1 %vm1992_vm3, %v1985_v51 }
 0xe5b   :  { %12508 = vmatprep.mubr.msk.f32.mxu1 %vm13499_vm1, %v13498_v6 }
 0xf1a   :  { %v12489_v54 = vpop.f32.mrf.mxu1 }
 0xf1b   :  { %v2071_v55 = vadd.f32 %v12489_v54, %v11781_v52 }
 0xf1c   :  { %v2065_v56 = vpop.f32.mrf.mxu1 }
 0xf1d   :  { %v2066_v57 = vadd.f32 %v11781_v52, %v2065_v56  ;;  %v2075_v58 = vadd.f32 %v2071_v55, %v1896_v45 }
 0xf1f   :  { %v2079_v59 = vsel %vm107_vm0, %v2075_v58, 0.0  ;;  %v2074_v60 = vadd.f32 %v2066_v57, %v1895_v44 }
 0xf20   :  { %2080 = vadd.xlane.f32.xlu0 %v2079_v59 }
 0xf21   :  { %v2076_v61 = vsel %vm107_vm0, %v2074_v60, 0.0 }
 0xf22   :  { %2077 = vadd.xlane.f32.xlu1 %v2076_v61 }
 0xfa9   :  { %v2081_v63 = vpop.xlane.xlu0 %2080 }
 0xfaa   :  { %v2083_v31 = vmul.f32 0.03125, %v2081_v63 }
 0xfab   :  { %v2078_v41 = vpop.xlane.xlu1 %2077 }
 0xfac   :  { %v2085_v7 = vsub.f32 %v2075_v58, %v2083_v31  ;;  %v2082_v9 = vmul.f32 0.03125, %v2078_v41 }
 0xfae   :  { %v2084_v12 = vsub.f32 %v2074_v60, %v2082_v9  ;;  %v2087_v14 = vmul.f32 %v2085_v7, %v2085_v7 }
 0xfb0   :  { %v2091_v15 = vsel %vm107_vm0, %v2087_v14, 0.0  ;;  %v2086_v16 = vmul.f32 %v2084_v12, %v2084_v12 }
 0xfb1   :  { %2092 = vadd.xlane.f32.xlu0 %v2091_v15 }
 0xfb2   :  { %v2088_v17 = vsel %vm107_vm0, %v2086_v16, 0.0 }
 0xfb3   :  { %2089 = vadd.xlane.f32.xlu1 %v2088_v17 }
0x103a   :  { %v2093_v18 = vpop.xlane.xlu0 %2092 }
0x103b   :  { %v2095_v19 = vmul.f32 0.03125, %v2093_v18 }
0x103c   :  { %v2090_v5 = vpop.xlane.xlu1 %2089 }
0x103d   :  { %v2097_v28 = vadd.f32 1e-05, %v2095_v19  ;;  %v2094_v29 = vmul.f32 0.03125, %v2090_v5 }
0x103f   :  { %13209 = vrsqrt.f32 %v2097_v28  ;;  %v2096_v32 = vadd.f32 1e-05, %v2094_v29 }
0x1041   :  { %13211 = vrsqrt.f32 %v2096_v32 }
0x104c   :  { %v13210_v33 = vpop.eup %13209 }
0x104d   :  { %v2101_v34 = vmul.f32 %v13210_v33, %v2085_v7 }
0x104e   :  { %v13212_v35 = vpop.eup %13211 }
0x104f   :  { %v2100_v36 = vmul.f32 %v13212_v35, %v2084_v12  ;;  %v2103_v38 = vmul.f32 %v13922_v37, %v2101_v34 }
0x1051   :  { %v2102_v39 = vmul.f32 %v13922_v37, %v2100_v36  ;;  %v13996_v30 = vadd.f32 %v13928_v40, %v2103_v38 }
0x1053   :  { %v13993_v42 = vadd.f32 %v13928_v40, %v2102_v39 }
0x1055   :  { %12498 = vmatprep.mubr.msk.f32.mxu0 %vm107_vm0, %v13993_v42 }
0x1056   :  { %12499 = vmatmul.mubr.msk.f32.vlgmr.msra.gmra.mxu0 %vm107_vm0, %v13996_v30 }
0x1057   :  { %12503 = vmatprep.mubr.msk.f32.mxu0 %vm13499_vm1, %v13498_v6 }
0x1116   :  { %v12500_v43 = vpop.f32.mrf.mxu0 }
0x1117   :  { %v14005_v44 = vadd.f32 %v12500_v43, %v13665_v8 }
0x1118   :  { %v2178_v45 = vpop.f32.mrf.mxu0 }
0x1119   :  { %v14008_v47 = vadd.f32 %v13665_v8, %v2178_v45  ;;  %2265 = vrot.lane.b32.xlu0 %v14005_v44, %s15355_s30 }
0x111b   :  { %2188 = vrot.lane.b32.xlu1 %v14008_v47, %s15355_s30 }
0x118b   :  { %v2266_v48 = vpop.permute.xlu0 %2265 }
0x118c   :  { %12507 = vmatpush3.xpose.msk.msra.mxu1 %vm192_vm2, %v2266_v48 }
0x118d   :  { %v2189_v49 = vpop.permute.xlu1 %2188  ;;  %12516 = vmatprep.subr.mxu1 %v13498_v6 }
0x118e   :  { %12502 = vmatpush3.xpose.msk.msra.mxu0 %vm192_vm2, %v2189_v49 }
0x118f   :  { %12509 = vmatmul.mubr.msk.f32.vlgmr.msra.gmra.mxu1 %vm192_vm2, %v14005_v44  ;;  %12511 = vmatprep.subr.mxu0 %v13498_v6 }
0x1190   :  { %12518 = vmatprep.mubr.msk.f32.mxu1 %vm13499_vm1, %v13498_v6 }
0x1191   :  { %12504 = vmatmul.mubr.msk.f32.vlgmr.msra.gmra.mxu0 %vm192_vm2, %v14008_v47 }
0x1192   :  { %12513 = vmatprep.mubr.msk.f32.mxu0 %vm13499_vm1, %v13498_v6 }
0x124f   :  { %v2337_v8 = vpop.f32.mrf.mxu1 }
0x1250   :  { %v2342_v11 = vmul.f32 0.35355338, %v2337_v8 }
0x1251   :  { %v2260_v50 = vpop.f32.mrf.mxu0  ;;  %v12510_v51 = vpop.f32.mrf.mxu1 }
0x1252   :  { %v2341_v52 = vmul.f32 0.35355338, %v2260_v50  ;;  %v2346_v54 = vsel %vm192_vm2, %v2342_v11, -inf }
0x1253   :  { %2347 = vmax.xlane.f32.xlu0 %v2346_v54  ;;  %v12505_v55 = vpop.f32.mrf.mxu0 }
0x1254   :  { %v2343_v56 = vsel %vm192_vm2, %v2341_v52, -inf }
0x1255   :  { %2344 = vmax.xlane.f32.xlu1 %v2343_v56 }
0x1266   :  { %2365 = vrot.lane.b32.xlu1 %v14008_v47, %s15349_s21 }
0x1269   :  { %2441 = vrot.lane.b32.xlu0 %v14005_v44, %s15349_s21 }
0x126a   :  { %2519 = vrot.lane.b32.xlu1 %v14008_v47, %s15351_s1 }
0x126e   :  { %2597 = vrot.lane.b32.xlu1 %v14005_v44, %s15351_s1 }
0x12dc   :  { %v2348_v57 = vpop.xlane.xlu0 %2347 }
0x12dd   :  { %v2350_v58 = vsub.f32 %v2342_v11, %v2348_v57 }
0x12de   :  { %v2345_v59 = vpop.xlane.xlu1 %2344 }
0x12df   :  { %v2353_v60 = vmul.f32 1.442695, %v2350_v58  ;;  %v2349_v61 = vsub.f32 %v2341_v52, %v2345_v59 }
0x12e0   :  { %v2442_v63 = vpop.permute.xlu0 %2441 }
0x12e1   :  { %13213 = vpow2.f32 %v2353_v60  ;;  %v2351_v31 = vmul.f32 1.442695, %v2349_v61  ;;  %12517 = vmatpush3.msra.mxu1 %v2442_v63 }
0x12e2   :  { %v2366_v41 = vpop.permute.xlu1 %2365  ;;  %12526 = vmatprep.subr.mxu1 %v13498_v6 }
0x12e3   :  { %13215 = vpow2.f32 %v2351_v31  ;;  %12512 = vmatpush3.msra.mxu0 %v2366_v41 }
0x12e4   :  { %12521 = vmatprep.subr.mxu0 %v13498_v6 }
0x12e6   :  { %v2520_v15 = vpop.permute.xlu1 %2519 }
0x12ea   :  { %v2598_v16 = vpop.permute.xlu1 %2597 }
0x12ee   :  { %v13214_v7 = vpop.eup %13213 }
0x12ef   :  { %v2358_v9 = vsel %vm192_vm2, %v13214_v7, 0.0 }
0x12f0   :  { %v13216_v12 = vpop.eup %13215  ;;  %2359 = vadd.xlane.f32.xlu0 %v2358_v9 }
0x12f1   :  { %v2355_v14 = vsel %vm192_vm2, %v13216_v12, 0.0 }
0x12f2   :  { %2356 = vadd.xlane.f32.xlu1 %v2355_v14 }
0x1303   :  { %2595 = vrot.lane.b32.xlu1 %v14005_v44, %s15353_s22 }
0x1306   :  { %2517 = vrot.lane.b32.xlu0 %v14008_v47, %s15353_s22 }
0x1379   :  { %v2360_v17 = vpop.xlane.xlu0 %2359 }
0x137a   :  { %13217 = vrcp.f32 %v2360_v17 }
0x137b   :  { %v2357_v18 = vpop.xlane.xlu1 %2356 }
0x137c   :  { %13219 = vrcp.f32 %v2357_v18 }
0x137d   :  { %v2518_v33 = vpop.permute.xlu0 %2517 }
0x137f   :  { %v2596_v32 = vpop.permute.xlu1 %2595 }
0x1387   :  { %v13218_v19 = vpop.eup %13217 }
0x1388   :  { %v2364_v5 = vmul.f32 %v13218_v19, %v13214_v7 }
0x1389   :  { %v13220_v28 = vpop.eup %13219 }
0x138a   :  { %12519 = vmatmul.mubr.msk.f32.vlgmr.msra.gmra.mxu1 %vm192_vm2, %v2364_v5  ;;  %v2363_v29 = vmul.f32 %v13220_v28, %v13216_v12 }
0x138b   :  { %12527 = vmatpush3.xpose.msk.msra.mxu1 %vm192_vm2, %v2598_v16  ;;  %12528 = vmatprep.mubr.msk.f32.mxu1 %vm13499_vm1, %v13498_v6 }
0x138c   :  { %12514 = vmatmul.mubr.msk.f32.vlgmr.msra.gmra.mxu0 %vm192_vm2, %v2363_v29  ;;  %12536 = vmatprep.subr.mxu1 %v13498_v6 }
0x138d   :  { %12522 = vmatpush3.xpose.msk.msra.mxu0 %vm192_vm2, %v2520_v15  ;;  %12523 = vmatprep.mubr.msk.f32.mxu0 %vm13499_vm1, %v13498_v6 }
0x138e   :  { %12529 = vmatmul.mubr.msk.f32.vlgmr.msra.gmra.mxu1 %vm192_vm2, %v2596_v32  ;;  %12531 = vmatprep.subr.mxu0 %v13498_v6 }
0x138f   :  { %12538 = vmatprep.mubr.msk.f32.mxu1 %vm13499_vm1, %v13498_v6 }
0x1390   :  { %12524 = vmatmul.mubr.msk.f32.vlgmr.msra.gmra.mxu0 %vm192_vm2, %v2518_v33 }
0x1391   :  { %12533 = vmatprep.mubr.msk.f32.mxu0 %vm13499_vm1, %v13498_v6 }
0x144a   :  { %v2513_v34 = vpop.f32.mrf.mxu1 }
0x144c   :  { %v2437_v35 = vpop.f32.mrf.mxu0  ;;  %v12520_v36 = vpop.f32.mrf.mxu1 }
0x144e   :  { %v12515_v38 = vpop.f32.mrf.mxu0  ;;  %v2669_v39 = vpop.f32.mrf.mxu1 }
0x144f   :  { %v2674_v43 = vmul.f32 0.35355338, %v2669_v39 }
0x1450   :  { %v2591_v45 = vpop.f32.mrf.mxu0  ;;  %v12530_v48 = vpop.f32.mrf.mxu1 }
0x1451   :  { %v2673_v49 = vmul.f32 0.35355338, %v2591_v45  ;;  %v2678_v8 = vsel %vm192_vm2, %v2674_v43, -inf }
0x1452   :  { %2679 = vmax.xlane.f32.xlu1 %v2678_v8  ;;  %v12525_v11 = vpop.f32.mrf.mxu0 }
0x1453   :  { %v2675_v50 = vsel %vm192_vm2, %v2673_v49, -inf }
0x1454   :  { %2676 = vmax.xlane.f32.xlu0 %v2675_v50 }
0x1463   :  { %2697 = vrot.lane.b32.xlu1 %v14008_v47, %s15347_s2 }
0x1467   :  { %3013 = vrot.lane.b32.xlu1 %v14008_v47, %s15345_s24 }
0x146b   :  { %3091 = vrot.lane.b32.xlu1 %v14005_v44, %s15345_s24 }
0x146f   :  { %3089 = vrot.lane.b32.xlu1 %v14005_v44, %s15343_s23 }
0x14db   :  { %v2680_v51 = vpop.xlane.xlu1 %2679 }
0x14dc   :  { %v2682_v52 = vsub.f32 %v2674_v43, %v2680_v51 }
0x14dd   :  { %v2677_v54 = vpop.xlane.xlu0 %2676 }
0x14de   :  { %v2685_v55 = vmul.f32 1.442695, %v2682_v52  ;;  %v2681_v56 = vsub.f32 %v2673_v49, %v2677_v54 }
0x14df   :  { %v2698_v57 = vpop.permute.xlu1 %2697 }
0x14e0   :  { %13221 = vpow2.f32 %v2685_v55  ;;  %v2683_v58 = vmul.f32 1.442695, %v2681_v56  ;;  %12532 = vmatpush3.msra.mxu0 %v2698_v57 }
0x14e1   :  { %12541 = vmatprep.subr.mxu0 %v13761_v24 }
0x14e2   :  { %13223 = vpow2.f32 %v2683_v58 }
0x14e3   :  { %v3014_v9 = vpop.permute.xlu1 %3013 }
0x14e7   :  { %v3092_v16 = vpop.permute.xlu1 %3091 }
0x14eb   :  { %v3090_v18 = vpop.permute.xlu1 %3089 }
0x14ed   :  { %v13222_v59 = vpop.eup %13221 }
0x14ee   :  { %v2690_v60 = vsel %vm192_vm2, %v13222_v59, 0.0 }
0x14ef   :  { %v13224_v61 = vpop.eup %13223  ;;  %2691 = vadd.xlane.f32.xlu0 %v2690_v60 }
0x14f0   :  { %v2687_v63 = vsel %vm192_vm2, %v13224_v61, 0.0 }
0x14f3   :  { %2688 = vadd.xlane.f32.xlu0 %v2687_v63 }
0x1509   :  { %2773 = vrot.lane.b32.xlu0 %v14005_v44, %s15347_s2  ;;  %s15379_s2 = smov 112  }
0x150d   :  { %3011 = vrot.lane.b32.xlu0 %v14008_v47, %s15343_s23  ;;  %s15377_s23 = smov 56  }
0x1578   :  { %v2692_v31 = vpop.xlane.xlu0 %2691 }
0x1579   :  { %13225 = vrcp.f32 %v2692_v31 }
0x157c   :  { %v2689_v41 = vpop.xlane.xlu0 %2688 }
0x157d   :  { %13227 = vrcp.f32 %v2689_v41 }
0x1580   :  { %v2774_v7 = vpop.permute.xlu0 %2773 }
0x1581   :  { %12537 = vmatpush3.msra.mxu1 %v2774_v7 }
0x1582   :  { %12546 = vmatprep.subr.mxu1 %v13740_v13 }
0x1584   :  { %v3012_v33 = vpop.permute.xlu0 %3011 }
0x1586   :  { %v13226_v12 = vpop.eup %13225 }
0x1587   :  { %v2696_v14 = vmul.f32 %v13226_v12, %v13222_v59 }
0x1589   :  { %12539 = vmatmul.mubr.msk.f32.vlgmr.msra.gmra.mxu1 %vm192_vm2, %v2696_v14 }
0x158a   :  { %v13228_v15 = vpop.eup %13227  ;;  %12548 = vmatprep.mubr.msk.f32.mxu1 %vm192_vm2, %v2437_v35  ;;  %12547 = vmatpush3.msra.mxu1 %v13740_v13 }
0x158b   :  { %12556 = vmatprep.subr.mxu1 %v13498_v6  ;;  %v2695_v17 = vmul.f32 %v13228_v15, %v13224_v61 }
0x158d   :  { %12534 = vmatmul.mubr.msk.f32.vlgmr.msra.gmra.mxu0 %vm192_vm2, %v2695_v17  ;;  %12549 = vmatmul.mubr.msk.f32.vlgmr.msra.gmra.mxu1 %vm192_vm2, %v2513_v34 }
0x158e   :  { %12557 = vmatpush3.xpose.msk.msra.mxu1 %vm192_vm2, %v3092_v16  ;;  %12558 = vmatprep.mubr.msk.f32.mxu1 %vm13499_vm1, %v13498_v6 }
0x158f   :  { %12542 = vmatpush3.msra.mxu0 %v13761_v24  ;;  %12566 = vmatprep.subr.mxu1 %v13498_v6 }
0x1590   :  { %12551 = vmatprep.subr.mxu0 %v13498_v6 }
0x1591   :  { %12559 = vmatmul.mubr.msk.f32.vlgmr.msra.gmra.mxu1 %vm192_vm2, %v3090_v18 }
0x1592   :  { %12568 = vmatprep.mubr.msk.f32.mxu1 %vm13499_vm1, %v13498_v6 }
0x1649   :  { %v2845_v13 = vpop.f32.mrf.mxu1 }
0x164b   :  { %v12540_v19 = vpop.f32.mrf.mxu1 }
0x164d   :  { %v2769_v5 = vpop.f32.mrf.mxu0  ;;  %v14093_v28 = vpop.f32.mrf.mxu1 }
0x164e   :  { %12543 = vmatprep.mubr.msk.f32.mxu0 %vm192_vm2, %v2769_v5 }
0x164f   :  { %v12535_v29 = vpop.f32.mrf.mxu0  ;;  %12544 = vmatmul.mubr.msk.f32.vlgmr.msra.gmra.mxu0 %vm192_vm2, %v2845_v13  ;;  %v14097_v24 = vpop.f32.mrf.mxu1 }
0x1650   :  { %12552 = vmatpush3.xpose.msk.msra.mxu0 %vm192_vm2, %v3014_v9  ;;  %12553 = vmatprep.mubr.msk.f32.mxu0 %vm13499_vm1, %v13498_v6 }
0x1651   :  { %v3163_v32 = vpop.f32.mrf.mxu1  ;;  %12561 = vmatprep.subr.mxu0 %v13498_v6 }
0x1652   :  { %v3168_v34 = vmul.f32 0.35355338, %v3163_v32 }
0x1653   :  { %12554 = vmatmul.mubr.msk.f32.vlgmr.msra.gmra.mxu0 %vm192_vm2, %v3012_v33  ;;  %v12560_v35 = vpop.f32.mrf.mxu1 }
0x1654   :  { %v3172_v36 = vsel %vm192_vm2, %v3168_v34, -inf  ;;  %12563 = vmatprep.mubr.msk.f32.mxu0 %vm13499_vm1, %v13498_v6 }
0x1655   :  { %3173 = vmax.xlane.f32.xlu1 %v3172_v36 }
0x1666   :  { %3191 = vrot.lane.b32.xlu1 %v14008_v47, %s15341_s28 }
0x166a   :  { %3428 = vrot.lane.b32.xlu1 %v14008_v47, %s15372_s29 }
0x166e   :  { %3506 = vrot.lane.b32.xlu1 %v14005_v44, %s15372_s29 }
0x1672   :  { %3504 = vrot.lane.b32.xlu1 %v14005_v44, %s15373_s0 }
0x16de   :  { %v3174_v38 = vpop.xlane.xlu1 %3173 }
0x16df   :  { %v3176_v43 = vsub.f32 %v3168_v34, %v3174_v38 }
0x16e1   :  { %v3179_v45 = vmul.f32 1.442695, %v3176_v43 }
0x16e2   :  { %v3192_v39 = vpop.permute.xlu1 %3191 }
0x16e3   :  { %12562 = vmatpush3.msra.mxu0 %v3192_v39  ;;  %13229 = vpow2.f32 %v3179_v45 }
0x16e4   :  { %12571 = vmatprep.subr.mxu0 %v13812_v62 }
0x16e6   :  { %v3429_v7 = vpop.permute.xlu1 %3428 }
0x16ea   :  { %v3507_v5 = vpop.permute.xlu1 %3506 }
0x16f0   :  { %v13230_v52 = vpop.eup %13229 }
0x16f1   :  { %v3184_v54 = vsel %vm192_vm2, %v13230_v52, 0.0 }
0x170f   :  { %v14116_v48 = vpop.f32.mrf.mxu0 }
0x1710   :  { %v3008_v39 = vadd.f32 %v14093_v28, %v14116_v48 }
0x1711   :  { %v14118_v49 = vpop.f32.mrf.mxu0 }
0x1712   :  { %v3003_v45 = vadd.f32 %v14097_v24, %v14118_v49 }
0x1713   :  { %v3085_v8 = vpop.f32.mrf.mxu0 }
0x1714   :  { %v3167_v11 = vmul.f32 0.35355338, %v3085_v8 }
0x1715   :  { %v12555_v50 = vpop.f32.mrf.mxu0 }
0x1716   :  { %v3169_v51 = vsel %vm192_vm2, %v3167_v11, -inf }
0x1717   :  { %3170 = vmax.xlane.f32.xlu0 %v3169_v51 }
0x171b   :  { %3185 = vadd.xlane.f32.xlu0 %v3184_v54 }
0x17a0   :  { %v3171_v55 = vpop.xlane.xlu0 %3170 }
0x17a1   :  { %v3175_v56 = vsub.f32 %v3167_v11, %v3171_v55 }
0x17a3   :  { %v3177_v57 = vmul.f32 1.442695, %v3175_v56 }
0x17a4   :  { %v3186_v60 = vpop.xlane.xlu0 %3185 }
0x17a5   :  { %13231 = vpow2.f32 %v3177_v57 }
0x17a6   :  { %13233 = vrcp.f32 %v3186_v60 }
0x17b2   :  { %v13232_v58 = vpop.eup %13231 }
0x17b3   :  { %v3181_v59 = vsel %vm192_vm2, %v13232_v58, 0.0  ;;  %v13234_v63 = vpop.eup %13233 }
0x17b4   :  { %3182 = vadd.xlane.f32.xlu0 %v3181_v59  ;;  %v3190_v41 = vmul.f32 %v13234_v63, %v13230_v52 }
0x17ca   :  { %3267 = vrot.lane.b32.xlu0 %v14005_v44, %s15341_s28  ;;  %s15378_s28 = smov 80  }
0x17ce   :  { %3426 = vrot.lane.b32.xlu0 %v14008_v47, %s15373_s0 }
0x183d   :  { %v3183_v61 = vpop.xlane.xlu0 %3182 }
0x183e   :  { %13235 = vrcp.f32 %v3183_v61 }
0x1841   :  { %v3268_v31 = vpop.permute.xlu0 %3267 }
0x1842   :  { %12567 = vmatpush3.msra.mxu1 %v3268_v31 }
0x1843   :  { %12569 = vmatmul.mubr.msk.f32.vlgmr.msra.gmra.mxu1 %vm192_vm2, %v3190_v41  ;;  %12576 = vmatprep.subr.mxu1 %v13498_v6 }
0x1844   :  { %12577 = vmatpush3.xpose.msk.msra.mxu1 %vm192_vm2, %v3429_v7  ;;  %12578 = vmatprep.mubr.msk.f32.mxu1 %vm13499_vm1, %v13498_v6 }
0x1845   :  { %v3427_v9 = vpop.permute.xlu0 %3426  ;;  %12586 = vmatprep.subr.mxu1 %v13498_v6 }
0x1847   :  { %12579 = vmatmul.mubr.msk.f32.vlgmr.msra.gmra.mxu1 %vm192_vm2, %v3427_v9 }
0x1848   :  { %12588 = vmatprep.mubr.msk.f32.mxu1 %vm13499_vm1, %v13498_v6 }
0x184b   :  { %v13236_v12 = vpop.eup %13235 }
0x184c   :  { %v3189_v14 = vmul.f32 %v13236_v12, %v13232_v58 }
0x184e   :  { %12564 = vmatmul.mubr.msk.f32.vlgmr.msra.gmra.mxu0 %vm192_vm2, %v3189_v14 }
0x184f   :  { %12572 = vmatpush3.msra.mxu0 %v13812_v62  ;;  %v3505_v62 = vpop.permute.xlu1 %3504 }
0x1850   :  { %12581 = vmatprep.subr.mxu0 %v13498_v6 }
0x1903   :  { %v3339_v15 = vpop.f32.mrf.mxu1 }
0x1905   :  { %v12570_v16 = vpop.f32.mrf.mxu1 }
0x1907   :  { %v3500_v17 = vpop.f32.mrf.mxu1 }
0x1908   :  { %v3582_v18 = vmul.f32 0.35355338, %v3500_v17 }
0x1909   :  { %v12580_v13 = vpop.f32.mrf.mxu1 }
0x190a   :  { %v3584_v19 = vsel %vm192_vm2, %v3582_v18, -inf }
0x190b   :  { %3585 = vmax.xlane.f32.xlu0 %v3584_v19 }
0x190e   :  { %v3263_v29 = vpop.f32.mrf.mxu0 }
0x190f   :  { %12573 = vmatprep.mubr.msk.f32.mxu0 %vm192_vm2, %v3263_v29 }
0x1910   :  { %v12565_v32 = vpop.f32.mrf.mxu0  ;;  %12574 = vmatmul.mubr.msk.f32.vlgmr.msra.gmra.mxu0 %vm192_vm2, %v3339_v15 }
0x1911   :  { %12582 = vmatpush3.xpose.msk.msra.mxu0 %vm192_vm2, %v3507_v5  ;;  %12583 = vmatprep.mubr.msk.f32.mxu0 %vm13499_vm1, %v13498_v6 }
0x1912   :  { %12591 = vmatprep.subr.mxu0 %v13498_v6 }
0x1914   :  { %12584 = vmatmul.mubr.msk.f32.vlgmr.msra.gmra.mxu0 %vm192_vm2, %v3505_v62 }
0x1915   :  { %12593 = vmatprep.mubr.msk.f32.mxu0 %vm13499_vm1, %v13498_v6 }
0x1994   :  { %v3586_v33 = vpop.xlane.xlu0 %3585 }
0x1995   :  { %v3590_v34 = vsub.f32 %v3582_v18, %v3586_v33 }
0x1997   :  { %v3592_v35 = vmul.f32 1.442695, %v3590_v34 }
0x1999   :  { %13237 = vpow2.f32 %v3592_v35 }
0x19a6   :  { %v13238_v36 = vpop.eup %13237 }
0x19a7   :  { %v3596_v38 = vsel %vm192_vm2, %v13238_v36, 0.0 }
0x19a8   :  { %3597 = vadd.xlane.f32.xlu0 %v3596_v38 }
0x19d0   :  { %v12575_v43 = vpop.f32.mrf.mxu0 }
0x19d1   :  { %v14154_v8 = vadd.f32 %v12575_v43, %v3008_v39 }
0x19d2   :  { %v3415_v11 = vpop.f32.mrf.mxu0 }
0x19d3   :  { %v14156_v50 = vadd.f32 %v3415_v11, %v3003_v45  ;;  %v14219_v45 = vld [vmem:[%s15375_s25] sm:$0xff]  ;;  %v14239_v11 = vld [vmem:[%s15375_s25 + $0x8] sm:$0xff]  ;;  %s15380_s25 = smov 48  }
0x19d4   :  { %v3578_v51 = vpop.f32.mrf.mxu0 }
0x19d5   :  { %v3583_v52 = vmul.f32 0.35355338, %v3578_v51 }
0x19d6   :  { %v12585_v54 = vpop.f32.mrf.mxu0 }
0x19d7   :  { %v3587_v55 = vsel %vm192_vm2, %v3583_v52, -inf }
0x19d8   :  { %3588 = vmax.xlane.f32.xlu1 %v3587_v55 }
0x19e9   :  { %3606 = vrot.lane.b32.xlu1 %v14008_v47, %s15374_s26 }
0x1a31   :  { %v3598_v56 = vpop.xlane.xlu0 %3597 }
0x1a32   :  { %13239 = vrcp.f32 %v3598_v56 }
0x1a3f   :  { %v13240_v48 = vpop.eup %13239 }
0x1a40   :  { %v3604_v58 = vmul.f32 %v13240_v48, %v13238_v36 }
0x1a61   :  { %v3589_v28 = vpop.xlane.xlu1 %3588 }
0x1a62   :  { %v3591_v57 = vsub.f32 %v3583_v52, %v3589_v28  ;;  %v11822_v28 = vld [vmem:[%s15319_s8] ss:$0 sm:$0xff] }
0x1a64   :  { %v3594_v24 = vmul.f32 1.442695, %v3591_v57 }
0x1a65   :  { %v3607_v49 = vpop.permute.xlu1 %3606 }
0x1a66   :  { %13241 = vpow2.f32 %v3594_v24  ;;  %12587 = vmatpush3.msra.mxu1 %v3607_v49 }
0x1a67   :  { %12589 = vmatmul.mubr.msk.f32.vlgmr.msra.gmra.mxu1 %vm192_vm2, %v3604_v58  ;;  %12596 = vmatprep.subr.mxu1 %v13840_v10 }
0x1a68   :  { %12597 = vmatpush3.msra.mxu1 %v13840_v10 }
0x1a69   :  { %12612 = vmatprep.subr.mxu1 %v13894_v23 }
0x1a73   :  { %v13242_v59 = vpop.eup %13241 }
0x1a74   :  { %v3599_v47 = vsel %vm192_vm2, %v13242_v59, 0.0 }
0x1a75   :  { %3600 = vadd.xlane.f32.xlu0 %v3599_v47 }
0x1a8b   :  { %3682 = vrot.lane.b32.xlu0 %v14005_v44, %s15374_s26 }
0x1afe   :  { %v3601_v60 = vpop.xlane.xlu0 %3600 }
0x1aff   :  { %13243 = vrcp.f32 %v3601_v60 }
0x1b02   :  { %v3683_v61 = vpop.permute.xlu0 %3682 }
0x1b03   :  { %12592 = vmatpush3.msra.mxu0 %v3683_v61  ;;  %v14282_v61 = vld [vmem:[%s15376_s27] sm:$0xff] }
0x1b04   :  { %12601 = vmatprep.subr.mxu0 %v13865_v2 }
0x1b0c   :  { %v13244_v63 = vpop.eup %13243 }
0x1b0d   :  { %v3605_v31 = vmul.f32 %v13244_v63, %v13242_v59 }
0x1b0f   :  { %12594 = vmatmul.mubr.msk.f32.vlgmr.msra.gmra.mxu0 %vm192_vm2, %v3605_v31 }
0x1b10   :  { %12602 = vmatpush3.msra.mxu0 %v13865_v2 }
0x1b11   :  { %12603 = vmatprep.subr.mxu0 %v13870_v20 }
0x1b12   :  { %12604 = vmatpush3.msra.mxu0 %v13870_v20 }
0x1b13   :  { %12605 = vmatprep.subr.mxu0 %v13877_v21 }
0x1b14   :  { %12606 = vmatpush3.msra.mxu0 %v13877_v21 }
0x1b15   :  { %12607 = vmatprep.subr.mxu0 %v13884_v22 }
0x1b16   :  { %12608 = vmatpush3.msra.mxu0 %v13884_v22 }
0x1b27   :  { %v3678_v10 = vpop.f32.mrf.mxu1 }
0x1b28   :  { %12598 = vmatprep.mubr.msk.f32.mxu1 %vm192_vm2, %v3678_v10 }
0x1b29   :  { %v12590_v44 = vpop.f32.mrf.mxu1 }
0x1bcf   :  { %v3754_v41 = vpop.f32.mrf.mxu0 }
0x1bd0   :  { %12599 = vmatmul.mubr.msk.f32.vlgmr.msra.gmra.mxu1 %vm192_vm2, %v3754_v41 }
0x1bd1   :  { %v12595_v2 = vpop.f32.mrf.mxu0  ;;  %12613 = vmatpush3.msra.mxu1 %v13894_v23 }
0x1bd2   :  { %12614 = vmatprep.subr.mxu1 %v13899_v25 }
0x1bd3   :  { %12615 = vmatpush3.msra.mxu1 %v13899_v25 }
0x1bd4   :  { %12616 = vmatprep.subr.mxu1 %v13906_v26 }
0x1bd5   :  { %12617 = vmatpush3.msra.mxu1 %v13906_v26 }
0x1bd6   :  { %12618 = vmatprep.subr.mxu1 %v13913_v27 }
0x1bd7   :  { %12619 = vmatpush3.msra.mxu1 %v13913_v27 }
0x1bd8   :  { %12620 = vmatprep.subr.mxu1 %v13946_v46 }
0x1bd9   :  { %12621 = vmatpush3.msra.mxu1 %v13946_v46 }
0x1bda   :  { %12622 = vmatprep.subr.mxu1 %v13953_v0 }
0x1bdb   :  { %12623 = vmatpush3.msra.mxu1 %v13953_v0 }
0x1bdc   :  { %12624 = vmatprep.subr.mxu1 %v13960_v1 }
0x1bdd   :  { %12625 = vmatpush3.msra.mxu1 %v13960_v1 }
0x1bde   :  { %12626 = vmatprep.subr.mxu1 %v13966_v3 }
0x1bdf   :  { %12627 = vmatpush3.msra.mxu1 %v13966_v3 }
0x1be0   :  { %12647 = vmatprep.subr.mxu1 %v13498_v6 }
0x1c90   :  { %v12600_v20 = vpop.f32.mrf.mxu1 }
0x1c91   :  { %v3840_v21 = vadd.f32 %v12600_v20, %v14154_v8  ;;  %v91_v8 = vld [vmem:[%s15318_s7 + $0x10] sm:$0xff] }
0x1c92   :  { %v3830_v22 = vpop.f32.mrf.mxu1 }
0x1c93   :  { %v3842_v23 = vadd.f32 %v13852_v53, %v3840_v21  ;;  %v3839_v25 = vadd.f32 %v3830_v22, %v14156_v50 }
0x1c95   :  { %v3841_v26 = vadd.f32 %v13852_v53, %v3839_v25  ;;  %v3844_v27 = vadd.f32 %v3842_v23, %v13996_v30 }
0x1c97   :  { %v3848_v46 = vsel %vm107_vm0, %v3844_v27, 0.0  ;;  %v3843_v0 = vadd.f32 %v3841_v26, %v13993_v42  ;;  %v92_v42 = vld [vmem:[%s15318_s7 + $0x18] sm:$0xff] }
0x1c98   :  { %3849 = vadd.xlane.f32.xlu0 %v3848_v46  ;;  %12631 = vmatprep.subr.mxu0 %v92_v42 }
0x1c99   :  { %v3845_v1 = vsel %vm107_vm0, %v3843_v0, 0.0 }
0x1c9a   :  { %3846 = vadd.xlane.f32.xlu1 %v3845_v1 }
0x1d21   :  { %v3850_v3 = vpop.xlane.xlu0 %3849 }
0x1d22   :  { %v3852_v7 = vmul.f32 0.03125, %v3850_v3 }
0x1d23   :  { %v3847_v9 = vpop.xlane.xlu1 %3846 }
0x1d24   :  { %v3854_v12 = vsub.f32 %v3844_v27, %v3852_v7  ;;  %v3851_v14 = vmul.f32 0.03125, %v3847_v9 }
0x1d26   :  { %v3853_v15 = vsub.f32 %v3843_v0, %v3851_v14  ;;  %v3856_v16 = vmul.f32 %v3854_v12, %v3854_v12 }
0x1d28   :  { %v3860_v17 = vsel %vm107_vm0, %v3856_v16, 0.0  ;;  %v3855_v53 = vmul.f32 %v3853_v15, %v3853_v15 }
0x1d29   :  { %3861 = vadd.xlane.f32.xlu0 %v3860_v17 }
0x1d2a   :  { %v3857_v30 = vsel %vm107_vm0, %v3855_v53, 0.0 }
0x1d2b   :  { %3858 = vadd.xlane.f32.xlu1 %v3857_v30 }
0x1db2   :  { %v3862_v18 = vpop.xlane.xlu0 %3861 }
0x1db3   :  { %v3864_v13 = vmul.f32 0.03125, %v3862_v18 }
0x1db4   :  { %v3859_v19 = vpop.xlane.xlu1 %3858 }
0x1db5   :  { %v3866_v5 = vadd.f32 1e-05, %v3864_v13  ;;  %v3863_v29 = vmul.f32 0.03125, %v3859_v19 }
0x1db7   :  { %13245 = vrsqrt.f32 %v3866_v5  ;;  %v3865_v32 = vadd.f32 1e-05, %v3863_v29 }
0x1db9   :  { %13247 = vrsqrt.f32 %v3865_v32 }
0x1dc4   :  { %v13246_v62 = vpop.eup %13245 }
0x1dc5   :  { %v3870_v33 = vmul.f32 %v13246_v62, %v3854_v12 }
0x1dc6   :  { %v13248_v34 = vpop.eup %13247 }
0x1dc7   :  { %v3869_v35 = vmul.f32 %v13248_v34, %v3853_v15  ;;  %v3872_v36 = vmul.f32 %v13922_v37, %v3870_v33 }
0x1dc9   :  { %v3871_v38 = vmul.f32 %v13922_v37, %v3869_v35  ;;  %v14214_v43 = vadd.f32 %v13928_v40, %v3872_v36  ;;  %v90_v37 = vld [vmem:[%s15318_s7 + $0x8] sm:$0xff] }
0x1dcb   :  { %v14211_v39 = vadd.f32 %v13928_v40, %v3871_v38  ;;  %v89_v40 = vld [vmem:[%s15318_s7] sm:$0xff] }
0x1dcd   :  { %12609 = vmatprep.mubr.msk.f32.mxu0 %vm107_vm0, %v14211_v39 }
0x1dce   :  { %12610 = vmatmul.mubr.msk.f32.vlgmr.msra.gmra.mxu0 %vm107_vm0, %v14214_v43 }
0x1dcf   :  { %12632 = vmatpush3.msra.mxu0 %v92_v42  ;;  %12639 = vmatprep.mubr.msk.f32.mxu0 %vm107_vm0, %v14219_v45 }
0x1dd0   :  { %12633 = vmatprep.subr.mxu0 %v91_v8 }
0x1dd1   :  { %12634 = vmatpush3.msra.mxu0 %v91_v8 }
0x1dd2   :  { %12635 = vmatprep.subr.mxu0 %v90_v37 }
0x1dd3   :  { %12636 = vmatpush3.msra.mxu0 %v90_v37 }
0x1dd4   :  { %12637 = vmatprep.subr.mxu0 %v89_v40 }
0x1dd5   :  { %12638 = vmatpush3.msra.mxu0 %v89_v40 }
0x1dd6   :  { %12640 = vmatmul.mubr.msk.f32.vlgmr.msra.gmra.mxu0 %vm107_vm0, %v14239_v11  ;;  %12642 = vmatprep.subr.mxu0 %v13498_v6 }
0x1dd7   :  { %12644 = vmatprep.mubr.msk.f32.mxu0 %vm13499_vm1, %v13498_v6 }
0x1e8e   :  { %v12611_v50 = vpop.f32.mrf.mxu0 }
0x1e8f   :  { %v3953_v51 = vadd.f32 %v12611_v50, %v13975_v4 }
0x1e90   :  { %v3947_v52 = vpop.f32.mrf.mxu0 }
0x1e91   :  { %v3948_v54 = vadd.f32 %v13975_v4, %v3947_v52  ;;  %v3957_v56 = vmax.f32 %v3953_v51, 0.0 }
0x1e93   :  { %v3956_v55 = vmax.f32 %v3948_v54, 0.0 }
0x1e95   :  { %12628 = vmatprep.mubr.msk.f32.mxu1 %vm1992_vm3, %v3956_v55 }
0x1e96   :  { %v12641_v48 = vpop.f32.mrf.mxu0  ;;  %12629 = vmatmul.mubr.msk.f32.vlgmr.msra.gmra.mxu1 %vm1992_vm3, %v3957_v56 }
0x1e97   :  { %v14253_v57 = vadd.f32 %v12641_v48, %v11822_v28  ;;  %12649 = vmatprep.mubr.msk.f32.mxu1 %vm13499_vm1, %v13498_v6 }
0x1e98   :  { %v4152_v24 = vpop.f32.mrf.mxu0 }
0x1e99   :  { %v14257_v49 = vadd.f32 %v11822_v28, %v4152_v24  ;;  %4239 = vrot.lane.b32.xlu0 %v14253_v57, %s15355_s30 }
0x1e9b   :  { %4162 = vrot.lane.b32.xlu1 %v14257_v49, %s15355_s30 }
0x1f0b   :  { %v4240_v4 = vpop.permute.xlu0 %4239 }
0x1f0c   :  { %12648 = vmatpush3.xpose.msk.msra.mxu1 %vm192_vm2, %v4240_v4 }
0x1f0d   :  { %v4163_v58 = vpop.permute.xlu1 %4162  ;;  %12657 = vmatprep.subr.mxu1 %v13498_v6 }
0x1f0e   :  { %12643 = vmatpush3.xpose.msk.msra.mxu0 %vm192_vm2, %v4163_v58 }
0x1f0f   :  { %12650 = vmatmul.mubr.msk.f32.vlgmr.msra.gmra.mxu1 %vm192_vm2, %v14253_v57  ;;  %12652 = vmatprep.subr.mxu0 %v13498_v6 }
0x1f10   :  { %12659 = vmatprep.mubr.msk.f32.mxu1 %vm13499_vm1, %v13498_v6 }
0x1f11   :  { %12645 = vmatmul.mubr.msk.f32.vlgmr.msra.gmra.mxu0 %vm192_vm2, %v14257_v49 }
0x1f12   :  { %12654 = vmatprep.mubr.msk.f32.mxu0 %vm13499_vm1, %v13498_v6 }
0x1f56   :  { %v14275_v59 = vpop.f32.mrf.mxu1 }
0x1f58   :  { %v14277_v47 = vpop.f32.mrf.mxu1 }
0x1fcf   :  { %v4311_v60 = vpop.f32.mrf.mxu1 }
0x1fd0   :  { %v4316_v63 = vmul.f32 0.35355338, %v4311_v60 }
0x1fd1   :  { %v4234_v31 = vpop.f32.mrf.mxu0  ;;  %v12651_v10 = vpop.f32.mrf.mxu1 }
0x1fd2   :  { %v4315_v44 = vmul.f32 0.35355338, %v4234_v31  ;;  %v4318_v41 = vadd.f32 %v4316_v63, %v14282_v61 }
0x1fd3   :  { %v12646_v2 = vpop.f32.mrf.mxu0 }
0x1fd4   :  { %v4322_v20 = vsel %vm192_vm2, %v4318_v41, -inf  ;;  %v4317_v21 = vadd.f32 %v4315_v44, %v14282_v61 }
0x1fd5   :  { %4323 = vmax.xlane.f32.xlu0 %v4322_v20 }
0x1fd6   :  { %v4319_v22 = vsel %vm192_vm2, %v4317_v21, -inf }
0x1fd7   :  { %4320 = vmax.xlane.f32.xlu1 %v4319_v22 }
0x1fe8   :  { %4341 = vrot.lane.b32.xlu1 %v14257_v49, %s15349_s21 }
0x1feb   :  { %4417 = vrot.lane.b32.xlu0 %v14253_v57, %s15349_s21  ;;  %s15382_s21 = smov 120  }
0x1fec   :  { %4495 = vrot.lane.b32.xlu1 %v14257_v49, %s15351_s1 }
0x1ff0   :  { %4573 = vrot.lane.b32.xlu1 %v14253_v57, %s15351_s1  ;;  %s15383_s1 = smov 88  }
0x205e   :  { %v4324_v23 = vpop.xlane.xlu0 %4323 }
0x205f   :  { %v4326_v25 = vsub.f32 %v4318_v41, %v4324_v23  ;;  %v94_v41 = vld [vmem:[%s15320_s9] sm:$0xff] }
0x2060   :  { %v4321_v26 = vpop.xlane.xlu1 %4320 }
0x2061   :  { %v4329_v27 = vmul.f32 1.442695, %v4326_v25  ;;  %v4325_v46 = vsub.f32 %v4317_v21, %v4321_v26 }
0x2062   :  { %v4418_v0 = vpop.permute.xlu0 %4417 }
0x2063   :  { %13249 = vpow2.f32 %v4329_v27  ;;  %v4327_v1 = vmul.f32 1.442695, %v4325_v46  ;;  %12658 = vmatpush3.msra.mxu1 %v4418_v0  ;;  %v95_v46 = vld [vmem:[%s15320_s9 + $0x8] sm:$0xff] }
0x2064   :  { %v4342_v3 = vpop.permute.xlu1 %4341  ;;  %12667 = vmatprep.subr.mxu1 %v13498_v6 }
0x2065   :  { %13251 = vpow2.f32 %v4327_v1  ;;  %12653 = vmatpush3.msra.mxu0 %v4342_v3 }
0x2066   :  { %12662 = vmatprep.subr.mxu0 %v13498_v6 }
0x2068   :  { %v4496_v15 = vpop.permute.xlu1 %4495 }
0x206c   :  { %v4574_v16 = vpop.permute.xlu1 %4573 }
0x2070   :  { %v13250_v7 = vpop.eup %13249 }
0x2071   :  { %v4334_v9 = vsel %vm192_vm2, %v13250_v7, 0.0 }
0x2072   :  { %v13252_v12 = vpop.eup %13251  ;;  %4335 = vadd.xlane.f32.xlu0 %v4334_v9 }
0x2073   :  { %v4331_v14 = vsel %vm192_vm2, %v13252_v12, 0.0 }
0x2074   :  { %4332 = vadd.xlane.f32.xlu1 %v4331_v14 }
0x2085   :  { %4571 = vrot.lane.b32.xlu1 %v14253_v57, %s15353_s22 }
0x2088   :  { %4493 = vrot.lane.b32.xlu0 %v14257_v49, %s15353_s22 }
0x20fb   :  { %v4336_v17 = vpop.xlane.xlu0 %4335 }
0x20fc   :  { %13253 = vrcp.f32 %v4336_v17 }
0x20fd   :  { %v4333_v53 = vpop.xlane.xlu1 %4332 }
0x20fe   :  { %13255 = vrcp.f32 %v4333_v53 }
0x20ff   :  { %v4494_v5 = vpop.permute.xlu0 %4493 }
0x2101   :  { %v4572_v19 = vpop.permute.xlu1 %4571 }
0x2109   :  { %v13254_v30 = vpop.eup %13253 }
0x210a   :  { %v4340_v42 = vmul.f32 %v13254_v30, %v13250_v7 }
0x210b   :  { %v13256_v18 = vpop.eup %13255 }
0x210c   :  { %12660 = vmatmul.mubr.msk.f32.vlgmr.msra.gmra.mxu1 %vm192_vm2, %v4340_v42  ;;  %v4339_v13 = vmul.f32 %v13256_v18, %v13252_v12 }
0x210d   :  { %12668 = vmatpush3.xpose.msk.msra.mxu1 %vm192_vm2, %v4574_v16  ;;  %12669 = vmatprep.mubr.msk.f32.mxu1 %vm13499_vm1, %v13498_v6 }
0x210e   :  { %12655 = vmatmul.mubr.msk.f32.vlgmr.msra.gmra.mxu0 %vm192_vm2, %v4339_v13  ;;  %12677 = vmatprep.subr.mxu1 %v13498_v6 }
0x210f   :  { %12663 = vmatpush3.xpose.msk.msra.mxu0 %vm192_vm2, %v4496_v15  ;;  %12664 = vmatprep.mubr.msk.f32.mxu0 %vm13499_vm1, %v13498_v6 }
0x2110   :  { %12670 = vmatmul.mubr.msk.f32.vlgmr.msra.gmra.mxu1 %vm192_vm2, %v4572_v19  ;;  %12672 = vmatprep.subr.mxu0 %v13498_v6 }
0x2111   :  { %12679 = vmatprep.mubr.msk.f32.mxu1 %vm13499_vm1, %v13498_v6 }
0x2112   :  { %12665 = vmatmul.mubr.msk.f32.vlgmr.msra.gmra.mxu0 %vm192_vm2, %v4494_v5 }
0x2113   :  { %12674 = vmatprep.mubr.msk.f32.mxu0 %vm13499_vm1, %v13498_v6 }
0x21cc   :  { %v4489_v29 = vpop.f32.mrf.mxu1 }
0x21ce   :  { %v4413_v32 = vpop.f32.mrf.mxu0  ;;  %v12661_v62 = vpop.f32.mrf.mxu1 }
0x21d0   :  { %v12656_v33 = vpop.f32.mrf.mxu0  ;;  %v4645_v34 = vpop.f32.mrf.mxu1 }
0x21d1   :  { %v4650_v35 = vmul.f32 0.35355338, %v4645_v34 }
0x21d2   :  { %v4567_v36 = vpop.f32.mrf.mxu0  ;;  %v12671_v38 = vpop.f32.mrf.mxu1 }
0x21d3   :  { %v4652_v8 = vadd.f32 %v4650_v35, %v14282_v61  ;;  %v4649_v37 = vmul.f32 0.35355338, %v4567_v36 }
0x21d4   :  { %v12666_v40 = vpop.f32.mrf.mxu0 }
0x21d5   :  { %v4656_v50 = vsel %vm192_vm2, %v4652_v8, -inf  ;;  %v4651_v51 = vadd.f32 %v4649_v37, %v14282_v61 }
0x21d6   :  { %4657 = vmax.xlane.f32.xlu1 %v4656_v50 }
0x21d7   :  { %v4653_v52 = vsel %vm192_vm2, %v4651_v51, -inf }
0x21d8   :  { %4654 = vmax.xlane.f32.xlu0 %v4653_v52 }
0x21e7   :  { %4675 = vrot.lane.b32.xlu1 %v14257_v49, %s15377_s23 }
0x21eb   :  { %4991 = vrot.lane.b32.xlu1 %v14257_v49, %s15378_s28 }
0x21ef   :  { %5069 = vrot.lane.b32.xlu1 %v14253_v57, %s15378_s28 }
0x21f3   :  { %5067 = vrot.lane.b32.xlu1 %v14253_v57, %s15379_s2 }
0x225f   :  { %v4658_v54 = vpop.xlane.xlu1 %4657 }
0x2260   :  { %v4660_v55 = vsub.f32 %v4652_v8, %v4658_v54 }
0x2261   :  { %v4655_v56 = vpop.xlane.xlu0 %4654 }
0x2262   :  { %v4663_v28 = vmul.f32 1.442695, %v4660_v55  ;;  %v4659_v48 = vsub.f32 %v4651_v51, %v4655_v56 }
0x2263   :  { %v4676_v24 = vpop.permute.xlu1 %4675 }
0x2264   :  { %13257 = vpow2.f32 %v4663_v28  ;;  %v4661_v4 = vmul.f32 1.442695, %v4659_v48  ;;  %12673 = vmatpush3.msra.mxu0 %v4676_v24 }
0x2265   :  { %12682 = vmatprep.subr.mxu0 %v95_v46 }
0x2266   :  { %13259 = vpow2.f32 %v4661_v4 }
0x2267   :  { %v4992_v20 = vpop.permute.xlu1 %4991 }
0x226b   :  { %v5070_v25 = vpop.permute.xlu1 %5069 }
0x226f   :  { %v5068_v27 = vpop.permute.xlu1 %5067 }
0x2271   :  { %v13258_v58 = vpop.eup %13257 }
0x2272   :  { %v4668_v60 = vsel %vm192_vm2, %v13258_v58, 0.0 }
0x2273   :  { %v13260_v63 = vpop.eup %13259  ;;  %4669 = vadd.xlane.f32.xlu0 %v4668_v60  ;;  %v96_v60 = vld [vmem:[%s15320_s9 + $0x10] sm:$0xff] }
0x2274   :  { %v4665_v31 = vsel %vm192_vm2, %v13260_v63, 0.0 }
0x2277   :  { %4666 = vadd.xlane.f32.xlu0 %v4665_v31 }
0x228d   :  { %4751 = vrot.lane.b32.xlu0 %v14253_v57, %s15377_s23 }
0x2291   :  { %4989 = vrot.lane.b32.xlu0 %v14257_v49, %s15379_s2 }
0x22fc   :  { %v4670_v10 = vpop.xlane.xlu0 %4669 }
0x22fd   :  { %13261 = vrcp.f32 %v4670_v10 }
0x2300   :  { %v4667_v44 = vpop.xlane.xlu0 %4666 }
0x2301   :  { %13263 = vrcp.f32 %v4667_v44 }
0x2304   :  { %v4752_v2 = vpop.permute.xlu0 %4751 }
0x2305   :  { %12678 = vmatpush3.msra.mxu1 %v4752_v2 }
0x2306   :  { %12687 = vmatprep.subr.mxu1 %v94_v41 }
0x2308   :  { %v4990_v15 = vpop.permute.xlu0 %4989 }
0x230a   :  { %v13262_v21 = vpop.eup %13261 }
0x230b   :  { %v4674_v22 = vmul.f32 %v13262_v21, %v13258_v58 }
0x230d   :  { %12680 = vmatmul.mubr.msk.f32.vlgmr.msra.gmra.mxu1 %vm192_vm2, %v4674_v22 }
0x230e   :  { %v13264_v23 = vpop.eup %13263  ;;  %12689 = vmatprep.mubr.msk.f32.mxu1 %vm192_vm2, %v4413_v32  ;;  %12688 = vmatpush3.msra.mxu1 %v94_v41 }
0x230f   :  { %12697 = vmatprep.subr.mxu1 %v13498_v6  ;;  %v4673_v26 = vmul.f32 %v13264_v23, %v13260_v63 }
0x2311   :  { %12675 = vmatmul.mubr.msk.f32.vlgmr.msra.gmra.mxu0 %vm192_vm2, %v4673_v26  ;;  %12690 = vmatmul.mubr.msk.f32.vlgmr.msra.gmra.mxu1 %vm192_vm2, %v4489_v29 }
0x2312   :  { %12698 = vmatpush3.xpose.msk.msra.mxu1 %vm192_vm2, %v5070_v25  ;;  %12699 = vmatprep.mubr.msk.f32.mxu1 %vm13499_vm1, %v13498_v6 }
0x2313   :  { %12707 = vmatprep.subr.mxu1 %v13498_v6  ;;  %12683 = vmatpush3.msra.mxu0 %v95_v46 }
0x2314   :  { %12692 = vmatprep.subr.mxu0 %v13498_v6 }
0x2315   :  { %12700 = vmatmul.mubr.msk.f32.vlgmr.msra.gmra.mxu1 %vm192_vm2, %v5068_v27 }
0x2316   :  { %12709 = vmatprep.mubr.msk.f32.mxu1 %vm13499_vm1, %v13498_v6 }
0x23cd   :  { %v4823_v0 = vpop.f32.mrf.mxu1 }
0x23cf   :  { %v12681_v1 = vpop.f32.mrf.mxu1 }
0x23d1   :  { %v4747_v3 = vpop.f32.mrf.mxu0  ;;  %v14357_v7 = vpop.f32.mrf.mxu1 }
0x23d2   :  { %12684 = vmatprep.mubr.msk.f32.mxu0 %vm192_vm2, %v4747_v3 }
0x23d3   :  { %v12676_v9 = vpop.f32.mrf.mxu0  ;;  %12685 = vmatmul.mubr.msk.f32.vlgmr.msra.gmra.mxu0 %vm192_vm2, %v4823_v0  ;;  %v14361_v12 = vpop.f32.mrf.mxu1 }
0x23d4   :  { %12693 = vmatpush3.xpose.msk.msra.mxu0 %vm192_vm2, %v4992_v20  ;;  %12694 = vmatprep.mubr.msk.f32.mxu0 %vm13499_vm1, %v13498_v6 }
0x23d5   :  { %v5141_v14 = vpop.f32.mrf.mxu1  ;;  %12702 = vmatprep.subr.mxu0 %v13498_v6 }
0x23d6   :  { %v5146_v16 = vmul.f32 0.35355338, %v5141_v14 }
0x23d7   :  { %12695 = vmatmul.mubr.msk.f32.vlgmr.msra.gmra.mxu0 %vm192_vm2, %v4990_v15  ;;  %v12701_v17 = vpop.f32.mrf.mxu1 }
0x23d8   :  { %v5148_v53 = vadd.f32 %v5146_v16, %v14282_v61  ;;  %12704 = vmatprep.mubr.msk.f32.mxu0 %vm13499_vm1, %v13498_v6 }
0x23da   :  { %v5152_v30 = vsel %vm192_vm2, %v5148_v53, -inf }
0x23db   :  { %5153 = vmax.xlane.f32.xlu1 %v5152_v30 }
0x23ec   :  { %5171 = vrot.lane.b32.xlu1 %v14257_v49, %s15380_s25 }
0x23f0   :  { %5408 = vrot.lane.b32.xlu1 %v14257_v49, %s15372_s29 }
0x23f4   :  { %5486 = vrot.lane.b32.xlu1 %v14253_v57, %s15372_s29 }
0x23f8   :  { %5484 = vrot.lane.b32.xlu1 %v14253_v57, %s15373_s0 }
0x2464   :  { %v5154_v42 = vpop.xlane.xlu1 %5153 }
0x2465   :  { %v5156_v13 = vsub.f32 %v5148_v53, %v5154_v42 }
0x2467   :  { %v5159_v19 = vmul.f32 1.442695, %v5156_v13 }
0x2468   :  { %v5172_v18 = vpop.permute.xlu1 %5171 }
0x2469   :  { %12703 = vmatpush3.msra.mxu0 %v5172_v18  ;;  %13265 = vpow2.f32 %v5159_v19 }
0x246a   :  { %12712 = vmatprep.subr.mxu0 %v96_v60 }
0x246c   :  { %v5409_v48 = vpop.permute.xlu1 %5408 }
0x2470   :  { %v5487_v21 = vpop.permute.xlu1 %5486 }
0x2474   :  { %v5485_v25 = vpop.permute.xlu1 %5484 }
0x2476   :  { %v13266_v36 = vpop.eup %13265 }
0x2477   :  { %v5164_v38 = vsel %vm192_vm2, %v13266_v36, 0.0 }
0x2493   :  { %v14380_v5 = vpop.f32.mrf.mxu0 }
0x2494   :  { %v4986_v3 = vadd.f32 %v14357_v7, %v14380_v5  ;;  %v14433_v7 = vld [vmem:[%s15325_s14] ss:$0 sm:$0xff] }
0x2495   :  { %v14382_v29 = vpop.f32.mrf.mxu0 }
0x2496   :  { %v4981_v14 = vadd.f32 %v14361_v12, %v14382_v29  ;;  %v4031_v12 = vadd.f32 %v14433_v7, %v14277_v47 }
0x2497   :  { %v5063_v32 = vpop.f32.mrf.mxu0 }
0x2498   :  { %v5145_v62 = vmul.f32 0.35355338, %v5063_v32  ;;  %v4039_v19 = vadd.f32 %v4031_v12, %v14211_v39  ;;  %v4036_v39 = vadd.f32 %v14433_v7, %v14275_v59 }
0x2499   :  { %v12696_v33 = vpop.f32.mrf.mxu0 }
0x249a   :  { %v5147_v34 = vadd.f32 %v5145_v62, %v14282_v61  ;;  %v4041_v5 = vsel %vm107_vm0, %v4039_v19, 0.0 }
0x249c   :  { %v5149_v35 = vsel %vm192_vm2, %v5147_v34, -inf }
0x249d   :  { %5150 = vmax.xlane.f32.xlu0 %v5149_v35 }
0x24a1   :  { %5165 = vadd.xlane.f32.xlu0 %v5164_v38 }
0x2526   :  { %v5151_v8 = vpop.xlane.xlu0 %5150 }
0x2527   :  { %v5155_v37 = vsub.f32 %v5147_v34, %v5151_v8  ;;  %v97_v8 = vld [vmem:[%s15320_s9 + $0x18] sm:$0xff] }
0x2529   :  { %v5157_v40 = vmul.f32 1.442695, %v5155_v37 }
0x252a   :  { %v5166_v52 = vpop.xlane.xlu0 %5165 }
0x252b   :  { %13267 = vpow2.f32 %v5157_v40 }
0x252c   :  { %13269 = vrcp.f32 %v5166_v52  ;;  %v13417_v52 = vld [vmem:[%s15370_s20] sm:$0xff] }
0x2538   :  { %v13268_v50 = vpop.eup %13267 }
0x2539   :  { %v5161_v51 = vsel %vm192_vm2, %v13268_v50, 0.0  ;;  %v13270_v55 = vpop.eup %13269 }
0x253a   :  { %5162 = vadd.xlane.f32.xlu0 %v5161_v51  ;;  %v5170_v28 = vmul.f32 %v13270_v55, %v13266_v36  ;;  %v4040_v36 = vadd.f32 %v4036_v39, %v14214_v43  ;;  %v13416_v51 = vld [vmem:[%s15370_s20 + $0x8] sm:$0xff] }
0x253c   :  { %v4044_v38 = vsel %vm107_vm0, %v4040_v36, 0.0 }
0x2550   :  { %5247 = vrot.lane.b32.xlu0 %v14253_v57, %s15380_s25 }
0x2554   :  { %5406 = vrot.lane.b32.xlu0 %v14257_v49, %s15373_s0 }
0x25c3   :  { %v5163_v54 = vpop.xlane.xlu0 %5162 }
0x25c4   :  { %13271 = vrcp.f32 %v5163_v54 }
0x25c7   :  { %v5248_v56 = vpop.permute.xlu0 %5247 }
0x25c8   :  { %12708 = vmatpush3.msra.mxu1 %v5248_v56 }
0x25c9   :  { %12710 = vmatmul.mubr.msk.f32.vlgmr.msra.gmra.mxu1 %vm192_vm2, %v5170_v28  ;;  %12717 = vmatprep.subr.mxu1 %v13498_v6 }
0x25ca   :  { %12718 = vmatpush3.xpose.msk.msra.mxu1 %vm192_vm2, %v5409_v48  ;;  %12719 = vmatprep.mubr.msk.f32.mxu1 %vm13499_vm1, %v13498_v6 }
0x25cb   :  { %v5407_v24 = vpop.permute.xlu0 %5406  ;;  %12727 = vmatprep.subr.mxu1 %v13498_v6 }
0x25cd   :  { %12720 = vmatmul.mubr.msk.f32.vlgmr.msra.gmra.mxu1 %vm192_vm2, %v5407_v24 }
0x25ce   :  { %12729 = vmatprep.mubr.msk.f32.mxu1 %vm13499_vm1, %v13498_v6 }
0x25d1   :  { %v13272_v4 = vpop.eup %13271 }
0x25d2   :  { %v5169_v58 = vmul.f32 %v13272_v4, %v13268_v50  ;;  %v14457_v50 = vld [vmem:[%s15370_s20 + $0x10] sm:$0xff] }
0x25d4   :  { %12705 = vmatmul.mubr.msk.f32.vlgmr.msra.gmra.mxu0 %vm192_vm2, %v5169_v58  ;;  %v11857_v58 = vld [vmem:[%s15321_s10] ss:$0 sm:$0xff] }
0x25d5   :  { %12713 = vmatpush3.msra.mxu0 %v96_v60 }
0x25d6   :  { %12722 = vmatprep.subr.mxu0 %v13498_v6 }
0x2689   :  { %v5319_v63 = vpop.f32.mrf.mxu1 }
0x268b   :  { %v12711_v31 = vpop.f32.mrf.mxu1 }
0x268d   :  { %v5480_v10 = vpop.f32.mrf.mxu1 }
0x268e   :  { %v5562_v44 = vmul.f32 0.35355338, %v5480_v10 }
0x268f   :  { %v12721_v41 = vpop.f32.mrf.mxu1 }
0x2690   :  { %v5564_v2 = vadd.f32 %v5562_v44, %v14282_v61 }
0x2692   :  { %v5566_v20 = vsel %vm192_vm2, %v5564_v2, -inf }
0x2693   :  { %5567 = vmax.xlane.f32.xlu0 %v5566_v20 }
0x2694   :  { %v5243_v22 = vpop.f32.mrf.mxu0 }
0x2695   :  { %12714 = vmatprep.mubr.msk.f32.mxu0 %vm192_vm2, %v5243_v22 }
0x2696   :  { %v12706_v23 = vpop.f32.mrf.mxu0  ;;  %12715 = vmatmul.mubr.msk.f32.vlgmr.msra.gmra.mxu0 %vm192_vm2, %v5319_v63 }
0x2697   :  { %12723 = vmatpush3.xpose.msk.msra.mxu0 %vm192_vm2, %v5487_v21  ;;  %12724 = vmatprep.mubr.msk.f32.mxu0 %vm13499_vm1, %v13498_v6 }
0x2698   :  { %12732 = vmatprep.subr.mxu0 %v13498_v6 }
0x269a   :  { %12725 = vmatmul.mubr.msk.f32.vlgmr.msra.gmra.mxu0 %vm192_vm2, %v5485_v25 }
0x269b   :  { %12734 = vmatprep.mubr.msk.f32.mxu0 %vm13499_vm1, %v13498_v6 }
0x271c   :  { %v5568_v26 = vpop.xlane.xlu0 %5567 }
0x271d   :  { %v5572_v27 = vsub.f32 %v5564_v2, %v5568_v26 }
0x271f   :  { %v5574_v46 = vmul.f32 1.442695, %v5572_v27 }
0x2721   :  { %13273 = vpow2.f32 %v5574_v46 }
0x272e   :  { %v13274_v0 = vpop.eup %13273 }
0x272f   :  { %v5578_v1 = vsel %vm192_vm2, %v13274_v0, 0.0 }
0x2730   :  { %5579 = vadd.xlane.f32.xlu0 %v5578_v1 }
0x2756   :  { %v12716_v9 = vpop.f32.mrf.mxu0 }
0x2757   :  { %v14422_v15 = vadd.f32 %v12716_v9, %v4986_v3 }
0x2758   :  { %v5395_v16 = vpop.f32.mrf.mxu0 }
0x2759   :  { %v14424_v17 = vadd.f32 %v5395_v16, %v4981_v14 }
0x275a   :  { %v5558_v53 = vpop.f32.mrf.mxu0 }
0x275b   :  { %v5563_v30 = vmul.f32 0.35355338, %v5558_v53 }
0x275c   :  { %v12726_v42 = vpop.f32.mrf.mxu0 }
0x275d   :  { %v5565_v18 = vadd.f32 %v5563_v30, %v14282_v61 }
0x275f   :  { %v5569_v13 = vsel %vm192_vm2, %v5565_v18, -inf }
0x2760   :  { %5570 = vmax.xlane.f32.xlu1 %v5569_v13 }
0x2771   :  { %5588 = vrot.lane.b32.xlu1 %v14257_v49, %s15374_s26 }
0x2795   :  { %4042 = vadd.xlane.f32.xlu1 %v4041_v5 }
0x27b9   :  { %v5580_v61 = vpop.xlane.xlu0 %5579 }
0x27ba   :  { %13275 = vrcp.f32 %v5580_v61  ;;  %v14488_v61 = vld [vmem:[%s15326_s15] ss:$0 sm:$0xff] }
0x27c7   :  { %v13276_v32 = vpop.eup %13275 }
0x27c8   :  { %v5586_v34 = vmul.f32 %v13276_v32, %v13274_v0  ;;  %v14495_v32 = vld [vmem:[%s15327_s16] ss:$0 sm:$0xff] }
0x27e9   :  { %v5571_v29 = vpop.xlane.xlu1 %5570 }
0x27ea   :  { %v5573_v62 = vsub.f32 %v5565_v18, %v5571_v29 }
0x27ec   :  { %v5576_v33 = vmul.f32 1.442695, %v5573_v62 }
0x27ed   :  { %v5589_v49 = vpop.permute.xlu1 %5588 }
0x27ee   :  { %13277 = vpow2.f32 %v5576_v33  ;;  %12728 = vmatpush3.msra.mxu1 %v5589_v49  ;;  %v13420_v33 = vld [vmem:[%s15315_s4] ss:$0 sm:$0xff] }
0x27ef   :  { %12730 = vmatmul.mubr.msk.f32.vlgmr.msra.gmra.mxu1 %vm192_vm2, %v5586_v34  ;;  %12737 = vmatprep.subr.mxu1 %v97_v8 }
0x27f0   :  { %12738 = vmatpush3.msra.mxu1 %v97_v8 }
0x27fb   :  { %v13278_v35 = vpop.eup %13277 }
0x27fc   :  { %v5581_v47 = vsel %vm192_vm2, %v13278_v35, 0.0 }
0x27fd   :  { %5582 = vadd.xlane.f32.xlu0 %v5581_v47 }
0x2813   :  { %5664 = vrot.lane.b32.xlu0 %v14253_v57, %s15374_s26  ;;  %v13414_v57 = vld [vmem:[%s15370_s20 + $0x18] sm:$0xff] }
0x281e   :  { %v4043_v24 = vpop.xlane.xlu1 %4042 }
0x281f   :  { %v4047_v63 = vmul.f32 0.03125, %v4043_v24 }
0x2821   :  { %v4049_v20 = vsub.f32 %v4039_v19, %v4047_v63 }
0x2823   :  { %v4051_v46 = vmul.f32 %v4049_v20, %v4049_v20 }
0x2825   :  { %v4053_v1 = vsel %vm107_vm0, %v4051_v46, 0.0 }
0x2832   :  { %4045 = vadd.xlane.f32.xlu0 %v4044_v38 }
0x2886   :  { %v5583_v37 = vpop.xlane.xlu0 %5582 }
0x2887   :  { %13279 = vrcp.f32 %v5583_v37 }
0x288a   :  { %v5665_v40 = vpop.permute.xlu0 %5664 }
0x288b   :  { %12733 = vmatpush3.msra.mxu0 %v5665_v40 }
0x288c   :  { %12742 = vmatprep.subr.mxu0 %v13414_v57 }
0x2894   :  { %v13280_v59 = vpop.eup %13279 }
0x2895   :  { %v5587_v43 = vmul.f32 %v13280_v59, %v13278_v35 }
0x2897   :  { %12735 = vmatmul.mubr.msk.f32.vlgmr.msra.gmra.mxu0 %vm192_vm2, %v5587_v43 }
0x2898   :  { %12743 = vmatpush3.msra.mxu0 %v13414_v57 }
0x2899   :  { %12744 = vmatprep.subr.mxu0 %v14457_v50 }
0x289a   :  { %12745 = vmatpush3.msra.mxu0 %v14457_v50 }
0x289b   :  { %12746 = vmatprep.subr.mxu0 %v13416_v51 }
0x289c   :  { %12747 = vmatpush3.msra.mxu0 %v13416_v51 }
0x289d   :  { %12748 = vmatprep.subr.mxu0 %v13417_v52 }
0x289e   :  { %12749 = vmatpush3.msra.mxu0 %v13417_v52 }
0x289f   :  { %12764 = vmatprep.subr.mxu0 %v13498_v6 }
0x28af   :  { %v5660_v54 = vpop.f32.mrf.mxu1 }
0x28b0   :  { %12739 = vmatprep.mubr.msk.f32.mxu1 %vm192_vm2, %v5660_v54 }
0x28b1   :  { %v12731_v55 = vpop.f32.mrf.mxu1 }
0x28bb   :  { %v4046_v48 = vpop.xlane.xlu0 %4045 }
0x28bc   :  { %v4048_v4 = vmul.f32 0.03125, %v4046_v48 }
0x28be   :  { %v4050_v44 = vsub.f32 %v4040_v36, %v4048_v4 }
0x28c0   :  { %v4052_v26 = vmul.f32 %v4050_v44, %v4050_v44 }
0x28c2   :  { %v4056_v0 = vsel %vm107_vm0, %v4052_v26, 0.0 }
0x2957   :  { %v5736_v56 = vpop.f32.mrf.mxu0 }
0x2958   :  { %12740 = vmatmul.mubr.msk.f32.vlgmr.msra.gmra.mxu1 %vm192_vm2, %v5736_v56 }
0x2959   :  { %v12736_v28 = vpop.f32.mrf.mxu0 }
0x2a18   :  { %v12741_v60 = vpop.f32.mrf.mxu1 }
0x2a19   :  { %v5822_v31 = vadd.f32 %v12741_v60, %v14422_v15 }
0x2a1a   :  { %v5812_v10 = vpop.f32.mrf.mxu1 }
0x2a1b   :  { %v5830_v41 = vadd.f32 %v11857_v58, %v5822_v31  ;;  %v5821_v2 = vadd.f32 %v5812_v10, %v14424_v17 }
0x2a1d   :  { %v5829_v21 = vadd.f32 %v11857_v58, %v5821_v2  ;;  %v5832_v22 = vadd.f32 %v5830_v41, %v14239_v11 }
0x2a1f   :  { %v5836_v23 = vsel %vm107_vm0, %v5832_v22, 0.0  ;;  %v5831_v25 = vadd.f32 %v5829_v21, %v14219_v45 }
0x2a20   :  { %5837 = vadd.xlane.f32.xlu0 %v5836_v23 }
0x2a21   :  { %v5833_v27 = vsel %vm107_vm0, %v5831_v25, 0.0 }
0x2a22   :  { %5834 = vadd.xlane.f32.xlu1 %v5833_v27 }
0x2a24   :  { %4057 = vadd.xlane.f32.xlu0 %v4056_v0 }
0x2a26   :  { %4054 = vadd.xlane.f32.xlu1 %v4053_v1 }
0x2a37   :  { %5954 = vrot.lane.b32.xlu1 %v13414_v57, %s15381_s3 }
0x2a3b   :  { %5950 = vrot.lane.b32.xlu1 %v13416_v51, %s15381_s3 }
0x2aa9   :  { %v5838_v11 = vpop.xlane.xlu0 %5837 }
0x2aaa   :  { %v5840_v3 = vmul.f32 0.03125, %v5838_v11 }
0x2aab   :  { %v5835_v9 = vpop.xlane.xlu1 %5834 }
0x2aac   :  { %v5842_v45 = vsub.f32 %v5832_v22, %v5840_v3  ;;  %v5839_v14 = vmul.f32 0.03125, %v5835_v9 }
0x2aad   :  { %v4058_v49 = vpop.xlane.xlu0 %4057 }
0x2aae   :  { %v5841_v15 = vsub.f32 %v5831_v25, %v5839_v14  ;;  %v5844_v16 = vmul.f32 %v5842_v45, %v5842_v45  ;;  %v4060_v34 = vmul.f32 0.03125, %v4058_v49 }
0x2aaf   :  { %v4055_v17 = vpop.xlane.xlu1 %4054 }
0x2ab0   :  { %v4059_v53 = vmul.f32 0.03125, %v4055_v17  ;;  %v5848_v30 = vsel %vm107_vm0, %v5844_v16, 0.0  ;;  %v5843_v42 = vmul.f32 %v5841_v15, %v5841_v15  ;;  %v4062_v35 = vadd.f32 1e-05, %v4060_v34 }
0x2ab1   :  { %5849 = vadd.xlane.f32.xlu0 %v5848_v30 }
0x2ab2   :  { %v4061_v18 = vadd.f32 1e-05, %v4059_v53  ;;  %v5845_v13 = vsel %vm107_vm0, %v5843_v42, 0.0 }
0x2ab3   :  { %5846 = vadd.xlane.f32.xlu1 %v5845_v13  ;;  %v5955_v12 = vpop.permute.xlu1 %5954 }
0x2ab4   :  { %13281 = vrsqrt.f32 %v4061_v18  ;;  %12753 = vmatprep.subr.mxu1 %v5955_v12 }
0x2ab5   :  { %12754 = vmatpush3.msra.mxu1 %v5955_v12  ;;  %13283 = vrsqrt.f32 %v4062_v35 }
0x2ab7   :  { %v5951_v39 = vpop.permute.xlu1 %5950 }
0x2ac1   :  { %v13282_v19 = vpop.eup %13281 }
0x2ac2   :  { %v4065_v5 = vmul.f32 %v13282_v19, %v4049_v20  ;;  %v13284_v47 = vpop.eup %13283 }
0x2ac3   :  { %v4066_v8 = vmul.f32 %v13284_v47, %v4050_v44 }
0x2ac4   :  { %v4067_v29 = vmul.f32 %v14488_v61, %v4065_v5  ;;  %5948 = vrot.lane.b32.xlu1 %v13417_v52, %s15381_s3 }
0x2ac6   :  { %v4069_v62 = vadd.f32 %v14495_v32, %v4067_v29 }
0x2ac7   :  { %5952 = vrot.lane.b32.xlu0 %v14457_v50, %s15381_s3  ;;  %v4068_v50 = vmul.f32 %v14488_v61, %v4066_v8 }
0x2ac8   :  { %12761 = vmatprep.mubr.msk.f32.mxu1 %vm107_vm0, %v4069_v62 }
0x2ac9   :  { %v4070_v52 = vadd.f32 %v14495_v32, %v4068_v50 }
0x2acb   :  { %5960 = vrot.lane.b32.xlu0 %v13420_v33, %s15381_s3 }
0x2b3a   :  { %v5850_v36 = vpop.xlane.xlu0 %5849 }
0x2b3b   :  { %v5852_v38 = vmul.f32 0.03125, %v5850_v36 }
0x2b3c   :  { %v5847_v37 = vpop.xlane.xlu1 %5846 }
0x2b3d   :  { %v5854_v40 = vadd.f32 1e-05, %v5852_v38  ;;  %v5851_v57 = vmul.f32 0.03125, %v5847_v37 }
0x2b3e   :  { %v5953_v59 = vpop.permute.xlu0 %5952 }
0x2b3f   :  { %13285 = vrsqrt.f32 %v5854_v40  ;;  %v5853_v43 = vadd.f32 1e-05, %v5851_v57  ;;  %12755 = vmatprep.subr.mxu1 %v5953_v59 }
0x2b40   :  { %12756 = vmatpush3.msra.mxu1 %v5953_v59  ;;  %v5949_v51 = vpop.permute.xlu1 %5948 }
0x2b41   :  { %13287 = vrsqrt.f32 %v5853_v43  ;;  %12757 = vmatprep.subr.mxu1 %v5951_v39 }
0x2b42   :  { %12758 = vmatpush3.msra.mxu1 %v5951_v39  ;;  %v5961_v60 = vpop.permute.xlu0 %5960 }
0x2b43   :  { %12759 = vmatprep.subr.mxu1 %v5949_v51 }
0x2b44   :  { %12760 = vmatpush3.msra.mxu1 %v5949_v51 }
0x2b45   :  { %12762 = vmatmul.mubr.msk.f32.vlgmr.msra.gmra.mxu1 %vm107_vm0, %v4070_v52  ;;  %12769 = vmatprep.subr.mxu1 %v13498_v6 }
0x2b46   :  { %12771 = vmatprep.mubr.msk.f32.mxu1 %vm13499_vm1, %v13498_v6 }
0x2b4c   :  { %v13286_v54 = vpop.eup %13285 }
0x2b4d   :  { %v5858_v55 = vmul.f32 %v13286_v54, %v5842_v45 }
0x2b4e   :  { %v13288_v56 = vpop.eup %13287 }
0x2b4f   :  { %v5857_v28 = vmul.f32 %v13288_v56, %v5841_v15  ;;  %v5860_v48 = vmul.f32 %v14488_v61, %v5858_v55 }
0x2b51   :  { %v5859_v24 = vmul.f32 %v14488_v61, %v5857_v28  ;;  %v14517_v58 = vadd.f32 %v14495_v32, %v5860_v48 }
0x2b53   :  { %v14514_v4 = vadd.f32 %v14495_v32, %v5859_v24 }
0x2b55   :  { %12750 = vmatprep.mubr.msk.f32.mxu0 %vm107_vm0, %v14514_v4 }
0x2b56   :  { %12751 = vmatmul.mubr.msk.f32.vlgmr.msra.gmra.mxu0 %vm107_vm0, %v14517_v58 }
0x2b57   :  { %12766 = vmatprep.mubr.msk.f32.mxu0 %vm13499_vm1, %v13498_v6 }
0x2c05   :  { %v12763_v63 = vpop.f32.mrf.mxu1 }
0x2c06   :  { %v14525_v31 = vadd.f32 %v12763_v63, %v5961_v60 }
0x2c07   :  { %v6035_v10 = vpop.f32.mrf.mxu1 }
0x2c08   :  { %v14527_v44 = vadd.f32 %v6035_v10, %v5961_v60  ;;  %12770 = vmatpush3.xpose.msk.msra.mxu1 %vm192_vm2, %v14525_v31 }
0x2c09   :  { %12779 = vmatprep.subr.mxu1 %v13498_v6 }
0x2c0a   :  { %12765 = vmatpush3.xpose.msk.msra.mxu0 %vm192_vm2, %v14527_v44 }
0x2c0b   :  { %12774 = vmatprep.subr.mxu0 %v13498_v6 }
0x2c16   :  { %v12752_v41 = vpop.f32.mrf.mxu0 }
0x2c17   :  { %v14535_v2 = vadd.f32 %v13420_v33, %v12752_v41 }
0x2c18   :  { %v5935_v20 = vpop.f32.mrf.mxu0 }
0x2c19   :  { %v14537_v21 = vadd.f32 %v13420_v33, %v5935_v20  ;;  %12772 = vmatmul.mubr.msk.f32.vlgmr.msra.gmra.mxu1 %vm192_vm2, %v14535_v2 }
0x2c1a   :  { %12781 = vmatprep.mubr.msk.f32.mxu1 %vm13499_vm1, %v13498_v6 }
0x2c1b   :  { %12767 = vmatmul.mubr.msk.f32.vlgmr.msra.gmra.mxu0 %vm192_vm2, %v14537_v21 }
0x2c1c   :  { %12776 = vmatprep.mubr.msk.f32.mxu0 %vm13499_vm1, %v13498_v6 }
0x2cd9   :  { %v6192_v22 = vpop.f32.mrf.mxu1 }
0x2cda   :  { %v6197_v23 = vmul.f32 0.35355338, %v6192_v22 }
0x2cdb   :  { %v6116_v25 = vpop.f32.mrf.mxu0  ;;  %v12773_v26 = vpop.f32.mrf.mxu1 }
0x2cdc   :  { %v6196_v27 = vmul.f32 0.35355338, %v6116_v25  ;;  %v6201_v46 = vsel %vm192_vm2, %v6197_v23, -inf  ;;  %v13421_v25 = vld [vmem:[%s15316_s5] sm:$0xff]  ;;  %v13422_v26 = vld [vmem:[%s15316_s5 + $0x8] sm:$0xff] }
0x2cdd   :  { %6202 = vmax.xlane.f32.xlu0 %v6201_v46  ;;  %v12768_v0 = vpop.f32.mrf.mxu0 }
0x2cde   :  { %v6198_v1 = vsel %vm192_vm2, %v6196_v27, -inf }
0x2cdf   :  { %6199 = vmax.xlane.f32.xlu1 %v6198_v1 }
0x2cf0   :  { %6296 = vrot.lane.b32.xlu1 %v14525_v31, %s15381_s3 }
0x2cf3   :  { %6220 = vrot.lane.b32.xlu0 %v14527_v44, %s15381_s3 }
0x2cf4   :  { %6374 = vrot.lane.b32.xlu1 %v14527_v44, %s15382_s21 }
0x2d66   :  { %v6203_v11 = vpop.xlane.xlu0 %6202 }
0x2d67   :  { %v6205_v3 = vsub.f32 %v6197_v23, %v6203_v11 }
0x2d68   :  { %v6200_v9 = vpop.xlane.xlu1 %6199 }
0x2d69   :  { %v6208_v45 = vmul.f32 1.442695, %v6205_v3  ;;  %v6204_v14 = vsub.f32 %v6196_v27, %v6200_v9 }
0x2d6a   :  { %v14555_v15 = vpop.permute.xlu0 %6220 }
0x2d6b   :  { %13289 = vpow2.f32 %v6208_v45  ;;  %v6206_v16 = vmul.f32 1.442695, %v6204_v14  ;;  %12775 = vmatpush3.msra.mxu0 %v14555_v15 }
0x2d6c   :  { %v14558_v17 = vpop.permute.xlu1 %6296  ;;  %12784 = vmatprep.subr.mxu0 %v13498_v6 }
0x2d6d   :  { %13291 = vpow2.f32 %v6206_v16  ;;  %12780 = vmatpush3.msra.mxu1 %v14558_v17 }
0x2d6e   :  { %12789 = vmatprep.subr.mxu1 %v13498_v6 }
0x2d70   :  { %v14571_v13 = vpop.permute.xlu1 %6374 }
0x2d78   :  { %v13290_v53 = vpop.eup %13289 }
0x2d79   :  { %v6213_v30 = vsel %vm192_vm2, %v13290_v53, 0.0 }
0x2d7a   :  { %v13292_v42 = vpop.eup %13291  ;;  %6214 = vadd.xlane.f32.xlu1 %v6213_v30 }
0x2d7b   :  { %v6210_v18 = vsel %vm192_vm2, %v13292_v42, 0.0 }
0x2d7c   :  { %6211 = vadd.xlane.f32.xlu0 %v6210_v18 }
0x2d8b   :  { %6372 = vrot.lane.b32.xlu1 %v14537_v21, %s15382_s21 }
0x2d92   :  { %6452 = vrot.lane.b32.xlu0 %v14525_v31, %s15382_s21 }
0x2d96   :  { %6450 = vrot.lane.b32.xlu0 %v14535_v2, %s15382_s21 }
0x2e03   :  { %v6215_v12 = vpop.xlane.xlu1 %6214 }
0x2e04   :  { %13293 = vrcp.f32 %v6215_v12 }
0x2e05   :  { %v6212_v19 = vpop.xlane.xlu0 %6211 }
0x2e06   :  { %13295 = vrcp.f32 %v6212_v19 }
0x2e07   :  { %v6373_v35 = vpop.permute.xlu1 %6372 }
0x2e09   :  { %v14573_v29 = vpop.permute.xlu0 %6452 }
0x2e0d   :  { %v6451_v34 = vpop.permute.xlu0 %6450 }
0x2e11   :  { %v13294_v5 = vpop.eup %13293 }
0x2e12   :  { %v6219_v62 = vmul.f32 %v13294_v5, %v13290_v53 }
0x2e13   :  { %v13296_v33 = vpop.eup %13295 }
0x2e14   :  { %12782 = vmatmul.mubr.msk.f32.vlgmr.msra.gmra.mxu1 %vm192_vm2, %v6219_v62  ;;  %v6218_v49 = vmul.f32 %v13296_v33, %v13292_v42 }
0x2e15   :  { %12790 = vmatpush3.xpose.msk.msra.mxu1 %vm192_vm2, %v14573_v29  ;;  %12791 = vmatprep.mubr.msk.f32.mxu1 %vm13499_vm1, %v13498_v6 }
0x2e16   :  { %12777 = vmatmul.mubr.msk.f32.vlgmr.msra.gmra.mxu0 %vm192_vm2, %v6218_v49  ;;  %12799 = vmatprep.subr.mxu1 %v13498_v6 }
0x2e17   :  { %12785 = vmatpush3.xpose.msk.msra.mxu0 %vm192_vm2, %v14571_v13  ;;  %12786 = vmatprep.mubr.msk.f32.mxu0 %vm13499_vm1, %v13498_v6 }
0x2e18   :  { %12792 = vmatmul.mubr.msk.f32.vlgmr.msra.gmra.mxu1 %vm192_vm2, %v6451_v34  ;;  %12794 = vmatprep.subr.mxu0 %v13498_v6 }
0x2e19   :  { %12801 = vmatprep.mubr.msk.f32.mxu1 %vm13499_vm1, %v13498_v6 }
0x2e1a   :  { %12787 = vmatmul.mubr.msk.f32.vlgmr.msra.gmra.mxu0 %vm192_vm2, %v6373_v35 }
0x2e1b   :  { %12796 = vmatprep.mubr.msk.f32.mxu0 %vm13499_vm1, %v13498_v6 }
0x2ed4   :  { %v6368_v47 = vpop.f32.mrf.mxu1 }
0x2ed6   :  { %v6292_v39 = vpop.f32.mrf.mxu0  ;;  %v12783_v36 = vpop.f32.mrf.mxu1 }
0x2ed8   :  { %v12778_v38 = vpop.f32.mrf.mxu0  ;;  %v6524_v8 = vpop.f32.mrf.mxu1 }
0x2ed9   :  { %v6529_v37 = vmul.f32 0.35355338, %v6524_v8 }
0x2eda   :  { %v6446_v40 = vpop.f32.mrf.mxu0  ;;  %v12793_v57 = vpop.f32.mrf.mxu1 }
0x2edb   :  { %v6528_v59 = vmul.f32 0.35355338, %v6446_v40  ;;  %v6533_v43 = vsel %vm192_vm2, %v6529_v37, -inf }
0x2edc   :  { %6534 = vmax.xlane.f32.xlu0 %v6533_v43  ;;  %v12788_v50 = vpop.f32.mrf.mxu0 }
0x2edd   :  { %v6530_v51 = vsel %vm192_vm2, %v6528_v59, -inf }
0x2ede   :  { %6531 = vmax.xlane.f32.xlu1 %v6530_v51 }
0x2f65   :  { %v6535_v52 = vpop.xlane.xlu0 %6534 }
0x2f66   :  { %v6537_v54 = vsub.f32 %v6529_v37, %v6535_v52 }
0x2f67   :  { %v6532_v55 = vpop.xlane.xlu1 %6531 }
0x2f68   :  { %v6540_v56 = vmul.f32 1.442695, %v6537_v54  ;;  %v6536_v28 = vsub.f32 %v6528_v59, %v6532_v55 }
0x2f6a   :  { %13297 = vpow2.f32 %v6540_v56  ;;  %v6538_v48 = vmul.f32 1.442695, %v6536_v28 }
0x2f6c   :  { %13299 = vpow2.f32 %v6538_v48 }
0x2f77   :  { %v13298_v24 = vpop.eup %13297 }
0x2f78   :  { %v6545_v60 = vsel %vm192_vm2, %v13298_v24, 0.0 }
0x2f79   :  { %v13300_v63 = vpop.eup %13299  ;;  %6546 = vadd.xlane.f32.xlu1 %v6545_v60  ;;  %v13423_v60 = vld [vmem:[%s15316_s5 + $0x10] sm:$0xff] }
0x2f7a   :  { %v6542_v10 = vsel %vm192_vm2, %v13300_v63, 0.0 }
0x2f7b   :  { %6543 = vadd.xlane.f32.xlu0 %v6542_v10 }
0x2f8a   :  { %6628 = vrot.lane.b32.xlu1 %v14525_v31, %s15383_s1 }
0x2f8e   :  { %6868 = vrot.lane.b32.xlu1 %v14527_v44, %s15379_s2 }
0x2f91   :  { %6552 = vrot.lane.b32.xlu0 %v14527_v44, %s15383_s1 }
0x2f92   :  { %6866 = vrot.lane.b32.xlu1 %v14537_v21, %s15379_s2 }
0x2f95   :  { %6946 = vrot.lane.b32.xlu0 %v14525_v31, %s15379_s2 }
0x2f99   :  { %6944 = vrot.lane.b32.xlu0 %v14535_v2, %s15379_s2 }
0x3002   :  { %v6547_v41 = vpop.xlane.xlu1 %6546 }
0x3003   :  { %13301 = vrcp.f32 %v6547_v41 }
0x3004   :  { %v6544_v20 = vpop.xlane.xlu0 %6543 }
0x3005   :  { %13303 = vrcp.f32 %v6544_v20 }
0x3006   :  { %v14609_v22 = vpop.permute.xlu1 %6628 }
0x3007   :  { %12800 = vmatpush3.msra.mxu1 %v14609_v22 }
0x3008   :  { %v14612_v23 = vpop.permute.xlu0 %6552  ;;  %12809 = vmatprep.subr.mxu1 %v13421_v25 }
0x3009   :  { %12795 = vmatpush3.msra.mxu0 %v14612_v23 }
0x300a   :  { %12804 = vmatprep.subr.mxu0 %v13422_v26  ;;  %v14637_v45 = vpop.permute.xlu1 %6868 }
0x300c   :  { %v14622_v11 = vpop.permute.xlu0 %6946 }
0x300e   :  { %v6867_v18 = vpop.permute.xlu1 %6866 }
0x3010   :  { %v13302_v27 = vpop.eup %13301  ;;  %v6945_v3 = vpop.permute.xlu0 %6944 }
0x3011   :  { %v6551_v46 = vmul.f32 %v13302_v27, %v13298_v24 }
0x3012   :  { %v13304_v0 = vpop.eup %13303 }
0x3013   :  { %12802 = vmatmul.mubr.msk.f32.vlgmr.msra.gmra.mxu1 %vm192_vm2, %v6551_v46  ;;  %v6550_v1 = vmul.f32 %v13304_v0, %v13300_v63 }
0x3014   :  { %12811 = vmatprep.mubr.msk.f32.mxu1 %vm192_vm2, %v6292_v39  ;;  %12810 = vmatpush3.msra.mxu1 %v13421_v25 }
0x3015   :  { %12797 = vmatmul.mubr.msk.f32.vlgmr.msra.gmra.mxu0 %vm192_vm2, %v6550_v1  ;;  %12819 = vmatprep.subr.mxu1 %v13498_v6 }
0x3016   :  { %12805 = vmatpush3.msra.mxu0 %v13422_v26 }
0x3017   :  { %12812 = vmatmul.mubr.msk.f32.vlgmr.msra.gmra.mxu1 %vm192_vm2, %v6368_v47  ;;  %12814 = vmatprep.subr.mxu0 %v13498_v6 }
0x3018   :  { %12820 = vmatpush3.xpose.msk.msra.mxu1 %vm192_vm2, %v14622_v11  ;;  %12821 = vmatprep.mubr.msk.f32.mxu1 %vm13499_vm1, %v13498_v6 }
0x3019   :  { %12829 = vmatprep.subr.mxu1 %v13498_v6 }
0x301b   :  { %12822 = vmatmul.mubr.msk.f32.vlgmr.msra.gmra.mxu1 %vm192_vm2, %v6945_v3 }
0x301c   :  { %12831 = vmatprep.mubr.msk.f32.mxu1 %vm13499_vm1, %v13498_v6 }
0x30d3   :  { %v6700_v9 = vpop.f32.mrf.mxu1 }
0x30d5   :  { %v6624_v14 = vpop.f32.mrf.mxu0  ;;  %v12803_v16 = vpop.f32.mrf.mxu1 }
0x30d6   :  { %12806 = vmatprep.mubr.msk.f32.mxu0 %vm192_vm2, %v6624_v14 }
0x30d7   :  { %v12798_v53 = vpop.f32.mrf.mxu0  ;;  %12807 = vmatmul.mubr.msk.f32.vlgmr.msra.gmra.mxu0 %vm192_vm2, %v6700_v9  ;;  %v14641_v30 = vpop.f32.mrf.mxu1 }
0x30d8   :  { %12815 = vmatpush3.xpose.msk.msra.mxu0 %vm192_vm2, %v14637_v45  ;;  %12816 = vmatprep.mubr.msk.f32.mxu0 %vm13499_vm1, %v13498_v6 }
0x30d9   :  { %v14647_v42 = vpop.f32.mrf.mxu1  ;;  %12824 = vmatprep.subr.mxu0 %v13498_v6 }
0x30db   :  { %12817 = vmatmul.mubr.msk.f32.vlgmr.msra.gmra.mxu0 %vm192_vm2, %v6867_v18  ;;  %v7018_v12 = vpop.f32.mrf.mxu1 }
0x30dc   :  { %v7023_v19 = vmul.f32 0.35355338, %v7018_v12  ;;  %12826 = vmatprep.mubr.msk.f32.mxu0 %vm13499_vm1, %v13498_v6 }
0x30dd   :  { %v12823_v5 = vpop.f32.mrf.mxu1 }
0x30de   :  { %v7027_v62 = vsel %vm192_vm2, %v7023_v19, -inf }
0x30df   :  { %7028 = vmax.xlane.f32.xlu0 %v7027_v62 }
0x3168   :  { %v7029_v33 = vpop.xlane.xlu0 %7028 }
0x3169   :  { %v7031_v49 = vsub.f32 %v7023_v19, %v7029_v33 }
0x316b   :  { %v7034_v34 = vmul.f32 1.442695, %v7031_v49 }
0x316d   :  { %13305 = vpow2.f32 %v7034_v34 }
0x317a   :  { %v13306_v37 = vpop.eup %13305 }
0x317b   :  { %v7039_v40 = vsel %vm192_vm2, %v13306_v37, 0.0 }
0x3197   :  { %v14654_v35 = vpop.f32.mrf.mxu0 }
0x3198   :  { %v6863_v53 = vadd.f32 %v14641_v30, %v14654_v35 }
0x3199   :  { %v14656_v47 = vpop.f32.mrf.mxu0 }
0x319a   :  { %v6858_v12 = vadd.f32 %v14647_v42, %v14656_v47 }
0x319b   :  { %v6940_v39 = vpop.f32.mrf.mxu0 }
0x319c   :  { %v7022_v36 = vmul.f32 0.35355338, %v6940_v39 }
0x319d   :  { %v12818_v38 = vpop.f32.mrf.mxu0 }
0x319e   :  { %v7024_v8 = vsel %vm192_vm2, %v7022_v36, -inf }
0x319f   :  { %7025 = vmax.xlane.f32.xlu1 %v7024_v8 }
0x31a3   :  { %7040 = vadd.xlane.f32.xlu1 %v7039_v40 }
0x31b4   :  { %7122 = vrot.lane.b32.xlu1 %v14525_v31, %s15378_s28 }
0x31b8   :  { %7283 = vrot.lane.b32.xlu1 %v14527_v44, %s15373_s0 }
0x31bc   :  { %7281 = vrot.lane.b32.xlu1 %v14537_v21, %s15373_s0 }
0x3228   :  { %v7026_v57 = vpop.xlane.xlu1 %7025 }
0x3229   :  { %v7030_v59 = vsub.f32 %v7022_v36, %v7026_v57 }
0x322b   :  { %v7032_v43 = vmul.f32 1.442695, %v7030_v59 }
0x322c   :  { %v7041_v50 = vpop.xlane.xlu1 %7040 }
0x322d   :  { %13307 = vpow2.f32 %v7032_v43 }
0x322e   :  { %13309 = vrcp.f32 %v7041_v50  ;;  %v13425_v50 = vld [vmem:[%s15324_s13 + $0x38] sm:$0xff] }
0x3230   :  { %v14666_v51 = vpop.permute.xlu1 %7122 }
0x3231   :  { %12830 = vmatpush3.msra.mxu1 %v14666_v51 }
0x3232   :  { %12839 = vmatprep.subr.mxu1 %v13498_v6 }
0x3234   :  { %v14670_v55 = vpop.permute.xlu1 %7283 }
0x3238   :  { %v7282_v28 = vpop.permute.xlu1 %7281 }
0x323a   :  { %v13308_v52 = vpop.eup %13307 }
0x323b   :  { %v13310_v54 = vpop.eup %13309  ;;  %v7036_v56 = vsel %vm192_vm2, %v13308_v52, 0.0 }
0x323c   :  { %7037 = vadd.xlane.f32.xlu0 %v7036_v56  ;;  %v7045_v21 = vmul.f32 %v13310_v54, %v13306_v37  ;;  %v13424_v37 = vld [vmem:[%s15316_s5 + $0x18] sm:$0xff] }
0x323d   :  { %v13426_v56 = vld [vmem:[%s15322_s11 + $0x18] sm:$0xff] }
0x323e   :  { %12832 = vmatmul.mubr.msk.f32.vlgmr.msra.gmra.mxu1 %vm192_vm2, %v7045_v21 }
0x323f   :  { %12840 = vmatpush3.xpose.msk.msra.mxu1 %vm192_vm2, %v14670_v55  ;;  %12841 = vmatprep.mubr.msk.f32.mxu1 %vm13499_vm1, %v13498_v6 }
0x3240   :  { %12849 = vmatprep.subr.mxu1 %v13498_v6 }
0x3242   :  { %12842 = vmatmul.mubr.msk.f32.vlgmr.msra.gmra.mxu1 %vm192_vm2, %v7282_v28 }
0x3243   :  { %12851 = vmatprep.mubr.msk.f32.mxu1 %vm13499_vm1, %v13498_v6 }
0x3252   :  { %7046 = vrot.lane.b32.xlu0 %v14527_v44, %s15378_s28 }
0x3256   :  { %7361 = vrot.lane.b32.xlu0 %v14525_v31, %s15373_s0 }
0x325a   :  { %7359 = vrot.lane.b32.xlu0 %v14535_v2, %s15373_s0 }
0x32c5   :  { %v7038_v48 = vpop.xlane.xlu0 %7037 }
0x32c6   :  { %13311 = vrcp.f32 %v7038_v48  ;;  %v13427_v48 = vld [vmem:[%s15322_s11 + $0x10] sm:$0xff] }
0x32c9   :  { %v14688_v24 = vpop.permute.xlu0 %7046 }
0x32ca   :  { %12825 = vmatpush3.msra.mxu0 %v14688_v24 }
0x32cb   :  { %12834 = vmatprep.subr.mxu0 %v13423_v60 }
0x32cd   :  { %v14697_v46 = vpop.permute.xlu0 %7361 }
0x32d1   :  { %v7360_v3 = vpop.permute.xlu0 %7359 }
0x32d3   :  { %v13312_v63 = vpop.eup %13311 }
0x32d4   :  { %v7044_v10 = vmul.f32 %v13312_v63, %v13308_v52  ;;  %v13429_v63 = vld [vmem:[%s15322_s11] sm:$0xff] }
0x32d6   :  { %12827 = vmatmul.mubr.msk.f32.vlgmr.msra.gmra.mxu0 %vm192_vm2, %v7044_v10  ;;  %v14753_v10 = vld [vmem:[%s15318_s7 + $0x18] sm:$0xff] }
0x32d7   :  { %12835 = vmatpush3.msra.mxu0 %v13423_v60  ;;  %v13428_v60 = vld [vmem:[%s15322_s11 + $0x8] sm:$0xff] }
0x32d8   :  { %12844 = vmatprep.subr.mxu0 %v13498_v6 }
0x32fe   :  { %v7194_v41 = vpop.f32.mrf.mxu1 }
0x3300   :  { %v12833_v2 = vpop.f32.mrf.mxu1 }
0x3302   :  { %v7355_v20 = vpop.f32.mrf.mxu1 }
0x3303   :  { %v7437_v25 = vmul.f32 0.35355338, %v7355_v20 }
0x3304   :  { %v12843_v26 = vpop.f32.mrf.mxu1 }
0x3305   :  { %v7439_v27 = vsel %vm192_vm2, %v7437_v25, -inf  ;;  %v13431_v26 = vld [vmem:[%s15324_s13 + $0x30] sm:$0xff] }
0x3306   :  { %7440 = vmax.xlane.f32.xlu1 %v7439_v27  ;;  %v13432_v27 = vld [vmem:[%s15324_s13 + $0x28] sm:$0xff] }
0x338f   :  { %v7441_v9 = vpop.xlane.xlu1 %7440 }
0x3390   :  { %v7445_v14 = vsub.f32 %v7437_v25, %v7441_v9  ;;  %v13436_v9 = vld [vmem:[%s15324_s13 + $0x8] sm:$0xff] }
0x3392   :  { %v7447_v16 = vmul.f32 1.442695, %v7445_v14  ;;  %v13437_v14 = vld [vmem:[%s15324_s13] sm:$0xff] }
0x3394   :  { %13313 = vpow2.f32 %v7447_v16 }
0x3396   :  { %v7118_v0 = vpop.f32.mrf.mxu0 }
0x3397   :  { %12836 = vmatprep.mubr.msk.f32.mxu0 %vm192_vm2, %v7118_v0  ;;  %v13433_v0 = vld [vmem:[%s15324_s13 + $0x20] sm:$0xff] }
0x3398   :  { %v12828_v1 = vpop.f32.mrf.mxu0  ;;  %12837 = vmatmul.mubr.msk.f32.vlgmr.msra.gmra.mxu0 %vm192_vm2, %v7194_v41 }
0x3399   :  { %12845 = vmatpush3.xpose.msk.msra.mxu0 %vm192_vm2, %v14697_v46  ;;  %12846 = vmatprep.mubr.msk.f32.mxu0 %vm13499_vm1, %v13498_v6  ;;  %v13434_v1 = vld [vmem:[%s15324_s13 + $0x18] sm:$0xff] }
0x339a   :  { %12854 = vmatprep.subr.mxu0 %v13498_v6 }
0x339c   :  { %12847 = vmatmul.mubr.msk.f32.vlgmr.msra.gmra.mxu0 %vm192_vm2, %v7360_v3  ;;  %v13435_v3 = vld [vmem:[%s15324_s13 + $0x10] sm:$0xff] }
0x339d   :  { %12856 = vmatprep.mubr.msk.f32.mxu0 %vm13499_vm1, %v13498_v6 }
0x33a1   :  { %v13314_v36 = vpop.eup %13313 }
0x33a2   :  { %v7451_v38 = vsel %vm192_vm2, %v13314_v36, 0.0 }
0x3458   :  { %v12838_v18 = vpop.f32.mrf.mxu0 }
0x3459   :  { %v14713_v19 = vadd.f32 %v12838_v18, %v6863_v53 }
0x345a   :  { %v7270_v5 = vpop.f32.mrf.mxu0 }
0x345b   :  { %v14715_v62 = vadd.f32 %v7270_v5, %v6858_v12  ;;  %v13438_v12 = vld [vmem:[%s15317_s6] ss:$0 sm:$0xff] }
0x345c   :  { %v7433_v33 = vpop.f32.mrf.mxu0 }
0x345d   :  { %v7438_v49 = vmul.f32 0.35355338, %v7433_v33 }
0x345e   :  { %v12848_v34 = vpop.f32.mrf.mxu0 }
0x345f   :  { %v7442_v39 = vsel %vm192_vm2, %v7438_v49, -inf }
0x3460   :  { %7443 = vmax.xlane.f32.xlu0 %v7442_v39 }
0x3464   :  { %7452 = vadd.xlane.f32.xlu0 %v7451_v38 }
0x347a   :  { %7461 = vrot.lane.b32.xlu0 %v14527_v44, %s15372_s29 }
0x34e9   :  { %v7444_v30 = vpop.xlane.xlu0 %7443 }
0x34ea   :  { %v7446_v42 = vsub.f32 %v7438_v49, %v7444_v30 }
0x34ec   :  { %v7449_v35 = vmul.f32 1.442695, %v7446_v42 }
0x34ed   :  { %v7453_v47 = vpop.xlane.xlu0 %7452 }
0x34ee   :  { %13315 = vpow2.f32 %v7449_v35 }
0x34ef   :  { %13317 = vrcp.f32 %v7453_v47 }
0x34f1   :  { %v14721_v8 = vpop.permute.xlu0 %7461 }
0x34f2   :  { %12850 = vmatpush3.msra.mxu1 %v14721_v8 }
0x34f3   :  { %12859 = vmatprep.subr.mxu1 %v13424_v37 }
0x34fb   :  { %v13316_v40 = vpop.eup %13315 }
0x34fc   :  { %v13318_v57 = vpop.eup %13317  ;;  %v7454_v59 = vsel %vm192_vm2, %v13316_v40, 0.0 }
0x34fd   :  { %7455 = vadd.xlane.f32.xlu1 %v7454_v59  ;;  %v7459_v43 = vmul.f32 %v13318_v57, %v13314_v36 }
0x34ff   :  { %12852 = vmatmul.mubr.msk.f32.vlgmr.msra.gmra.mxu1 %vm192_vm2, %v7459_v43 }
0x3500   :  { %12860 = vmatpush3.msra.mxu1 %v13424_v37 }
0x3501   :  { %12875 = vmatprep.subr.mxu1 %v13425_v50 }
0x350e   :  { %7537 = vrot.lane.b32.xlu1 %v14525_v31, %s15372_s29 }
0x3586   :  { %v7456_v52 = vpop.xlane.xlu1 %7455 }
0x3587   :  { %13319 = vrcp.f32 %v7456_v52 }
0x358a   :  { %v14734_v54 = vpop.permute.xlu1 %7537 }
0x358b   :  { %12855 = vmatpush3.msra.mxu0 %v14734_v54 }
0x358c   :  { %12864 = vmatprep.subr.mxu0 %v13426_v56 }
0x3594   :  { %v13320_v21 = vpop.eup %13319 }
0x3595   :  { %v7460_v28 = vmul.f32 %v13320_v21, %v13316_v40 }
0x3597   :  { %12857 = vmatmul.mubr.msk.f32.vlgmr.msra.gmra.mxu0 %vm192_vm2, %v7460_v28 }
0x3598   :  { %12865 = vmatpush3.msra.mxu0 %v13426_v56 }
0x3599   :  { %12866 = vmatprep.subr.mxu0 %v13427_v48 }
0x359a   :  { %12867 = vmatpush3.msra.mxu0 %v13427_v48 }
0x359b   :  { %12868 = vmatprep.subr.mxu0 %v13428_v60 }
0x359c   :  { %12869 = vmatpush3.msra.mxu0 %v13428_v60 }
0x359d   :  { %12870 = vmatprep.subr.mxu0 %v13429_v63 }
0x359e   :  { %12871 = vmatpush3.msra.mxu0 %v13429_v63 }
0x359f   :  { %12894 = vmatprep.subr.mxu0 %v14753_v10 }
0x35bf   :  { %v7533_v41 = vpop.f32.mrf.mxu1 }
0x35c0   :  { %12861 = vmatprep.mubr.msk.f32.mxu1 %vm192_vm2, %v7533_v41 }
0x35c1   :  { %v12853_v2 = vpop.f32.mrf.mxu1 }
0x3657   :  { %v7609_v20 = vpop.f32.mrf.mxu0 }
0x3658   :  { %12862 = vmatmul.mubr.msk.f32.vlgmr.msra.gmra.mxu1 %vm192_vm2, %v7609_v20 }
0x3659   :  { %v12858_v25 = vpop.f32.mrf.mxu0  ;;  %12876 = vmatpush3.msra.mxu1 %v13425_v50 }
0x365a   :  { %12877 = vmatprep.subr.mxu1 %v13431_v26  ;;  %v13439_v25 = vld [vmem:[%s15318_s7 + $0x10] sm:$0xff] }
0x365b   :  { %12878 = vmatpush3.msra.mxu1 %v13431_v26  ;;  %v13440_v26 = vld [vmem:[%s15318_s7 + $0x8] sm:$0xff] }
0x365c   :  { %12879 = vmatprep.subr.mxu1 %v13432_v27 }
0x365d   :  { %12880 = vmatpush3.msra.mxu1 %v13432_v27  ;;  %v13441_v27 = vld [vmem:[%s15318_s7] sm:$0xff] }
0x365e   :  { %12881 = vmatprep.subr.mxu1 %v13433_v0 }
0x365f   :  { %12882 = vmatpush3.msra.mxu1 %v13433_v0  ;;  %v13442_v0 = vld [vmem:[%s15323_s12] ss:$0 sm:$0xff] }
0x3660   :  { %12883 = vmatprep.subr.mxu1 %v13434_v1 }
0x3661   :  { %12884 = vmatpush3.msra.mxu1 %v13434_v1 }
0x3662   :  { %12885 = vmatprep.subr.mxu1 %v13435_v3 }
0x3663   :  { %12886 = vmatpush3.msra.mxu1 %v13435_v3 }
0x3664   :  { %12887 = vmatprep.subr.mxu1 %v13436_v9 }
0x3665   :  { %12888 = vmatpush3.msra.mxu1 %v13436_v9 }
0x3666   :  { %12889 = vmatprep.subr.mxu1 %v13437_v14 }
0x3667   :  { %12890 = vmatpush3.msra.mxu1 %v13437_v14 }
0x3668   :  { %12910 = vmatprep.subr.mxu1 %v13498_v6 }
0x3718   :  { %v12863_v16 = vpop.f32.mrf.mxu1 }
0x3719   :  { %v7695_v53 = vadd.f32 %v12863_v16, %v14713_v19 }
0x371a   :  { %v7685_v18 = vpop.f32.mrf.mxu1 }
0x371b   :  { %v7697_v5 = vadd.f32 %v13438_v12, %v7695_v53  ;;  %v7694_v33 = vadd.f32 %v7685_v18, %v14715_v62 }
0x371d   :  { %v7696_v49 = vadd.f32 %v13438_v12, %v7694_v33  ;;  %v7699_v34 = vadd.f32 %v7697_v5, %v14517_v58 }
0x371f   :  { %v7703_v39 = vsel %vm107_vm0, %v7699_v34, 0.0  ;;  %v7698_v36 = vadd.f32 %v7696_v49, %v14514_v4 }
0x3720   :  { %7704 = vadd.xlane.f32.xlu0 %v7703_v39 }
0x3721   :  { %v7700_v38 = vsel %vm107_vm0, %v7698_v36, 0.0 }
0x3722   :  { %7701 = vadd.xlane.f32.xlu1 %v7700_v38 }
0x37a9   :  { %v7705_v19 = vpop.xlane.xlu0 %7704 }
0x37aa   :  { %v7707_v30 = vmul.f32 0.03125, %v7705_v19 }
0x37ab   :  { %v7702_v42 = vpop.xlane.xlu1 %7701 }
0x37ac   :  { %v7709_v35 = vsub.f32 %v7699_v34, %v7707_v30  ;;  %v7706_v47 = vmul.f32 0.03125, %v7702_v42 }
0x37ae   :  { %v7708_v37 = vsub.f32 %v7698_v36, %v7706_v47  ;;  %v7711_v40 = vmul.f32 %v7709_v35, %v7709_v35 }
0x37b0   :  { %v7715_v62 = vsel %vm107_vm0, %v7711_v40, 0.0  ;;  %v7710_v57 = vmul.f32 %v7708_v37, %v7708_v37 }
0x37b1   :  { %7716 = vadd.xlane.f32.xlu1 %v7715_v62 }
0x37b2   :  { %v7712_v58 = vsel %vm107_vm0, %v7710_v57, 0.0 }
0x37b3   :  { %7713 = vadd.xlane.f32.xlu0 %v7712_v58 }
0x383a   :  { %v7717_v59 = vpop.xlane.xlu1 %7716 }
0x383b   :  { %v7719_v4 = vmul.f32 0.03125, %v7717_v59 }
0x383c   :  { %v7714_v43 = vpop.xlane.xlu0 %7713 }
0x383d   :  { %v7721_v50 = vadd.f32 1e-05, %v7719_v4  ;;  %v7718_v52 = vmul.f32 0.03125, %v7714_v43 }
0x383f   :  { %13321 = vrsqrt.f32 %v7721_v50  ;;  %v7720_v56 = vadd.f32 1e-05, %v7718_v52 }
0x3841   :  { %13323 = vrsqrt.f32 %v7720_v56 }
0x384c   :  { %v13322_v21 = vpop.eup %13321 }
0x384d   :  { %v7725_v28 = vmul.f32 %v13322_v21, %v7709_v35 }
0x384e   :  { %v13324_v48 = vpop.eup %13323 }
0x384f   :  { %v7724_v60 = vmul.f32 %v13324_v48, %v7708_v37  ;;  %v7727_v63 = vmul.f32 %v14488_v61, %v7725_v28 }
0x3851   :  { %v7726_v41 = vmul.f32 %v14488_v61, %v7724_v60  ;;  %v7729_v20 = vadd.f32 %v14495_v32, %v7727_v63 }
0x3853   :  { %v7728_v2 = vadd.f32 %v14495_v32, %v7726_v41 }
0x3855   :  { %12872 = vmatprep.mubr.msk.f32.mxu0 %vm107_vm0, %v7728_v2 }
0x3856   :  { %12873 = vmatmul.mubr.msk.f32.vlgmr.msra.gmra.mxu0 %vm107_vm0, %v7729_v20 }
0x3857   :  { %12895 = vmatpush3.msra.mxu0 %v14753_v10 }
0x3858   :  { %12896 = vmatprep.subr.mxu0 %v13439_v25 }
0x3859   :  { %12897 = vmatpush3.msra.mxu0 %v13439_v25 }
0x385a   :  { %12898 = vmatprep.subr.mxu0 %v13440_v26 }
0x385b   :  { %12899 = vmatpush3.msra.mxu0 %v13440_v26 }
0x385c   :  { %12900 = vmatprep.subr.mxu0 %v13441_v27 }
0x385d   :  { %12901 = vmatpush3.msra.mxu0 %v13441_v27 }
0x385e   :  { %12905 = vmatprep.subr.mxu0 %v13498_v6 }
0x3916   :  { %v12874_v10 = vpop.f32.mrf.mxu0 }
0x3917   :  { %v7808_v1 = vadd.f32 %v13442_v0, %v12874_v10 }
0x3918   :  { %v7802_v3 = vpop.f32.mrf.mxu0 }
0x3919   :  { %v7803_v9 = vadd.f32 %v13442_v0, %v7802_v3  ;;  %v7812_v16 = vmax.f32 %v7808_v1, 0.0  ;;  %v14861_v3 = vld [vmem:[%s15376_s27] sm:$0xff] }
0x391b   :  { %v7811_v14 = vmax.f32 %v7803_v9, 0.0 }
0x391d   :  { %12891 = vmatprep.mubr.msk.f32.mxu1 %vm1992_vm3, %v7811_v14 }
0x391e   :  { %12892 = vmatmul.mubr.msk.f32.vlgmr.msra.gmra.mxu1 %vm1992_vm3, %v7812_v16 }
0x391f   :  { %12912 = vmatprep.mubr.msk.f32.mxu1 %vm13499_vm1, %v13498_v6 }
0x39de   :  { %v12893_v53 = vpop.f32.mrf.mxu1 }
0x39df   :  { %v7891_v18 = vadd.f32 %v14433_v7, %v12893_v53 }
0x39e0   :  { %v7885_v12 = vpop.f32.mrf.mxu1 }
0x39e1   :  { %v7895_v5 = vadd.f32 %v7891_v18, %v7729_v20  ;;  %v7886_v33 = vadd.f32 %v14433_v7, %v7885_v12 }
0x39e3   :  { %v7894_v49 = vadd.f32 %v7886_v33, %v7728_v2  ;;  %v7899_v34 = vsel %vm107_vm0, %v7895_v5, 0.0 }
0x39e4   :  { %7900 = vadd.xlane.f32.xlu1 %v7899_v34 }
0x39e5   :  { %v7896_v39 = vsel %vm107_vm0, %v7894_v49, 0.0 }
0x39e6   :  { %7897 = vadd.xlane.f32.xlu0 %v7896_v39 }
0x3a6d   :  { %v7901_v36 = vpop.xlane.xlu1 %7900 }
0x3a6e   :  { %v7903_v38 = vmul.f32 0.03125, %v7901_v36 }
0x3a6f   :  { %v7898_v19 = vpop.xlane.xlu0 %7897 }
0x3a70   :  { %v7905_v30 = vsub.f32 %v7895_v5, %v7903_v38  ;;  %v7902_v42 = vmul.f32 0.03125, %v7898_v19 }
0x3a72   :  { %v7904_v35 = vsub.f32 %v7894_v49, %v7902_v42  ;;  %v7907_v47 = vmul.f32 %v7905_v30, %v7905_v30 }
0x3a74   :  { %v7911_v37 = vsel %vm107_vm0, %v7907_v47, 0.0  ;;  %v7906_v40 = vmul.f32 %v7904_v35, %v7904_v35 }
0x3a75   :  { %7912 = vadd.xlane.f32.xlu1 %v7911_v37 }
0x3a76   :  { %v7908_v7 = vsel %vm107_vm0, %v7906_v40, 0.0 }
0x3a77   :  { %7909 = vadd.xlane.f32.xlu0 %v7908_v7 }
0x3afe   :  { %v7913_v62 = vpop.xlane.xlu1 %7912 }
0x3aff   :  { %v7915_v57 = vmul.f32 0.03125, %v7913_v62 }
0x3b00   :  { %v7910_v58 = vpop.xlane.xlu0 %7909 }
0x3b01   :  { %v7917_v59 = vadd.f32 1e-05, %v7915_v57  ;;  %v7914_v4 = vmul.f32 0.03125, %v7910_v58 }
0x3b03   :  { %13325 = vrsqrt.f32 %v7917_v59  ;;  %v7916_v43 = vadd.f32 1e-05, %v7914_v4 }
0x3b05   :  { %13327 = vrsqrt.f32 %v7916_v43 }
0x3b10   :  { %v13326_v50 = vpop.eup %13325 }
0x3b11   :  { %v7921_v52 = vmul.f32 %v13326_v50, %v7905_v30 }
0x3b12   :  { %v13328_v56 = vpop.eup %13327 }
0x3b13   :  { %v7920_v21 = vmul.f32 %v13328_v56, %v7904_v35  ;;  %v7923_v28 = vmul.f32 %v14488_v61, %v7921_v52 }
0x3b15   :  { %v7922_v48 = vmul.f32 %v14488_v61, %v7920_v21  ;;  %v14827_v63 = vadd.f32 %v14495_v32, %v7923_v28  ;;  %v13443_v61 = vld [vmem:[%s15319_s8] ss:$0 sm:$0xff]  ;;  %s15388_s8 = sld [smem:[#allocation12_spill]] }
0x3b17   :  { %v14824_v60 = vadd.f32 %v14495_v32, %v7922_v48 }
0x3b19   :  { %12902 = vmatprep.mubr.msk.f32.mxu0 %vm107_vm0, %v14824_v60 }
0x3b1a   :  { %12903 = vmatmul.mubr.msk.f32.vlgmr.msra.gmra.mxu0 %vm107_vm0, %v14827_v63 }
0x3b1b   :  { %12907 = vmatprep.mubr.msk.f32.mxu0 %vm13499_vm1, %v13498_v6 }
0x3bda   :  { %v12904_v41 = vpop.f32.mrf.mxu0 }
0x3bdb   :  { %v14838_v2 = vadd.f32 %v13443_v61, %v12904_v41 }
0x3bdc   :  { %v7998_v20 = vpop.f32.mrf.mxu0 }
0x3bdd   :  { %v14840_v25 = vadd.f32 %v13443_v61, %v7998_v20  ;;  %8085 = vrot.lane.b32.xlu1 %v14838_v2, %s15381_s3 }
0x3bdf   :  { %8008 = vrot.lane.b32.xlu0 %v14840_v25, %s15381_s3 }
0x3c4f   :  { %v8086_v32 = vpop.permute.xlu1 %8085 }
0x3c50   :  { %12911 = vmatpush3.xpose.msk.msra.mxu1 %vm192_vm2, %v8086_v32 }
0x3c51   :  { %v8009_v26 = vpop.permute.xlu0 %8008  ;;  %12920 = vmatprep.subr.mxu1 %v13498_v6 }
0x3c52   :  { %12906 = vmatpush3.xpose.msk.msra.mxu0 %vm192_vm2, %v8009_v26 }
0x3c53   :  { %12913 = vmatmul.mubr.msk.f32.vlgmr.msra.gmra.mxu1 %vm192_vm2, %v14838_v2  ;;  %12915 = vmatprep.subr.mxu0 %v13498_v6 }
0x3c54   :  { %12922 = vmatprep.mubr.msk.f32.mxu1 %vm13499_vm1, %v13498_v6 }
0x3c55   :  { %12908 = vmatmul.mubr.msk.f32.vlgmr.msra.gmra.mxu0 %vm192_vm2, %v14840_v25 }
0x3c56   :  { %12917 = vmatprep.mubr.msk.f32.mxu0 %vm13499_vm1, %v13498_v6 }
0x3d13   :  { %v8157_v27 = vpop.f32.mrf.mxu1 }
0x3d14   :  { %v8162_v10 = vmul.f32 0.35355338, %v8157_v27 }
0x3d15   :  { %v8080_v0 = vpop.f32.mrf.mxu0  ;;  %v12914_v1 = vpop.f32.mrf.mxu1 }
0x3d16   :  { %v8164_v9 = vadd.f32 %v14861_v3, %v8162_v10  ;;  %v8161_v14 = vmul.f32 0.35355338, %v8080_v0 }
0x3d17   :  { %v12909_v16 = vpop.f32.mrf.mxu0 }
0x3d18   :  { %v8163_v53 = vadd.f32 %v14861_v3, %v8161_v14  ;;  %v8168_v18 = vsel %vm192_vm2, %v8164_v9, -inf }
0x3d19   :  { %8169 = vmax.xlane.f32.xlu0 %v8168_v18 }
0x3d1a   :  { %v8165_v12 = vsel %vm192_vm2, %v8163_v53, -inf }
0x3d1b   :  { %8166 = vmax.xlane.f32.xlu1 %v8165_v12 }
0x3d2c   :  { %8263 = vrot.lane.b32.xlu1 %v14838_v2, %s15384_s18 }
0x3d2f   :  { %8187 = vrot.lane.b32.xlu0 %v14840_v25, %s15384_s18 }
0x3d30   :  { %8341 = vrot.lane.b32.xlu1 %v14840_v25, %s15383_s1 }
0x3da2   :  { %v8170_v5 = vpop.xlane.xlu0 %8169 }
0x3da3   :  { %v8172_v33 = vsub.f32 %v8164_v9, %v8170_v5 }
0x3da4   :  { %v8167_v49 = vpop.xlane.xlu1 %8166 }
0x3da5   :  { %v8175_v34 = vmul.f32 1.442695, %v8172_v33  ;;  %v8171_v39 = vsub.f32 %v8163_v53, %v8167_v49 }
0x3da6   :  { %v8188_v36 = vpop.permute.xlu0 %8187 }
0x3da7   :  { %13329 = vpow2.f32 %v8175_v34  ;;  %v8173_v38 = vmul.f32 1.442695, %v8171_v39  ;;  %12916 = vmatpush3.msra.mxu0 %v8188_v36 }
0x3da8   :  { %v8264_v19 = vpop.permute.xlu1 %8263  ;;  %12925 = vmatprep.subr.mxu0 %v13498_v6 }
0x3da9   :  { %13331 = vpow2.f32 %v8173_v38  ;;  %12921 = vmatpush3.msra.mxu1 %v8264_v19 }
0x3daa   :  { %12930 = vmatprep.subr.mxu1 %v13498_v6 }
0x3dac   :  { %v8342_v37 = vpop.permute.xlu1 %8341 }
0x3db4   :  { %v13330_v30 = vpop.eup %13329 }
0x3db5   :  { %v8180_v42 = vsel %vm192_vm2, %v13330_v30, 0.0 }
0x3db6   :  { %v13332_v35 = vpop.eup %13331  ;;  %8181 = vadd.xlane.f32.xlu1 %v8180_v42  ;;  %v13446_v42 = vld [vmem:[%s15320_s9 + $0x8] sm:$0xff] }
0x3db7   :  { %v8177_v47 = vsel %vm192_vm2, %v13332_v35, 0.0 }
0x3db8   :  { %8178 = vadd.xlane.f32.xlu0 %v8177_v47 }
0x3dc7   :  { %8339 = vrot.lane.b32.xlu1 %v14840_v25, %s15382_s21 }
0x3dce   :  { %8419 = vrot.lane.b32.xlu0 %v14838_v2, %s15383_s1  ;;  %s15385_s1 = sld [smem:[#allocation9_spill]] }
0x3dd2   :  { %8417 = vrot.lane.b32.xlu0 %v14838_v2, %s15382_s21 }
0x3e3f   :  { %v8182_v40 = vpop.xlane.xlu1 %8181 }
0x3e40   :  { %13333 = vrcp.f32 %v8182_v40 }
0x3e41   :  { %v8179_v7 = vpop.xlane.xlu0 %8178 }
0x3e42   :  { %13335 = vrcp.f32 %v8179_v7 }
0x3e43   :  { %v8340_v50 = vpop.permute.xlu1 %8339 }
0x3e45   :  { %v8420_v57 = vpop.permute.xlu0 %8419 }
0x3e49   :  { %v8418_v43 = vpop.permute.xlu0 %8417 }
0x3e4d   :  { %v13334_v62 = vpop.eup %13333 }
0x3e4e   :  { %v8186_v58 = vmul.f32 %v13334_v62, %v13330_v30  ;;  %v13445_v30 = vld [vmem:[%s15320_s9] sm:$0xff] }
0x3e4f   :  { %v13336_v59 = vpop.eup %13335 }
0x3e50   :  { %12923 = vmatmul.mubr.msk.f32.vlgmr.msra.gmra.mxu1 %vm192_vm2, %v8186_v58  ;;  %v8185_v4 = vmul.f32 %v13336_v59, %v13332_v35 }
0x3e51   :  { %12931 = vmatpush3.xpose.msk.msra.mxu1 %vm192_vm2, %v8420_v57  ;;  %12932 = vmatprep.mubr.msk.f32.mxu1 %vm13499_vm1, %v13498_v6 }
0x3e52   :  { %12918 = vmatmul.mubr.msk.f32.vlgmr.msra.gmra.mxu0 %vm192_vm2, %v8185_v4  ;;  %12940 = vmatprep.subr.mxu1 %v13498_v6 }
0x3e53   :  { %12926 = vmatpush3.xpose.msk.msra.mxu0 %vm192_vm2, %v8342_v37  ;;  %12927 = vmatprep.mubr.msk.f32.mxu0 %vm13499_vm1, %v13498_v6 }
0x3e54   :  { %12933 = vmatmul.mubr.msk.f32.vlgmr.msra.gmra.mxu1 %vm192_vm2, %v8418_v43  ;;  %12935 = vmatprep.subr.mxu0 %v13498_v6 }
0x3e55   :  { %12942 = vmatprep.mubr.msk.f32.mxu1 %vm13499_vm1, %v13498_v6 }
0x3e56   :  { %12928 = vmatmul.mubr.msk.f32.vlgmr.msra.gmra.mxu0 %vm192_vm2, %v8340_v50 }
0x3e57   :  { %12937 = vmatprep.mubr.msk.f32.mxu0 %vm13499_vm1, %v13498_v6 }
0x3f10   :  { %v8335_v52 = vpop.f32.mrf.mxu1 }
0x3f12   :  { %v8259_v56 = vpop.f32.mrf.mxu0  ;;  %v12924_v21 = vpop.f32.mrf.mxu1 }
0x3f14   :  { %v12919_v28 = vpop.f32.mrf.mxu0  ;;  %v8491_v48 = vpop.f32.mrf.mxu1 }
0x3f15   :  { %v8496_v41 = vmul.f32 0.35355338, %v8491_v48 }
0x3f16   :  { %v8413_v61 = vpop.f32.mrf.mxu0  ;;  %v12934_v20 = vpop.f32.mrf.mxu1 }
0x3f17   :  { %v8498_v32 = vadd.f32 %v14861_v3, %v8496_v41  ;;  %v8495_v26 = vmul.f32 0.35355338, %v8413_v61 }
0x3f18   :  { %v12929_v27 = vpop.f32.mrf.mxu0 }
0x3f19   :  { %v8497_v10 = vadd.f32 %v14861_v3, %v8495_v26  ;;  %v8502_v0 = vsel %vm192_vm2, %v8498_v32, -inf }
0x3f1a   :  { %8503 = vmax.xlane.f32.xlu0 %v8502_v0 }
0x3f1b   :  { %v8499_v1 = vsel %vm192_vm2, %v8497_v10, -inf }
0x3f1c   :  { %8500 = vmax.xlane.f32.xlu1 %v8499_v1 }
0x3fa3   :  { %v8504_v9 = vpop.xlane.xlu0 %8503 }
0x3fa4   :  { %v8506_v14 = vsub.f32 %v8498_v32, %v8504_v9 }
0x3fa5   :  { %v8501_v16 = vpop.xlane.xlu1 %8500 }
0x3fa6   :  { %v8509_v53 = vmul.f32 1.442695, %v8506_v14  ;;  %v8505_v18 = vsub.f32 %v8497_v10, %v8501_v16 }
0x3fa8   :  { %13337 = vpow2.f32 %v8509_v53  ;;  %v8507_v12 = vmul.f32 1.442695, %v8505_v18 }
0x3faa   :  { %13339 = vpow2.f32 %v8507_v12 }
0x3fb5   :  { %v13338_v5 = vpop.eup %13337 }
0x3fb6   :  { %v8514_v33 = vsel %vm192_vm2, %v13338_v5, 0.0 }
0x3fb7   :  { %v13340_v49 = vpop.eup %13339  ;;  %8515 = vadd.xlane.f32.xlu1 %v8514_v33 }
0x3fb8   :  { %v8511_v34 = vsel %vm192_vm2, %v13340_v49, 0.0 }
0x3fb9   :  { %8512 = vadd.xlane.f32.xlu0 %v8511_v34 }
0x3fc8   :  { %8597 = vrot.lane.b32.xlu1 %v14838_v2, %s15377_s23 }
0x3fcc   :  { %8837 = vrot.lane.b32.xlu1 %v14840_v25, %s15378_s28 }
0x3fcf   :  { %8521 = vrot.lane.b32.xlu0 %v14840_v25, %s15377_s23 }
0x3fd0   :  { %8835 = vrot.lane.b32.xlu1 %v14840_v25, %s15379_s2 }
0x3fd3   :  { %8915 = vrot.lane.b32.xlu0 %v14838_v2, %s15378_s28 }
0x3fd7   :  { %8913 = vrot.lane.b32.xlu0 %v14838_v2, %s15379_s2 }
0x4040   :  { %v8516_v39 = vpop.xlane.xlu1 %8515 }
0x4041   :  { %13341 = vrcp.f32 %v8516_v39 }
0x4042   :  { %v8513_v36 = vpop.xlane.xlu0 %8512 }
0x4043   :  { %13343 = vrcp.f32 %v8513_v36 }
0x4044   :  { %v8598_v38 = vpop.permute.xlu1 %8597 }
0x4045   :  { %12941 = vmatpush3.msra.mxu1 %v8598_v38 }
0x4046   :  { %v8522_v19 = vpop.permute.xlu0 %8521  ;;  %12950 = vmatprep.subr.mxu1 %v13445_v30 }
0x4047   :  { %12936 = vmatpush3.msra.mxu0 %v8522_v19 }
0x4048   :  { %12945 = vmatprep.subr.mxu0 %v13446_v42  ;;  %v8838_v58 = vpop.permute.xlu1 %8837 }
0x404a   :  { %v8916_v7 = vpop.permute.xlu0 %8915 }
0x404e   :  { %v13342_v35 = vpop.eup %13341  ;;  %v8914_v62 = vpop.permute.xlu0 %8913 }
0x404f   :  { %v8520_v47 = vmul.f32 %v13342_v35, %v13338_v5 }
0x4050   :  { %v13344_v37 = vpop.eup %13343 }
0x4051   :  { %12943 = vmatmul.mubr.msk.f32.vlgmr.msra.gmra.mxu1 %vm192_vm2, %v8520_v47  ;;  %v8519_v40 = vmul.f32 %v13344_v37, %v13340_v49  ;;  %v13447_v37 = vld [vmem:[%s15320_s9 + $0x10] sm:$0xff] }
0x4052   :  { %12952 = vmatprep.mubr.msk.f32.mxu1 %vm192_vm2, %v8259_v56  ;;  %12951 = vmatpush3.msra.mxu1 %v13445_v30  ;;  %v8836_v56 = vpop.permute.xlu1 %8835 }
0x4053   :  { %12938 = vmatmul.mubr.msk.f32.vlgmr.msra.gmra.mxu0 %vm192_vm2, %v8519_v40  ;;  %12960 = vmatprep.subr.mxu1 %v13498_v6 }
0x4054   :  { %12946 = vmatpush3.msra.mxu0 %v13446_v42 }
0x4055   :  { %12953 = vmatmul.mubr.msk.f32.vlgmr.msra.gmra.mxu1 %vm192_vm2, %v8335_v52  ;;  %12955 = vmatprep.subr.mxu0 %v13498_v6 }
0x4056   :  { %12961 = vmatpush3.xpose.msk.msra.mxu1 %vm192_vm2, %v8916_v7  ;;  %12962 = vmatprep.mubr.msk.f32.mxu1 %vm13499_vm1, %v13498_v6 }
0x4057   :  { %12970 = vmatprep.subr.mxu1 %v13498_v6 }
0x4059   :  { %12963 = vmatmul.mubr.msk.f32.vlgmr.msra.gmra.mxu1 %vm192_vm2, %v8914_v62 }
0x405a   :  { %12972 = vmatprep.mubr.msk.f32.mxu1 %vm13499_vm1, %v13498_v6 }
0x4111   :  { %v8669_v57 = vpop.f32.mrf.mxu1 }
0x4113   :  { %v8593_v59 = vpop.f32.mrf.mxu0  ;;  %v12944_v4 = vpop.f32.mrf.mxu1 }
0x4114   :  { %12947 = vmatprep.mubr.msk.f32.mxu0 %vm192_vm2, %v8593_v59 }
0x4115   :  { %v12939_v43 = vpop.f32.mrf.mxu0  ;;  %12948 = vmatmul.mubr.msk.f32.vlgmr.msra.gmra.mxu0 %vm192_vm2, %v8669_v57  ;;  %v14938_v50 = vpop.f32.mrf.mxu1 }
0x4116   :  { %12956 = vmatpush3.xpose.msk.msra.mxu0 %vm192_vm2, %v8838_v58  ;;  %12957 = vmatprep.mubr.msk.f32.mxu0 %vm13499_vm1, %v13498_v6 }
0x4117   :  { %v14943_v52 = vpop.f32.mrf.mxu1  ;;  %12965 = vmatprep.subr.mxu0 %v13498_v6 }
0x4119   :  { %12958 = vmatmul.mubr.msk.f32.vlgmr.msra.gmra.mxu0 %vm192_vm2, %v8836_v56  ;;  %v8987_v21 = vpop.f32.mrf.mxu1 }
0x411a   :  { %v8992_v28 = vmul.f32 0.35355338, %v8987_v21  ;;  %12967 = vmatprep.mubr.msk.f32.mxu0 %vm13499_vm1, %v13498_v6 }
0x411b   :  { %v12964_v48 = vpop.f32.mrf.mxu1 }
0x411c   :  { %v8994_v41 = vadd.f32 %v14861_v3, %v8992_v28 }
0x411e   :  { %v8998_v61 = vsel %vm192_vm2, %v8994_v41, -inf }
0x411f   :  { %8999 = vmax.xlane.f32.xlu0 %v8998_v61 }
0x41a8   :  { %v9000_v20 = vpop.xlane.xlu0 %8999 }
0x41a9   :  { %v9002_v32 = vsub.f32 %v8994_v41, %v9000_v20 }
0x41ab   :  { %v9005_v26 = vmul.f32 1.442695, %v9002_v32 }
0x41ad   :  { %13345 = vpow2.f32 %v9005_v26 }
0x41ba   :  { %v13346_v53 = vpop.eup %13345 }
0x41bb   :  { %v9010_v18 = vsel %vm192_vm2, %v13346_v53, 0.0 }
0x41d5   :  { %v14951_v27 = vpop.f32.mrf.mxu0 }
0x41d6   :  { %v8832_v26 = vadd.f32 %v14938_v50, %v14951_v27 }
0x41d7   :  { %v14953_v10 = vpop.f32.mrf.mxu0 }
0x41d9   :  { %v8909_v0 = vpop.f32.mrf.mxu0 }
0x41da   :  { %v8991_v1 = vmul.f32 0.35355338, %v8909_v0 }
0x41db   :  { %v12959_v9 = vpop.f32.mrf.mxu0 }
0x41dc   :  { %v8993_v14 = vadd.f32 %v14861_v3, %v8991_v1  ;;  %v8827_v1 = vadd.f32 %v14943_v52, %v14953_v10 }
0x41de   :  { %v8995_v16 = vsel %vm192_vm2, %v8993_v14, -inf }
0x41df   :  { %8996 = vmax.xlane.f32.xlu1 %v8995_v16 }
0x41e3   :  { %9011 = vadd.xlane.f32.xlu1 %v9010_v18 }
0x41f4   :  { %9093 = vrot.lane.b32.xlu1 %v14838_v2, %s15380_s25 }
0x41f8   :  { %9254 = vrot.lane.b32.xlu1 %v14840_v25, %s15372_s29 }
0x41fc   :  { %9252 = vrot.lane.b32.xlu1 %v14840_v25, %s15373_s0 }
0x4268   :  { %v8997_v12 = vpop.xlane.xlu1 %8996 }
0x4269   :  { %v9001_v5 = vsub.f32 %v8993_v14, %v8997_v12 }
0x426b   :  { %v9003_v33 = vmul.f32 1.442695, %v9001_v5 }
0x426c   :  { %v9012_v49 = vpop.xlane.xlu1 %9011 }
0x426d   :  { %13347 = vpow2.f32 %v9003_v33 }
0x426e   :  { %13349 = vrcp.f32 %v9012_v49 }
0x4270   :  { %v9094_v34 = vpop.permute.xlu1 %9093 }
0x4271   :  { %12971 = vmatpush3.msra.mxu1 %v9094_v34 }
0x4272   :  { %12980 = vmatprep.subr.mxu1 %v13498_v6 }
0x4274   :  { %v9255_v38 = vpop.permute.xlu1 %9254 }
0x4278   :  { %v9253_v42 = vpop.permute.xlu1 %9252 }
0x427a   :  { %v13348_v39 = vpop.eup %13347 }
0x427b   :  { %v13350_v36 = vpop.eup %13349  ;;  %v9007_v19 = vsel %vm192_vm2, %v13348_v39, 0.0 }
0x427c   :  { %9008 = vadd.xlane.f32.xlu0 %v9007_v19  ;;  %v9016_v30 = vmul.f32 %v13350_v36, %v13346_v53 }
0x427e   :  { %12973 = vmatmul.mubr.msk.f32.vlgmr.msra.gmra.mxu1 %vm192_vm2, %v9016_v30 }
0x427f   :  { %12981 = vmatpush3.xpose.msk.msra.mxu1 %vm192_vm2, %v9255_v38  ;;  %12982 = vmatprep.mubr.msk.f32.mxu1 %vm13499_vm1, %v13498_v6 }
0x4280   :  { %12990 = vmatprep.subr.mxu1 %v13498_v6 }
0x4282   :  { %12983 = vmatmul.mubr.msk.f32.vlgmr.msra.gmra.mxu1 %vm192_vm2, %v9253_v42 }
0x4283   :  { %12992 = vmatprep.mubr.msk.f32.mxu1 %vm13499_vm1, %v13498_v6 }
0x4292   :  { %9017 = vrot.lane.b32.xlu0 %v14840_v25, %s15380_s25 }
0x4296   :  { %9332 = vrot.lane.b32.xlu0 %v14838_v2, %s15372_s29 }
0x429a   :  { %9330 = vrot.lane.b32.xlu0 %v14838_v2, %s15373_s0 }
0x4305   :  { %v9009_v35 = vpop.xlane.xlu0 %9008 }
0x4306   :  { %13351 = vrcp.f32 %v9009_v35  ;;  %v13449_v35 = vld [vmem:[%s15370_s20 + $0x18] sm:$0xff] }
0x4309   :  { %v9018_v47 = vpop.permute.xlu0 %9017 }
0x430a   :  { %12966 = vmatpush3.msra.mxu0 %v9018_v47 }
0x430b   :  { %12975 = vmatprep.subr.mxu0 %v13447_v37 }
0x430d   :  { %v9333_v21 = vpop.permute.xlu0 %9332 }
0x4311   :  { %v9331_v41 = vpop.permute.xlu0 %9330 }
0x4313   :  { %v13352_v40 = vpop.eup %13351 }
0x4314   :  { %v9015_v7 = vmul.f32 %v13352_v40, %v13348_v39  ;;  %v13450_v40 = vld [vmem:[%s15370_s20 + $0x10] sm:$0xff] }
0x4316   :  { %12968 = vmatmul.mubr.msk.f32.vlgmr.msra.gmra.mxu0 %vm192_vm2, %v9015_v7  ;;  %v13452_v7 = vld [vmem:[%s15370_s20] sm:$0xff] }
0x4317   :  { %12976 = vmatpush3.msra.mxu0 %v13447_v37 }
0x4318   :  { %12985 = vmatprep.subr.mxu0 %v13498_v6 }
0x433e   :  { %v9165_v62 = vpop.f32.mrf.mxu1 }
0x4340   :  { %v12974_v57 = vpop.f32.mrf.mxu1 }
0x4342   :  { %v9326_v58 = vpop.f32.mrf.mxu1 }
0x4343   :  { %v9408_v59 = vmul.f32 0.35355338, %v9326_v58 }
0x4344   :  { %v12984_v4 = vpop.f32.mrf.mxu1 }
0x4345   :  { %v9410_v43 = vadd.f32 %v14861_v3, %v9408_v59 }
0x4347   :  { %v9412_v56 = vsel %vm192_vm2, %v9410_v43, -inf }
0x4348   :  { %9413 = vmax.xlane.f32.xlu1 %v9412_v56 }
0x43d1   :  { %v9414_v61 = vpop.xlane.xlu1 %9413 }
0x43d2   :  { %v9418_v20 = vsub.f32 %v9410_v43, %v9414_v61 }
0x43d4   :  { %v9420_v32 = vmul.f32 1.442695, %v9418_v20 }
0x43d6   :  { %v9089_v28 = vpop.f32.mrf.mxu0  ;;  %13353 = vpow2.f32 %v9420_v32 }
0x43d7   :  { %12977 = vmatprep.mubr.msk.f32.mxu0 %vm192_vm2, %v9089_v28 }
0x43d8   :  { %v12969_v48 = vpop.f32.mrf.mxu0  ;;  %12978 = vmatmul.mubr.msk.f32.vlgmr.msra.gmra.mxu0 %vm192_vm2, %v9165_v62 }
0x43d9   :  { %12986 = vmatpush3.xpose.msk.msra.mxu0 %vm192_vm2, %v9333_v21  ;;  %12987 = vmatprep.mubr.msk.f32.mxu0 %vm13499_vm1, %v13498_v6  ;;  %v13453_v21 = vld [vmem:[%s15321_s10] ss:$0 sm:$0xff]  ;;  %s13511_s10 = smov [#allocation2]  }
0x43da   :  { %12995 = vmatprep.subr.mxu0 %v13498_v6  ;;  %s11729_s3 = sshll.u32 %s13511_s10, 4  ;;  %s11730_s3 = int_to_ptr.vmem [resolvable:$true] %s11729_s3 }
0x43db   :  { %p13481_p1 = scmp.lt.s32.totalorder %s11730_s3, %s11730_s3 }
0x43dc   :  { %12988 = vmatmul.mubr.msk.f32.vlgmr.msra.gmra.mxu0 %vm192_vm2, %v9331_v41 }
0x43dd   :  { %12997 = vmatprep.mubr.msk.f32.mxu0 %vm13499_vm1, %v13498_v6 }
0x43e3   :  { %v13354_v49 = vpop.eup %13353 }
0x43e4   :  { %v9424_v34 = vsel %vm192_vm2, %v13354_v49, 0.0 }
0x4498   :  { %v12979_v0 = vpop.f32.mrf.mxu0 }
0x4499   :  { %v9251_v9 = vadd.f32 %v12979_v0, %v8832_v26 }
0x449a   :  { %v9241_v14 = vpop.f32.mrf.mxu0 }
0x449b   :  { %v15000_v16 = vadd.f32 %v9241_v14, %v8827_v1 }
0x449c   :  { %v9404_v53 = vpop.f32.mrf.mxu0 }
0x449d   :  { %v9409_v18 = vmul.f32 0.35355338, %v9404_v53 }
0x449e   :  { %v12989_v12 = vpop.f32.mrf.mxu0 }
0x449f   :  { %v9411_v5 = vadd.f32 %v14861_v3, %v9409_v18  ;;  %v13448_v3 = vld [vmem:[%s15320_s9 + $0x18] sm:$0xff]  ;;  %s15387_s9 = sld [smem:[#allocation11_spill]] }
0x44a1   :  { %v9415_v33 = vsel %vm192_vm2, %v9411_v5, -inf }
0x44a2   :  { %9416 = vmax.xlane.f32.xlu0 %v9415_v33 }
0x44a6   :  { %9425 = vadd.xlane.f32.xlu0 %v9424_v34 }
0x44bc   :  { %9434 = vrot.lane.b32.xlu0 %v14840_v25, %s15374_s26 }
0x452b   :  { %v9417_v50 = vpop.xlane.xlu0 %9416 }
0x452c   :  { %v9419_v52 = vsub.f32 %v9411_v5, %v9417_v50 }
0x452e   :  { %v9422_v27 = vmul.f32 1.442695, %v9419_v52 }
0x452f   :  { %v9426_v10 = vpop.xlane.xlu0 %9425 }
0x4530   :  { %13355 = vpow2.f32 %v9422_v27 }
0x4531   :  { %13357 = vrcp.f32 %v9426_v10 }
0x4533   :  { %v9435_v39 = vpop.permute.xlu0 %9434 }
0x4534   :  { %12991 = vmatpush3.msra.mxu1 %v9435_v39 }
0x4535   :  { %13000 = vmatprep.subr.mxu1 %v13448_v3 }
0x453d   :  { %v13356_v36 = vpop.eup %13355 }
0x453e   :  { %v13358_v38 = vpop.eup %13357  ;;  %v9427_v19 = vsel %vm192_vm2, %v13356_v36, 0.0 }
0x453f   :  { %9428 = vadd.xlane.f32.xlu1 %v9427_v19  ;;  %v9432_v30 = vmul.f32 %v13358_v38, %v13354_v49  ;;  %v15056_v19 = vld [vmem:[%s15327_s16] ss:$0 sm:$0xff] }
0x4541   :  { %12993 = vmatmul.mubr.msk.f32.vlgmr.msra.gmra.mxu1 %vm192_vm2, %v9432_v30 }
0x4542   :  { %13001 = vmatpush3.msra.mxu1 %v13448_v3  ;;  %v15049_v3 = vld [vmem:[%s15326_s15] ss:$0 sm:$0xff] }
0x4543   :  { %13016 = vmatprep.subr.mxu1 %v13498_v6 }
0x4550   :  { %9510 = vrot.lane.b32.xlu1 %v14838_v2, %s15374_s26  ;;  %v13451_v2 = vld [vmem:[%s15370_s20 + $0x8] sm:$0xff] }
0x45c8   :  { %v9429_v25 = vpop.xlane.xlu1 %9428 }
0x45c9   :  { %13359 = vrcp.f32 %v9429_v25 }
0x45cc   :  { %v9511_v42 = vpop.permute.xlu1 %9510 }
0x45cd   :  { %12996 = vmatpush3.msra.mxu0 %v9511_v42 }
0x45ce   :  { %13005 = vmatprep.subr.mxu0 %v13449_v35 }
0x45d6   :  { %v13360_v47 = vpop.eup %13359 }
0x45d7   :  { %v9433_v37 = vmul.f32 %v13360_v47, %v13356_v36  ;;  %v13456_v47 = vld [vmem:[%s15315_s4] ss:$0 sm:$0xff] }
0x45d9   :  { %12998 = vmatmul.mubr.msk.f32.vlgmr.msra.gmra.mxu0 %vm192_vm2, %v9433_v37 }
0x45da   :  { %13006 = vmatpush3.msra.mxu0 %v13449_v35 }
0x45db   :  { %13007 = vmatprep.subr.mxu0 %v13450_v40 }
0x45dc   :  { %13008 = vmatpush3.msra.mxu0 %v13450_v40 }
0x45dd   :  { %13009 = vmatprep.subr.mxu0 %v13451_v2 }
0x45de   :  { %13010 = vmatpush3.msra.mxu0 %v13451_v2 }
0x45df   :  { %13011 = vmatprep.subr.mxu0 %v13452_v7 }
0x45e0   :  { %13012 = vmatpush3.msra.mxu0 %v13452_v7 }
0x45e1   :  { %13026 = vmatprep.subr.mxu0 %v13498_v6 }
0x4601   :  { %v9506_v62 = vpop.f32.mrf.mxu1 }
0x4602   :  { %13002 = vmatprep.mubr.msk.f32.mxu1 %vm192_vm2, %v9506_v62 }
0x4603   :  { %v12994_v57 = vpop.f32.mrf.mxu1 }
0x4699   :  { %v9582_v58 = vpop.f32.mrf.mxu0 }
0x469a   :  { %13003 = vmatmul.mubr.msk.f32.vlgmr.msra.gmra.mxu1 %vm192_vm2, %v9582_v58 }
0x469b   :  { %13017 = vmatpush3.xpose.msk.msra.mxu1 %vm192_vm2, %v14527_v44  ;;  %v12999_v59 = vpop.f32.mrf.mxu0  ;;  %13018 = vmatprep.mubr.msk.f32.mxu1 %vm13499_vm1, %v13498_v6 }
0x469c   :  { %13021 = vmatprep.subr.mxu1 %v13498_v6 }
0x475a   :  { %v13004_v4 = vpop.f32.mrf.mxu1 }
0x475b   :  { %v9668_v43 = vadd.f32 %v13004_v4, %v9251_v9 }
0x475c   :  { %v9658_v56 = vpop.f32.mrf.mxu1 }
0x475d   :  { %v9670_v28 = vadd.f32 %v13453_v21, %v9668_v43  ;;  %v9667_v48 = vadd.f32 %v9658_v56, %v15000_v16 }
0x475f   :  { %v9669_v41 = vadd.f32 %v13453_v21, %v9667_v48  ;;  %v9672_v61 = vadd.f32 %v9670_v28, %v14827_v63 }
0x4761   :  { %v9676_v44 = vsel %vm107_vm0, %v9672_v61, 0.0  ;;  %v9671_v20 = vadd.f32 %v9669_v41, %v14824_v60 }
0x4762   :  { %9677 = vadd.xlane.f32.xlu0 %v9676_v44 }
0x4763   :  { %v9673_v32 = vsel %vm107_vm0, %v9671_v20, 0.0 }
0x4764   :  { %9674 = vadd.xlane.f32.xlu1 %v9673_v32 }
0x47eb   :  { %v9678_v26 = vpop.xlane.xlu0 %9677 }
0x47ec   :  { %v9680_v0 = vmul.f32 0.03125, %v9678_v26 }
0x47ed   :  { %v9675_v1 = vpop.xlane.xlu1 %9674 }
0x47ee   :  { %v9682_v9 = vsub.f32 %v9672_v61, %v9680_v0  ;;  %v9679_v14 = vmul.f32 0.03125, %v9675_v1 }
0x47f0   :  { %v9681_v53 = vsub.f32 %v9671_v20, %v9679_v14  ;;  %v9684_v18 = vmul.f32 %v9682_v9, %v9682_v9 }
0x47f2   :  { %v9688_v16 = vsel %vm107_vm0, %v9684_v18, 0.0  ;;  %v9683_v12 = vmul.f32 %v9681_v53, %v9681_v53 }
0x47f3   :  { %9689 = vadd.xlane.f32.xlu1 %v9688_v16 }
0x47f4   :  { %v9685_v63 = vsel %vm107_vm0, %v9683_v12, 0.0 }
0x47f5   :  { %9686 = vadd.xlane.f32.xlu0 %v9685_v63 }
0x487c   :  { %v9690_v5 = vpop.xlane.xlu1 %9689 }
0x487d   :  { %v9692_v60 = vmul.f32 0.03125, %v9690_v5 }
0x487e   :  { %v9687_v33 = vpop.xlane.xlu0 %9686 }
0x487f   :  { %v9694_v49 = vadd.f32 1e-05, %v9692_v60  ;;  %v9691_v34 = vmul.f32 0.03125, %v9687_v33 }
0x4881   :  { %13361 = vrsqrt.f32 %v9694_v49  ;;  %v9693_v50 = vadd.f32 1e-05, %v9691_v34 }
0x4883   :  { %13363 = vrsqrt.f32 %v9693_v50 }
0x488e   :  { %v13362_v52 = vpop.eup %13361 }
0x488f   :  { %v9698_v27 = vmul.f32 %v13362_v52, %v9682_v9 }
0x4890   :  { %v13364_v10 = vpop.eup %13363 }
0x4891   :  { %v9697_v39 = vmul.f32 %v13364_v10, %v9681_v53  ;;  %v9700_v36 = vmul.f32 %v15049_v3, %v9698_v27  ;;  %v13457_v53 = vld [vmem:[%s15385_s1 + $0x8] sm:$0xff] }
0x4893   :  { %v9699_v38 = vmul.f32 %v15049_v3, %v9697_v39  ;;  %v15062_v25 = vadd.f32 %v15056_v19, %v9700_v36 }
0x4895   :  { %v15059_v30 = vadd.f32 %v15056_v19, %v9699_v38 }
0x4897   :  { %13013 = vmatprep.mubr.msk.f32.mxu0 %vm107_vm0, %v15059_v30 }
0x4898   :  { %13014 = vmatmul.mubr.msk.f32.vlgmr.msra.gmra.mxu0 %vm107_vm0, %v15062_v25 }
0x4899   :  { %13027 = vmatpush3.msra.mxu0 %v14555_v15  ;;  %13028 = vmatprep.mubr.msk.f32.mxu0 %vm13499_vm1, %v13498_v6 }
0x489a   :  { %13036 = vmatprep.subr.mxu0 %v13498_v6 }
0x4958   :  { %v13015_v42 = vpop.f32.mrf.mxu0 }
0x4959   :  { %v15083_v15 = vadd.f32 %v13456_v47, %v13015_v42 }
0x495a   :  { %v9775_v35 = vpop.f32.mrf.mxu0 }
0x495b   :  { %v15075_v37 = vadd.f32 %v13456_v47, %v9775_v35 }
0x495d   :  { %13019 = vmatmul.mubr.msk.f32.vlgmr.msra.gmra.mxu1 %vm192_vm2, %v15075_v37 }
0x495e   :  { %13022 = vmatpush3.xpose.msk.msra.mxu1 %vm192_vm2, %v14525_v31  ;;  %13023 = vmatprep.mubr.msk.f32.mxu1 %vm13499_vm1, %v13498_v6 }
0x495f   :  { %13031 = vmatprep.subr.mxu1 %v13498_v6 }
0x4961   :  { %13024 = vmatmul.mubr.msk.f32.vlgmr.msra.gmra.mxu1 %vm192_vm2, %v15083_v15 }
0x4962   :  { %13032 = vmatpush3.msra.mxu1 %v14558_v17  ;;  %13033 = vmatprep.mubr.msk.f32.mxu1 %vm13499_vm1, %v13498_v6 }
0x4963   :  { %13041 = vmatprep.subr.mxu1 %v13498_v6 }
0x4a1d   :  { %v9853_v40 = vpop.f32.mrf.mxu1 }
0x4a1e   :  { %v9930_v2 = vmul.f32 0.35355338, %v9853_v40 }
0x4a1f   :  { %v13020_v31 = vpop.f32.mrf.mxu1 }
0x4a20   :  { %v9932_v7 = vsel %vm192_vm2, %v9930_v2, -inf }
0x4a21   :  { %9933 = vmax.xlane.f32.xlu0 %v9932_v7  ;;  %v9926_v62 = vpop.f32.mrf.mxu1 }
0x4a22   :  { %v9931_v57 = vmul.f32 0.35355338, %v9926_v62 }
0x4a23   :  { %v13025_v58 = vpop.f32.mrf.mxu1 }
0x4a24   :  { %v9935_v59 = vsel %vm192_vm2, %v9931_v57, -inf }
0x4a25   :  { %9936 = vmax.xlane.f32.xlu1 %v9935_v59 }
0x4aaa   :  { %v9934_v4 = vpop.xlane.xlu0 %9933 }
0x4aab   :  { %v9938_v43 = vsub.f32 %v9930_v2, %v9934_v4 }
0x4aad   :  { %v9940_v17 = vmul.f32 1.442695, %v9938_v43 }
0x4aae   :  { %v9937_v56 = vpop.xlane.xlu1 %9936 }
0x4aaf   :  { %13365 = vpow2.f32 %v9940_v17  ;;  %v9939_v21 = vsub.f32 %v9931_v57, %v9937_v56 }
0x4ab1   :  { %v9942_v28 = vmul.f32 1.442695, %v9939_v21 }
0x4ab3   :  { %13367 = vpow2.f32 %v9942_v28 }
0x4abc   :  { %v13366_v48 = vpop.eup %13365 }
0x4abd   :  { %v9944_v41 = vsel %vm192_vm2, %v13366_v48, 0.0 }
0x4abe   :  { %9945 = vadd.xlane.f32.xlu0 %v9944_v41 }
0x4ac0   :  { %v13368_v61 = vpop.eup %13367 }
0x4ac1   :  { %v9947_v44 = vsel %vm192_vm2, %v13368_v61, 0.0 }
0x4ac2   :  { %9948 = vadd.xlane.f32.xlu1 %v9947_v44 }
0x4ad3   :  { %10174 = vrot.lane.b32.xlu1 %v15083_v15, %s15382_s21 }
0x4ad4   :  { %10100 = vrot.lane.b32.xlu0 %v15075_v37, %s15382_s21 }
0x4b47   :  { %v9946_v20 = vpop.xlane.xlu0 %9945 }
0x4b48   :  { %13369 = vrcp.f32 %v9946_v20 }
0x4b4b   :  { %v9949_v32 = vpop.xlane.xlu1 %9948  ;;  %v10101_v14 = vpop.permute.xlu0 %10100 }
0x4b4c   :  { %13371 = vrcp.f32 %v9949_v32 }
0x4b55   :  { %v13370_v26 = vpop.eup %13369 }
0x4b56   :  { %v9952_v0 = vmul.f32 %v13370_v26, %v13366_v48 }
0x4b58   :  { %13029 = vmatmul.mubr.msk.f32.vlgmr.msra.gmra.mxu0 %vm192_vm2, %v9952_v0 }
0x4b59   :  { %v13372_v1 = vpop.eup %13371  ;;  %13037 = vmatpush3.xpose.msk.msra.mxu0 %vm192_vm2, %v14571_v13  ;;  %13038 = vmatprep.mubr.msk.f32.mxu0 %vm13499_vm1, %v13498_v6  ;;  %v10175_v13 = vpop.permute.xlu1 %10174 }
0x4b5a   :  { %v9953_v9 = vmul.f32 %v13372_v1, %v13368_v61  ;;  %13046 = vmatprep.subr.mxu0 %v13498_v6 }
0x4b5c   :  { %13034 = vmatmul.mubr.msk.f32.vlgmr.msra.gmra.mxu1 %vm192_vm2, %v9953_v9  ;;  %13039 = vmatmul.mubr.msk.f32.vlgmr.msra.gmra.mxu0 %vm192_vm2, %v10101_v14 }
0x4b5d   :  { %13042 = vmatpush3.xpose.msk.msra.mxu1 %vm192_vm2, %v14573_v29  ;;  %13047 = vmatpush3.msra.mxu0 %v14612_v23  ;;  %v13458_v29 = vld [vmem:[%s15385_s1] sm:$0xff] }
0x4b5e   :  { %13043 = vmatprep.mubr.msk.f32.mxu1 %vm13499_vm1, %v13498_v6  ;;  %13051 = vmatprep.subr.mxu1 %v13498_v6 }
0x4b5f   :  { %13048 = vmatprep.mubr.msk.f32.mxu0 %vm13499_vm1, %v13498_v6  ;;  %13056 = vmatprep.subr.mxu0 %v13457_v53 }
0x4b60   :  { %13044 = vmatmul.mubr.msk.f32.vlgmr.msra.gmra.mxu1 %vm192_vm2, %v10175_v13 }
0x4b61   :  { %13052 = vmatpush3.msra.mxu1 %v14609_v22  ;;  %13053 = vmatprep.mubr.msk.f32.mxu1 %vm13499_vm1, %v13498_v6 }
0x4b62   :  { %13061 = vmatprep.subr.mxu1 %v13458_v29 }
0x4c18   :  { %v10023_v23 = vpop.f32.mrf.mxu0 }
0x4c1a   :  { %v13030_v18 = vpop.f32.mrf.mxu0 }
0x4c1c   :  { %v10096_v16 = vpop.f32.mrf.mxu1  ;;  %v10170_v12 = vpop.f32.mrf.mxu0 }
0x4c1d   :  { %v10248_v63 = vmul.f32 0.35355338, %v10170_v12 }
0x4c1e   :  { %v13035_v5 = vpop.f32.mrf.mxu1  ;;  %v13040_v60 = vpop.f32.mrf.mxu0 }
0x4c1f   :  { %v10250_v33 = vsel %vm192_vm2, %v10248_v63, -inf }
0x4c20   :  { %10251 = vmax.xlane.f32.xlu1 %v10250_v33  ;;  %v10244_v49 = vpop.f32.mrf.mxu1 }
0x4c21   :  { %v10249_v22 = vmul.f32 0.35355338, %v10244_v49 }
0x4c22   :  { %v13045_v34 = vpop.f32.mrf.mxu1 }
0x4c23   :  { %v10253_v50 = vsel %vm192_vm2, %v10249_v22, -inf }
0x4c24   :  { %10254 = vmax.xlane.f32.xlu0 %v10253_v50 }
0x4ca9   :  { %v10252_v52 = vpop.xlane.xlu1 %10251 }
0x4caa   :  { %v10256_v27 = vsub.f32 %v10248_v63, %v10252_v52 }
0x4cac   :  { %v10258_v10 = vmul.f32 1.442695, %v10256_v27 }
0x4cad   :  { %v10255_v39 = vpop.xlane.xlu0 %10254 }
0x4cae   :  { %13373 = vpow2.f32 %v10258_v10  ;;  %v10257_v36 = vsub.f32 %v10249_v22, %v10255_v39 }
0x4cb0   :  { %v10260_v38 = vmul.f32 1.442695, %v10257_v36 }
0x4cb2   :  { %13375 = vpow2.f32 %v10260_v38  ;;  %v13461_v38 = vld [vmem:[%s15322_s11 + $0x18] sm:$0xff] }
0x4cbb   :  { %v13374_v42 = vpop.eup %13373 }
0x4cbc   :  { %v10262_v35 = vsel %vm192_vm2, %v13374_v42, 0.0 }
0x4cbd   :  { %10263 = vadd.xlane.f32.xlu0 %v10262_v35 }
0x4cbf   :  { %v13376_v47 = vpop.eup %13375 }
0x4cc0   :  { %v10265_v40 = vsel %vm192_vm2, %v13376_v47, 0.0 }
0x4cc1   :  { %10266 = vadd.xlane.f32.xlu1 %v10265_v40 }
0x4cd2   :  { %10654 = vrot.lane.b32.xlu1 %v15083_v15, %s15379_s2 }
0x4cd3   :  { %10580 = vrot.lane.b32.xlu0 %v15075_v37, %s15379_s2 }
0x4d46   :  { %v10264_v2 = vpop.xlane.xlu0 %10263 }
0x4d47   :  { %13377 = vrcp.f32 %v10264_v2 }
0x4d4a   :  { %v10267_v31 = vpop.xlane.xlu1 %10266 }
0x4d4b   :  { %13379 = vrcp.f32 %v10267_v31 }
0x4d4e   :  { %v10655_v59 = vpop.permute.xlu1 %10654 }
0x4d54   :  { %v13378_v7 = vpop.eup %13377 }
0x4d55   :  { %v10270_v62 = vmul.f32 %v13378_v7, %v13374_v42 }
0x4d57   :  { %13049 = vmatmul.mubr.msk.f32.vlgmr.msra.gmra.mxu0 %vm192_vm2, %v10270_v62 }
0x4d58   :  { %v13380_v57 = vpop.eup %13379  ;;  %13057 = vmatpush3.msra.mxu0 %v13457_v53 }
0x4d59   :  { %v10271_v58 = vmul.f32 %v13380_v57, %v13376_v47  ;;  %13066 = vmatprep.subr.mxu0 %v13498_v6 }
0x4d5b   :  { %13054 = vmatmul.mubr.msk.f32.vlgmr.msra.gmra.mxu1 %vm192_vm2, %v10271_v58 }
0x4d5c   :  { %13063 = vmatprep.mubr.msk.f32.mxu1 %vm192_vm2, %v10023_v23  ;;  %13062 = vmatpush3.msra.mxu1 %v13458_v29 }
0x4d5d   :  { %13071 = vmatprep.subr.mxu1 %v13498_v6 }
0x4d5f   :  { %13064 = vmatmul.mubr.msk.f32.vlgmr.msra.gmra.mxu1 %vm192_vm2, %v10096_v16 }
0x4d60   :  { %13072 = vmatpush3.xpose.msk.msra.mxu1 %vm192_vm2, %v14622_v11  ;;  %13073 = vmatprep.mubr.msk.f32.mxu1 %vm13499_vm1, %v13498_v6 }
0x4d61   :  { %13081 = vmatprep.subr.mxu1 %v13498_v6 }
0x4d63   :  { %13074 = vmatmul.mubr.msk.f32.vlgmr.msra.gmra.mxu1 %vm192_vm2, %v10655_v59 }
0x4d64   :  { %13082 = vmatpush3.msra.mxu1 %v14666_v51  ;;  %13083 = vmatprep.mubr.msk.f32.mxu1 %vm13499_vm1, %v13498_v6  ;;  %v10581_v51 = vpop.permute.xlu0 %10580 }
0x4d65   :  { %13091 = vmatprep.subr.mxu1 %v13498_v6 }
0x4e17   :  { %v10341_v4 = vpop.f32.mrf.mxu0 }
0x4e18   :  { %13058 = vmatprep.mubr.msk.f32.mxu0 %vm192_vm2, %v10341_v4 }
0x4e19   :  { %v13050_v43 = vpop.f32.mrf.mxu0 }
0x4e1b   :  { %v10414_v11 = vpop.f32.mrf.mxu1 }
0x4e1c   :  { %13059 = vmatmul.mubr.msk.f32.vlgmr.msra.gmra.mxu0 %vm192_vm2, %v10414_v11 }
0x4e1d   :  { %13067 = vmatpush3.xpose.msk.msra.mxu0 %vm192_vm2, %v14637_v45  ;;  %v13055_v17 = vpop.f32.mrf.mxu1  ;;  %13068 = vmatprep.mubr.msk.f32.mxu0 %vm13499_vm1, %v13498_v6  ;;  %v13459_v45 = vld [vmem:[%s15385_s1 + $0x10] sm:$0xff] }
0x4e1e   :  { %13076 = vmatprep.subr.mxu0 %v13498_v6 }
0x4e1f   :  { %v15157_v56 = vpop.f32.mrf.mxu1 }
0x4e20   :  { %13069 = vmatmul.mubr.msk.f32.vlgmr.msra.gmra.mxu0 %vm192_vm2, %v10581_v51 }
0x4e21   :  { %13077 = vmatpush3.msra.mxu0 %v14688_v24  ;;  %v15161_v21 = vpop.f32.mrf.mxu1  ;;  %13078 = vmatprep.mubr.msk.f32.mxu0 %vm13499_vm1, %v13498_v6 }
0x4e22   :  { %13086 = vmatprep.subr.mxu0 %v13459_v45 }
0x4e23   :  { %v10724_v28 = vpop.f32.mrf.mxu1 }
0x4e24   :  { %v10729_v48 = vmul.f32 0.35355338, %v10724_v28 }
0x4e25   :  { %v13075_v41 = vpop.f32.mrf.mxu1 }
0x4e26   :  { %v10733_v61 = vsel %vm192_vm2, %v10729_v48, -inf }
0x4e27   :  { %10734 = vmax.xlane.f32.xlu0 %v10733_v61 }
0x4eb0   :  { %v10735_v44 = vpop.xlane.xlu0 %10734 }
0x4eb1   :  { %v10737_v20 = vsub.f32 %v10729_v48, %v10735_v44  ;;  %v13462_v48 = vld [vmem:[%s15324_s13 + $0x38] sm:$0xff] }
0x4eb3   :  { %v10740_v32 = vmul.f32 1.442695, %v10737_v20  ;;  %v13463_v20 = vld [vmem:[%s15322_s11 + $0x10] sm:$0xff] }
0x4eb5   :  { %13381 = vpow2.f32 %v10740_v32  ;;  %v13464_v32 = vld [vmem:[%s15322_s11 + $0x8] sm:$0xff] }
0x4ec2   :  { %v13382_v13 = vpop.eup %13381 }
0x4ec3   :  { %v10745_v53 = vsel %vm192_vm2, %v13382_v13, 0.0 }
0x4edc   :  { %v15169_v24 = vpop.f32.mrf.mxu0 }
0x4edd   :  { %v10577_v47 = vadd.f32 %v15157_v56, %v15169_v24  ;;  %v13465_v24 = vld [vmem:[%s15322_s11] sm:$0xff]  ;;  %s13476_s11 = scalar_lea.vmem %s11730_s3, 256 }
0x4ede   :  { %v15171_v26 = vpop.f32.mrf.mxu0  ;;  %p13477_p0 = scmp.ne.s32.totalorder %s11730_s3, %s13476_s11  ;;  %p13482_p2 = scmp.lt.s32.totalorder %s13476_s11, %s13476_s11 }
0x4edf   :  { %v10572_v2 = vadd.f32 %v15161_v21, %v15171_v26 }
0x4ee0   :  { %v10650_v0 = vpop.f32.mrf.mxu0  ;;  %p13483_p3 = por %p13482_p2, %p13481_p1 }
0x4ee1   :  { %v10728_v1 = vmul.f32 0.35355338, %v10650_v0 }
0x4ee2   :  { %v13070_v9 = vpop.f32.mrf.mxu0  ;;  %p13484_p4 = pnand %p13483_p3, %p13477_p0 }
0x4ee3   :  { %v10730_v14 = vsel %vm192_vm2, %v10728_v1, -inf }
0x4ee4   :  { %10731 = vmax.xlane.f32.xlu1 %v10730_v14  ;;  %v13466_v14 = vld [vmem:[%s15324_s13 + $0x30] sm:$0xff] }
0x4ee8   :  { %10746 = vadd.xlane.f32.xlu1 %v10745_v53  ;;  %v13468_v53 = vld [vmem:[%s15324_s13 + $0x20] sm:$0xff] }
0x4ef9   :  { %11055 = vrot.lane.b32.xlu1 %v15083_v15, %s15373_s0 }
0x4f6d   :  { %v10732_v29 = vpop.xlane.xlu1 %10731 }
0x4f6e   :  { %v10736_v23 = vsub.f32 %v10728_v1, %v10732_v29  ;;  %v13469_v29 = vld [vmem:[%s15324_s13 + $0x18] sm:$0xff] }
0x4f70   :  { %v10738_v18 = vmul.f32 1.442695, %v10736_v23  ;;  %v13470_v23 = vld [vmem:[%s15324_s13 + $0x10] sm:$0xff] }
0x4f71   :  { %v10747_v16 = vpop.xlane.xlu1 %10746 }
0x4f72   :  { %13383 = vpow2.f32 %v10738_v18  ;;  %v13471_v18 = vld [vmem:[%s15324_s13 + $0x8] sm:$0xff] }
0x4f73   :  { %13385 = vrcp.f32 %v10747_v16  ;;  %v13472_v16 = vld [vmem:[%s15324_s13] sm:$0xff] }
0x4f75   :  { %v11056_v36 = vpop.permute.xlu1 %11055 }
0x4f7f   :  { %v13384_v12 = vpop.eup %13383 }
0x4f80   :  { %v13386_v63 = vpop.eup %13385  ;;  %v10742_v5 = vsel %vm192_vm2, %v13384_v12, 0.0 }
0x4f81   :  { %v10751_v60 = vmul.f32 %v13386_v63, %v13382_v13  ;;  %10743 = vadd.xlane.f32.xlu0 %v10742_v5  ;;  %v13467_v13 = vld [vmem:[%s15324_s13 + $0x28] sm:$0xff] }
0x4f83   :  { %13084 = vmatmul.mubr.msk.f32.vlgmr.msra.gmra.mxu1 %vm192_vm2, %v10751_v60  ;;  %v13473_v60 = vld [vmem:[%s15317_s6] ss:$0 sm:$0xff] }
0x4f84   :  { %13092 = vmatpush3.xpose.msk.msra.mxu1 %vm192_vm2, %v14670_v55  ;;  %13093 = vmatprep.mubr.msk.f32.mxu1 %vm13499_vm1, %v13498_v6  ;;  %v13460_v55 = vld [vmem:[%s15385_s1 + $0x18] sm:$0xff] }
0x4f85   :  { %13101 = vmatprep.subr.mxu1 %v13498_v6 }
0x4f97   :  { %10981 = vrot.lane.b32.xlu0 %v15075_v37, %s15373_s0  ;;  %s15386_s0 = sld [smem:[#allocation10_spill]] }
0x500a   :  { %v10744_v15 = vpop.xlane.xlu0 %10743 }
0x500b   :  { %13387 = vrcp.f32 %v10744_v15 }
0x500e   :  { %v10982_v33 = vpop.permute.xlu0 %10981 }
0x500f   :  { %13094 = vmatmul.mubr.msk.f32.vlgmr.msra.gmra.mxu1 %vm192_vm2, %v10982_v33 }
0x5010   :  { %13102 = vmatpush3.msra.mxu1 %v14721_v8  ;;  %13103 = vmatprep.mubr.msk.f32.mxu1 %vm13499_vm1, %v13498_v6 }
0x5011   :  { %13111 = vmatprep.subr.mxu1 %v13460_v55 }
0x5018   :  { %v13388_v49 = vpop.eup %13387 }
0x5019   :  { %v10750_v22 = vmul.f32 %v13388_v49, %v13384_v12 }
0x501b   :  { %13079 = vmatmul.mubr.msk.f32.vlgmr.msra.gmra.mxu0 %vm192_vm2, %v10750_v22 }
0x501c   :  { %13087 = vmatpush3.msra.mxu0 %v13459_v45 }
0x501d   :  { %13096 = vmatprep.subr.mxu0 %v13498_v6 }
0x5043   :  { %v10894_v37 = vpop.f32.mrf.mxu1 }
0x5045   :  { %v13085_v34 = vpop.f32.mrf.mxu1 }
0x50cf   :  { %v11051_v50 = vpop.f32.mrf.mxu1 }
0x50d0   :  { %v11129_v52 = vmul.f32 0.35355338, %v11051_v50 }
0x50d1   :  { %v13095_v8 = vpop.f32.mrf.mxu1 }
0x50d2   :  { %v11131_v27 = vsel %vm192_vm2, %v11129_v52, -inf }
0x50d3   :  { %11132 = vmax.xlane.f32.xlu1 %v11131_v27 }
0x50db   :  { %v10821_v10 = vpop.f32.mrf.mxu0 }
0x50dc   :  { %13088 = vmatprep.mubr.msk.f32.mxu0 %vm192_vm2, %v10821_v10 }
0x50dd   :  { %v13080_v39 = vpop.f32.mrf.mxu0  ;;  %13089 = vmatmul.mubr.msk.f32.vlgmr.msra.gmra.mxu0 %vm192_vm2, %v10894_v37 }
0x50de   :  { %13097 = vmatpush3.xpose.msk.msra.mxu0 %vm192_vm2, %v14697_v46  ;;  %13098 = vmatprep.mubr.msk.f32.mxu0 %vm13499_vm1, %v13498_v6 }
0x50df   :  { %13106 = vmatprep.subr.mxu0 %v13498_v6 }
0x50e1   :  { %13099 = vmatmul.mubr.msk.f32.vlgmr.msra.gmra.mxu0 %vm192_vm2, %v11056_v36 }
0x50e2   :  { %13107 = vmatpush3.msra.mxu0 %v14734_v54  ;;  %13108 = vmatprep.mubr.msk.f32.mxu0 %vm13499_vm1, %v13498_v6 }
0x50e3   :  { %13116 = vmatprep.subr.mxu0 %v13461_v38 }
0x515c   :  { %v11133_v42 = vpop.xlane.xlu1 %11132 }
0x515d   :  { %v11137_v46 = vsub.f32 %v11129_v52, %v11133_v42 }
0x515f   :  { %v11139_v35 = vmul.f32 1.442695, %v11137_v46 }
0x5161   :  { %13389 = vpow2.f32 %v11139_v35 }
0x516e   :  { %v13390_v59 = vpop.eup %13389 }
0x516f   :  { %v11143_v4 = vsel %vm192_vm2, %v13390_v59, 0.0 }
0x519d   :  { %v13090_v40 = vpop.f32.mrf.mxu0 }
0x519e   :  { %v15214_v54 = vadd.f32 %v13090_v40, %v10577_v47 }
0x519f   :  { %v10970_v31 = vpop.f32.mrf.mxu0 }
0x51a0   :  { %v15216_v6 = vadd.f32 %v10970_v31, %v10572_v2 }
0x51a1   :  { %v11125_v7 = vpop.f32.mrf.mxu0 }
0x51a2   :  { %v11130_v62 = vmul.f32 0.35355338, %v11125_v7 }
0x51a3   :  { %v13100_v57 = vpop.f32.mrf.mxu0 }
0x51a4   :  { %v11134_v58 = vsel %vm192_vm2, %v11130_v62, -inf }
0x51a5   :  { %11135 = vmax.xlane.f32.xlu0 %v11134_v58 }
0x51a9   :  { %11144 = vadd.xlane.f32.xlu0 %v11143_v4 }
0x522e   :  { %v11136_v43 = vpop.xlane.xlu0 %11135 }
0x522f   :  { %v11138_v11 = vsub.f32 %v11130_v62, %v11136_v43  ;;  %v13474_v43 = vld [vmem:[%s15323_s12] ss:$0 sm:$0xff] }
0x5231   :  { %v11141_v17 = vmul.f32 1.442695, %v11138_v11 }
0x5232   :  { %v11145_v51 = vpop.xlane.xlu0 %11144 }
0x5233   :  { %13391 = vpow2.f32 %v11141_v17 }
0x5234   :  { %13393 = vrcp.f32 %v11145_v51 }
0x5240   :  { %v13392_v56 = vpop.eup %13391 }
0x5241   :  { %v13394_v21 = vpop.eup %13393  ;;  %v11146_v45 = vsel %vm192_vm2, %v13392_v56, 0.0 }
0x5242   :  { %v11151_v28 = vmul.f32 %v13394_v21, %v13390_v59  ;;  %11147 = vadd.xlane.f32.xlu1 %v11146_v45 }
0x5244   :  { %13104 = vmatmul.mubr.msk.f32.vlgmr.msra.gmra.mxu1 %vm192_vm2, %v11151_v28  ;;  %v13475_v28 = vld [vmem:[%s15386_s0] ss:$0 sm:$0xff] }
0x5245   :  { %13112 = vmatpush3.msra.mxu1 %v13460_v55 }
0x5246   :  { %13127 = vmatprep.subr.mxu1 %v13462_v48 }
0x52cb   :  { %v11148_v41 = vpop.xlane.xlu1 %11147 }
0x52cc   :  { %13395 = vrcp.f32 %v11148_v41 }
0x52d9   :  { %v13396_v61 = vpop.eup %13395 }
0x52da   :  { %v11152_v44 = vmul.f32 %v13396_v61, %v13392_v56 }
0x52dc   :  { %13109 = vmatmul.mubr.msk.f32.vlgmr.msra.gmra.mxu0 %vm192_vm2, %v11152_v44 }
0x52dd   :  { %13117 = vmatpush3.msra.mxu0 %v13461_v38 }
0x52de   :  { %13118 = vmatprep.subr.mxu0 %v13463_v20 }
0x52df   :  { %13119 = vmatpush3.msra.mxu0 %v13463_v20 }
0x52e0   :  { %13120 = vmatprep.subr.mxu0 %v13464_v32 }
0x52e1   :  { %13121 = vmatpush3.msra.mxu0 %v13464_v32 }
0x52e2   :  { %13122 = vmatprep.subr.mxu0 %v13465_v24 }
0x52e3   :  { %13123 = vmatpush3.msra.mxu0 %v13465_v24 }
0x5304   :  { %v11222_v26 = vpop.f32.mrf.mxu1 }
0x5305   :  { %13113 = vmatprep.mubr.msk.f32.mxu1 %vm192_vm2, %v11222_v26 }
0x5306   :  { %v13105_v0 = vpop.f32.mrf.mxu1 }
0x539c   :  { %v11295_v1 = vpop.f32.mrf.mxu0 }
0x539d   :  { %13114 = vmatmul.mubr.msk.f32.vlgmr.msra.gmra.mxu1 %vm192_vm2, %v11295_v1 }
0x539e   :  { %v13110_v9 = vpop.f32.mrf.mxu0  ;;  %13128 = vmatpush3.msra.mxu1 %v13462_v48 }
0x539f   :  { %13129 = vmatprep.subr.mxu1 %v13466_v14 }
0x53a0   :  { %13130 = vmatpush3.msra.mxu1 %v13466_v14 }
0x53a1   :  { %13131 = vmatprep.subr.mxu1 %v13467_v13 }
0x53a2   :  { %13132 = vmatpush3.msra.mxu1 %v13467_v13 }
0x53a3   :  { %13133 = vmatprep.subr.mxu1 %v13468_v53 }
0x53a4   :  { %13134 = vmatpush3.msra.mxu1 %v13468_v53 }
0x53a5   :  { %13135 = vmatprep.subr.mxu1 %v13469_v29 }
0x53a6   :  { %13136 = vmatpush3.msra.mxu1 %v13469_v29 }
0x53a7   :  { %13137 = vmatprep.subr.mxu1 %v13470_v23 }
0x53a8   :  { %13138 = vmatpush3.msra.mxu1 %v13470_v23 }
0x53a9   :  { %13139 = vmatprep.subr.mxu1 %v13471_v18 }
0x53aa   :  { %13140 = vmatpush3.msra.mxu1 %v13471_v18 }
0x53ab   :  { %13141 = vmatprep.subr.mxu1 %v13472_v16 }
0x53ac   :  { %13142 = vmatpush3.msra.mxu1 %v13472_v16  ;;  %v11615_v16 = vld [vmem:[%s15387_s9 + $0x18] sm:$0xff] }
0x53ad   :  { %13146 = vmatprep.subr.mxu0 %v11615_v16 }
0x545d   :  { %v13115_v12 = vpop.f32.mrf.mxu1 }
0x545e   :  { %v11381_v63 = vadd.f32 %v13115_v12, %v15214_v54  ;;  %v11614_v12 = vld [vmem:[%s15387_s9 + $0x10] sm:$0xff] }
0x545f   :  { %v11371_v5 = vpop.f32.mrf.mxu1 }
0x5460   :  { %v11383_v15 = vadd.f32 %v13473_v60, %v11381_v63  ;;  %v11380_v33 = vadd.f32 %v11371_v5, %v15216_v6  ;;  %v11613_v63 = vld [vmem:[%s15387_s9 + $0x8] sm:$0xff]  ;;  %v11612_v5 = vld [vmem:[%s15387_s9] sm:$0xff] }
0x5462   :  { %v11382_v55 = vadd.f32 %v13473_v60, %v11380_v33  ;;  %v11385_v49 = vadd.f32 %v11383_v15, %v15062_v25 }
0x5464   :  { %v11389_v22 = vsel %vm107_vm0, %v11385_v49, 0.0  ;;  %v11384_v37 = vadd.f32 %v11382_v55, %v15059_v30 }
0x5465   :  { %11390 = vadd.xlane.f32.xlu1 %v11389_v22 }
0x5466   :  { %v11386_v34 = vsel %vm107_vm0, %v11384_v37, 0.0 }
0x5467   :  { %11387 = vadd.xlane.f32.xlu0 %v11386_v34 }
0x54ee   :  { %v11391_v50 = vpop.xlane.xlu1 %11390 }
0x54ef   :  { %v11393_v52 = vmul.f32 0.03125, %v11391_v50 }
0x54f0   :  { %v11388_v8 = vpop.xlane.xlu0 %11387 }
0x54f1   :  { %v11395_v27 = vsub.f32 %v11385_v49, %v11393_v52  ;;  %v11392_v10 = vmul.f32 0.03125, %v11388_v8 }
0x54f3   :  { %v11394_v39 = vsub.f32 %v11384_v37, %v11392_v10  ;;  %v11397_v36 = vmul.f32 %v11395_v27, %v11395_v27 }
0x54f5   :  { %v11401_v38 = vsel %vm107_vm0, %v11397_v36, 0.0  ;;  %v11396_v42 = vmul.f32 %v11394_v39, %v11394_v39  ;;  %v11970_v36 = vld [vmem:[%s15388_s8] ss:$0 sm:$0xff] }
0x54f6   :  { %11402 = vadd.xlane.f32.xlu1 %v11401_v38 }
0x54f7   :  { %v11398_v25 = vsel %vm107_vm0, %v11396_v42, 0.0 }
0x54f8   :  { %11399 = vadd.xlane.f32.xlu0 %v11398_v25 }
0x557f   :  { %v11403_v46 = vpop.xlane.xlu1 %11402 }
0x5580   :  { %v11405_v30 = vmul.f32 0.03125, %v11403_v46 }
0x5581   :  { %v11400_v35 = vpop.xlane.xlu0 %11399 }
0x5582   :  { %v11407_v47 = vadd.f32 1e-05, %v11405_v30  ;;  %v11404_v40 = vmul.f32 0.03125, %v11400_v35 }
0x5584   :  { %13397 = vrsqrt.f32 %v11407_v47  ;;  %v11406_v2 = vadd.f32 1e-05, %v11404_v40 }
0x5586   :  { %13399 = vrsqrt.f32 %v11406_v2 }
0x5591   :  { %v13398_v54 = vpop.eup %13397 }
0x5592   :  { %v11411_v31 = vmul.f32 %v13398_v54, %v11395_v27 }
0x5593   :  { %v13400_v6 = vpop.eup %13399 }
0x5594   :  { %v11410_v7 = vmul.f32 %v13400_v6, %v11394_v39  ;;  %v11413_v62 = vmul.f32 %v15049_v3, %v11411_v31 }
0x5596   :  { %v11412_v57 = vmul.f32 %v15049_v3, %v11410_v7  ;;  %v11415_v59 = vadd.f32 %v15056_v19, %v11413_v62 }
0x5598   :  { %v11414_v58 = vadd.f32 %v15056_v19, %v11412_v57 }
0x559a   :  { %13124 = vmatprep.mubr.msk.f32.mxu0 %vm107_vm0, %v11414_v58 }
0x559b   :  { %13125 = vmatmul.mubr.msk.f32.vlgmr.msra.gmra.mxu0 %vm107_vm0, %v11415_v59 }
0x559c   :  { %13147 = vmatpush3.msra.mxu0 %v11615_v16 }
0x559d   :  { %13148 = vmatprep.subr.mxu0 %v11614_v12 }
0x559e   :  { %13149 = vmatpush3.msra.mxu0 %v11614_v12 }
0x559f   :  { %13150 = vmatprep.subr.mxu0 %v11613_v63 }
0x55a0   :  { %13151 = vmatpush3.msra.mxu0 %v11613_v63 }
0x55a1   :  { %13152 = vmatprep.subr.mxu0 %v11612_v5 }
0x55a2   :  { %13153 = vmatpush3.msra.mxu0 %v11612_v5 }
0x565b   :  { %v13126_v4 = vpop.f32.mrf.mxu0 }
0x565c   :  { %v11494_v11 = vadd.f32 %v13474_v43, %v13126_v4 }
0x565d   :  { %v11488_v17 = vpop.f32.mrf.mxu0 }
0x565e   :  { %v11489_v51 = vadd.f32 %v13474_v43, %v11488_v17  ;;  %v11498_v21 = vmax.f32 %v11494_v11, 0.0 }
0x5660   :  { %v11497_v56 = vmax.f32 %v11489_v51, 0.0 }
0x5662   :  { %13143 = vmatprep.mubr.msk.f32.mxu1 %vm1992_vm3, %v11497_v56 }
0x5663   :  { %13144 = vmatmul.mubr.msk.f32.vlgmr.msra.gmra.mxu1 %vm1992_vm3, %v11498_v21 }
0x5723   :  { %v13145_v45 = vpop.f32.mrf.mxu1 }
0x5724   :  { %v11577_v48 = vadd.f32 %v13475_v28, %v13145_v45 }
0x5725   :  { %v11571_v41 = vpop.f32.mrf.mxu1 }
0x5726   :  { %v11581_v61 = vadd.f32 %v11577_v48, %v11415_v59  ;;  %v11572_v44 = vadd.f32 %v13475_v28, %v11571_v41 }
0x5728   :  { %v11580_v20 = vadd.f32 %v11572_v44, %v11414_v58  ;;  %v11585_v32 = vsel %vm107_vm0, %v11581_v61, 0.0 }
0x5729   :  { %11586 = vadd.xlane.f32.xlu1 %v11585_v32 }
0x572a   :  { %v11582_v24 = vsel %vm107_vm0, %v11580_v20, 0.0 }
0x572b   :  { %11583 = vadd.xlane.f32.xlu0 %v11582_v24 }
0x57b2   :  { %v11587_v26 = vpop.xlane.xlu1 %11586 }
0x57b3   :  { %v11589_v0 = vmul.f32 0.03125, %v11587_v26 }
0x57b4   :  { %v11584_v1 = vpop.xlane.xlu0 %11583 }
0x57b5   :  { %v11591_v9 = vsub.f32 %v11581_v61, %v11589_v0  ;;  %v11588_v14 = vmul.f32 0.03125, %v11584_v1 }
0x57b7   :  { %v11590_v13 = vsub.f32 %v11580_v20, %v11588_v14  ;;  %v11593_v53 = vmul.f32 %v11591_v9, %v11591_v9 }
0x57b9   :  { %v11597_v29 = vsel %vm107_vm0, %v11593_v53, 0.0  ;;  %v11592_v23 = vmul.f32 %v11590_v13, %v11590_v13 }
0x57ba   :  { %11598 = vadd.xlane.f32.xlu1 %v11597_v29 }
0x57bb   :  { %v11594_v18 = vsel %vm107_vm0, %v11592_v23, 0.0 }
0x57bc   :  { %11595 = vadd.xlane.f32.xlu0 %v11594_v18 }
0x5843   :  { %v11599_v60 = vpop.xlane.xlu1 %11598 }
0x5844   :  { %v11601_v15 = vmul.f32 0.03125, %v11599_v60 }
0x5845   :  { %v11596_v33 = vpop.xlane.xlu0 %11595 }
0x5846   :  { %v11603_v55 = vadd.f32 1e-05, %v11601_v15  ;;  %v11600_v49 = vmul.f32 0.03125, %v11596_v33 }
0x5848   :  { %13401 = vrsqrt.f32 %v11603_v55  ;;  %v11602_v22 = vadd.f32 1e-05, %v11600_v49 }
0x584a   :  { %13403 = vrsqrt.f32 %v11602_v22 }
0x5855   :  { %v13402_v37 = vpop.eup %13401 }
0x5856   :  { %v11607_v34 = vmul.f32 %v13402_v37, %v11591_v9 }
0x5857   :  { %v13404_v50 = vpop.eup %13403 }
0x5858   :  { %v11606_v52 = vmul.f32 %v13404_v50, %v11590_v13  ;;  %v11609_v8 = vmul.f32 %v15049_v3, %v11607_v34 }
0x585a   :  { %v11608_v27 = vmul.f32 %v15049_v3, %v11606_v52  ;;  %v11611_v39 = vadd.f32 %v15056_v19, %v11609_v8 }
0x585c   :  { %v11610_v10 = vadd.f32 %v15056_v19, %v11608_v27 }
0x585e   :  { %13154 = vmatprep.mubr.msk.f32.mxu0 %vm107_vm0, %v11610_v10 }
0x585f   :  { %13155 = vmatmul.mubr.msk.f32.vlgmr.msra.gmra.mxu0 %vm107_vm0, %v11611_v39 }
0x591f   :  { %v13156_v38 = vpop.f32.mrf.mxu0 }
0x5920   :  { %v11701_v42 = vadd.f32 %v13156_v38, %v11970_v36 }
0x5921   :  { %v11695_v25 = vpop.f32.mrf.mxu0 }
0x5922   :  { %v11696_v46 = vadd.f32 %v11970_v36, %v11695_v25  ;;  %11706 = vmax.xlane.f32.xlu1 %v11701_v42 }
0x5924   :  { %11704 = vmax.xlane.f32.xlu0 %v11696_v46 }
0x59ab   :  { %v11707_v30 = vpop.xlane.xlu1 %11706 }
0x59ac   :  { %v11709_v3 = vsub.f32 %v11701_v42, %v11707_v30 }
0x59ad   :  { %v11705_v35 = vpop.xlane.xlu0 %11704 }
0x59ae   :  { %v11712_v47 = vmul.f32 1.442695, %v11709_v3  ;;  %v11708_v40 = vsub.f32 %v11696_v46, %v11705_v35 }
0x59b0   :  { %13405 = vpow2.f32 %v11712_v47  ;;  %v11710_v19 = vmul.f32 1.442695, %v11708_v40 }
0x59b2   :  { %13407 = vpow2.f32 %v11710_v19 }
0x59bd   :  { %v13406_v2 = vpop.eup %13405 }
0x59be   :  { %11716 = vadd.xlane.f32.xlu1 %v13406_v2 }
0x59bf   :  { %v13408_v54 = vpop.eup %13407 }
0x59c0   :  { %11714 = vadd.xlane.f32.xlu0 %v13408_v54 }
0x5a47   :  { %v11717_v31 = vpop.xlane.xlu1 %11716 }
0x5a48   :  { %13409 = vrcp.f32 %v11717_v31 }
0x5a49   :  { %v11715_v6 = vpop.xlane.xlu0 %11714 }
0x5a4a   :  { %13411 = vrcp.f32 %v11715_v6 }
0x5a55   :  { %v13410_v7 = vpop.eup %13409 }
0x5a56   :  { %v11721_v62 = vmul.f32 %v13410_v7, %v13406_v2 }
0x5a57   :  { %v13412_v57 = vpop.eup %13411 }
0x5a58   :  { %v11719_v58 = vmul.f32 %v13412_v57, %v13408_v54  ;;  %11723 = vst [vmem:[#allocation2 + $0x8] sm:$0xff] %v11721_v62 }
0x5a5a   :  { %11722 = vst [vmem:[#allocation2] sm:$0xff] %v11719_v58 }
0x5a5b   :  { %13487 = shalt.err (!%p13484_p4)
}
0x5a5c   :  { %s13512_s18 = smov 128   ;;  %s13513_s27 = smov 8  }
0x5a5d   :  { %s15389_s4 = sld [smem:[#allocation13_spill]] }
0x5a63   :  { %11735 = dma.vmem_to_hbm [thread:$0]  %s11730_s3, 256, %s15389_s4, [#allocation3], %s13512_s18, %s13512_s18, %s13513_s27  }
0x5a64   :  { %13496 = dma.done.wait [#allocation3], 256  }
0x5a65   :  { %13497 = vsyncadd [#allocation3], 4294967040 }
0x5a66   :  { %11739 = vsyncpa [#allocation3], 1 }

</bundles_post_ra>
